<compile_context>
chip_gen: v6e
topology: v6e:2x2x1
jax: 0.10.0
libtpu: 0.0.40
codegen_flags: <defaults>
</compile_context>

<pallas_src>
import functools

import jax
import jax.numpy as jnp
import numpy as np
from jax import lax
from jax.experimental import pallas as pl
from jax.experimental.pallas import tpu as pltpu

EPS = 1e-5


# ------------------------------ in-kernel helpers --------------------------- #

def _shift_rows(x, shift):
    """y[r] = x[r + shift] where in range, else 0.  `shift` is a static int."""
    if shift == 0:
        return x
    R = x.shape[0]
    zeros = jnp.zeros((abs(shift),) + x.shape[1:], x.dtype)
    if shift > 0:
        return jnp.concatenate([x[shift:], zeros], axis=0)
    return jnp.concatenate([zeros, x[:R + shift]], axis=0)


def _im2col_3x3(phases, Ho, Wo, s):
    """im2col patches (Ho*Wo, 9*C) of a 3x3 conv with stride `s`, padding 1.

    `phases[a*s+b]` is x[a::s, b::s, :] flattened to (Ho*Wo, C); for s == 1
    this is just [x2d].  Taps are row shifts of the phase matrices; the
    zero-fill of the shift plus a W-boundary mask reproduces the zero padding.
    """
    R = Ho * Wo
    wo_idx = jax.lax.broadcasted_iota(jnp.int32, (R, 1), 0) % Wo
    cols = []
    for kh in range(3):                      # input row = s*ho + (kh - 1)
        ph = (kh - 1) % s
        oh = (kh - 1 - ph) // s              # -1 or 0 (or +1 when s == 1)
        for kw in range(3):
            pw = (kw - 1) % s
            ow = (kw - 1 - pw) // s
            t = _shift_rows(phases[ph * s + pw], oh * Wo + ow)
            if ow == -1:
                t = jnp.where(wo_idx >= 1, t, jnp.zeros_like(t))
            elif ow == 1:
                t = jnp.where(wo_idx <= Wo - 2, t, jnp.zeros_like(t))
            cols.append(t)
    return jnp.concatenate(cols, axis=1)     # (R, 9*C), tap-major (kh, kw, c)


# --------------------------------- kernel ----------------------------------- #

def _basic_block_kernel(*refs, Ho, Wo, s):
    """Fused BasicBlock: conv1+bn1+relu -> conv2+bn2 -> (+downsample) -> relu."""
    if s == 1:
        xph_ref, w1_ref, sb1_ref, w2_ref, sb2_ref, o_ref = refs
        wd_ref = sbd_ref = None
    else:
        xph_ref, w1_ref, sb1_ref, w2_ref, sb2_ref, wd_ref, sbd_ref, o_ref = refs

    cdt = jnp.bfloat16
    phases = [xph_ref[0, i] for i in range(s * s)]       # each (Ho*Wo, Cin) f32

    # conv1 (3x3, stride s) + bn1 + relu : one MXU matmul, K = 9*Cin, bf16 x bf16 -> f32
    p1 = _im2col_3x3(phases, Ho, Wo, s).astype(cdt)
    y1 = jnp.dot(p1, w1_ref[...], preferred_element_type=jnp.float32)
    y1 = jnp.maximum(y1 * sb1_ref[0:1, :] + sb1_ref[1:2, :], 0.0)

    # conv2 (3x3, stride 1) + bn2 : intermediate y1 never leaves VMEM
    p2 = _im2col_3x3([y1], Ho, Wo, 1).astype(cdt)
    y2 = jnp.dot(p2, w2_ref[...], preferred_element_type=jnp.float32)
    y2 = y2 * sb2_ref[0:1, :] + sb2_ref[1:2, :]

    # residual branch
    if s == 1:
        res = phases[0]                                  # identity (f32)
    else:
        # 1x1 / stride-s conv == matmul on the (0, 0) phase, + folded BN
        res = jnp.dot(phases[0].astype(cdt), wd_ref[...],
                      preferred_element_type=jnp.float32)
        res = res * sbd_ref[0:1, :] + sbd_ref[1:2, :]

    o_ref[0] = jnp.maximum(y2 + res, 0.0).astype(o_ref.dtype)


# ------------------------------ BasicBlock wrapper -------------------------- #

def _fold_bn(gamma, beta, mean, var):
    scale = gamma / jnp.sqrt(var + EPS)
    return scale, beta - mean * scale


def init_basic_block_params(key, in_planes, planes, stride=1):
    ks = jax.random.split(key, 12)
    p = {
        "w1": jax.random.normal(ks[0], (3, 3, in_planes, planes), jnp.float32) * 0.2,
        "w2": jax.random.normal(ks[1], (3, 3, planes, planes), jnp.float32) * 0.2,
    }
    for i, tag in enumerate(("1", "2")):
        p[f"g{tag}"] = 0.5 + jax.random.uniform(ks[2 + i], (planes,), jnp.float32)
        p[f"b{tag}"] = jax.random.normal(ks[4 + i], (planes,), jnp.float32) * 0.1
        p[f"m{tag}"] = jax.random.normal(ks[6 + i], (planes,), jnp.float32) * 0.1
        p[f"v{tag}"] = 0.5 + jax.random.uniform(ks[8 + i], (planes,), jnp.float32)
    if stride != 1:
        p["wd"] = jax.random.normal(ks[10], (in_planes, planes), jnp.float32) * 0.2
        kd = jax.random.split(ks[11], 4)
        p["gd"] = 0.5 + jax.random.uniform(kd[0], (planes,), jnp.float32)
        p["bd"] = jax.random.normal(kd[1], (planes,), jnp.float32) * 0.1
        p["md"] = jax.random.normal(kd[2], (planes,), jnp.float32) * 0.1
        p["vd"] = 0.5 + jax.random.uniform(kd[3], (planes,), jnp.float32)
    return p


def basic_block_forward(params, x_nchw, stride=1):
    """Pallas implementation of BasicBlock.forward (x in NCHW, like PyTorch)."""
    x = jnp.transpose(x_nchw, (0, 2, 3, 1)).astype(jnp.float32)   # NCHW -> NHWC
    N, H, W, Cin = x.shape
    P = params["w1"].shape[-1]
    s = int(stride)

    s1, b1 = _fold_bn(params["g1"], params["b1"], params["m1"], params["v1"])
    s2, b2 = _fold_bn(params["g2"], params["b2"], params["m2"], params["v2"])
    sb1 = jnp.stack([s1, b1]).astype(jnp.float32)                  # (2, P)
    sb2 = jnp.stack([s2, b2]).astype(jnp.float32)
    w1 = params["w1"].reshape(9 * Cin, P).astype(jnp.bfloat16)     # (9*Cin, P)
    w2 = params["w2"].reshape(9 * P, P).astype(jnp.bfloat16)       # (9*P,  P)

    if s == 1:
        assert Cin == P, "identity residual requires in_planes == planes"
        Ho, Wo = H, W
        xph = x.reshape(N, 1, H * W, Cin)                          # free reshape
        args = (xph, w1, sb1, w2, sb2)
        extra_specs = []
    else:
        assert H % s == 0 and W % s == 0, "stride must divide H and W"
        Ho, Wo = H // s, W // s
        # Space-to-depth phase split (single cheap XLA repack): the kernel's
        # strided im2col then only needs row shifts on the output grid.
        xph = (x.reshape(N, Ho, s, Wo, s, Cin)
                 .transpose(0, 2, 4, 1, 3, 5)
                 .reshape(N, s * s, Ho * Wo, Cin))
        sd, bd = _fold_bn(params["gd"], params["bd"], params["md"], params["vd"])
        sbd = jnp.stack([sd, bd]).astype(jnp.float32)
        wd = params["wd"].astype(jnp.bfloat16)                     # (Cin, P)
        args = (xph, w1, sb1, w2, sb2, wd, sbd)
        extra_specs = [
            pl.BlockSpec((Cin, P), lambda n: (0, 0)),
            pl.BlockSpec((2, P), lambda n: (0, 0)),
        ]

    R = Ho * Wo
    kernel = functools.partial(_basic_block_kernel, Ho=Ho, Wo=Wo, s=s)
    in_specs = [
        pl.BlockSpec((1, s * s, R, Cin), lambda n: (n, 0, 0, 0)),
        pl.BlockSpec((9 * Cin, P), lambda n: (0, 0)),
        pl.BlockSpec((2, P), lambda n: (0, 0)),
        pl.BlockSpec((9 * P, P), lambda n: (0, 0)),
        pl.BlockSpec((2, P), lambda n: (0, 0)),
    ] + extra_specs

    out = pl.pallas_call(
        kernel,
        grid=(N,),
        in_specs=in_specs,
        out_specs=pl.BlockSpec((1, R, P), lambda n: (n, 0, 0)),
        out_shape=jax.ShapeDtypeStruct((N, R, P), x.dtype),
        compiler_params=pltpu.CompilerParams(
            dimension_semantics=("parallel",)),
    )(*args)

    out = out.reshape(N, Ho, Wo, P)
    return jnp.transpose(out, (0, 3, 1, 2))                        # NHWC -> NCHW


# ------------------------------ pure-JAX reference -------------------------- #
# The reference mirrors the kernel's MXU numerics: bf16 operands, f32 accumulate.

def ref_basic_block(params, x_nchw, stride=1):
    x = jnp.transpose(x_nchw, (0, 2, 3, 1))

    def conv(v, w, s, pad):
        return lax.conv_general_dilated(
            v.astype(jnp.bfloat16), w.astype(jnp.bfloat16),
            (s, s), ((pad, pad), (pad, pad)),
            dimension_numbers=("NHWC", "HWIO", "NHWC"),
            preferred_element_type=jnp.float32)

    def bn(v, g, b, m, var):
        sc = g / jnp.sqrt(var + EPS)
        return v * sc + (b - m * sc)

    y = jax.nn.relu(bn(conv(x, params["w1"], stride, 1),
                       params["g1"], params["b1"], params["m1"], params["v1"]))
    y = bn(conv(y, params["w2"], 1, 1),
           params["g2"], params["b2"], params["m2"], params["v2"])
    if stride != 1:
        res = bn(conv(x, params["wd"][None, None], stride, 0),
                 params["gd"], params["bd"], params["md"], params["vd"])
    else:
        res = x
    return jnp.transpose(jax.nn.relu(res + y), (0, 3, 1, 2))


# ---------------------------------- main ------------------------------------ #

if __name__ == "__main__":
    key = jax.random.PRNGKey(0)
    k_x1, k_p1, k_x2, k_p2 = jax.random.split(key, 4)

    # Case 1: stride=1 (identity residual), in_planes == planes == 4
    x1 = jax.random.normal(k_x1, (2, 4, 16, 16), jnp.float32)   # NCHW
    p1 = init_basic_block_params(k_p1, in_planes=4, planes=4, stride=1)
    out1 = jax.block_until_ready(basic_block_forward(p1, x1, stride=1))
    ref1 = jax.block_until_ready(ref_basic_block(p1, x1, stride=1))
    np.testing.assert_allclose(np.asarray(out1), np.asarray(ref1),
                               rtol=1e-3, atol=1e-3)

    # Case 2: stride=2 (1x1-conv + BN downsample branch), 4 -> 8 channels
    x2 = jax.random.normal(k_x2, (2, 4, 16, 16), jnp.float32)
    p2 = init_basic_block_params(k_p2, in_planes=4, planes=8, stride=2)
    out2 = jax.block_until_ready(basic_block_forward(p2, x2, stride=2))
    ref2 = jax.block_until_ready(ref_basic_block(p2, x2, stride=2))
    assert out2.shape == (2, 8, 8, 8)
    np.testing.assert_allclose(np.asarray(out2), np.asarray(ref2),
                               rtol=1e-3, atol=1e-3)

    print("KERNEL_OK")
</pallas_src>

<mosaic_0001>
module attributes {stable_mosaic.version = 11 : i64} {
  func.func @_basic_block_kernel(%arg0: i32, %arg1: memref<1x1x256x4xf32, #tpu.memory_space<vmem>>, %arg2: memref<36x4xbf16, #tpu.memory_space<vmem>>, %arg3: memref<2x4xf32, #tpu.memory_space<vmem>>, %arg4: memref<36x4xbf16, #tpu.memory_space<vmem>>, %arg5: memref<2x4xf32, #tpu.memory_space<vmem>>, %arg6: memref<1x256x4xf32, #tpu.memory_space<vmem>>) attributes {dimension_semantics = [#tpu.dimension_semantics<parallel>], iteration_bounds = array<i64: 2>, scalar_prefetch = 0 : i64, scratch_operands = 0 : i64, tpu.core_type = #tpu.core_type<tc>, window_params = [{transform_indices = @transform_0, window_bounds = array<i64: 1, 1, 256, 4>}, {pipeline_mode = #tpu.pipeline_mode<synchronous>, transform_indices = @transform_1, window_bounds = array<i64: 36, 4>}, {pipeline_mode = #tpu.pipeline_mode<synchronous>, transform_indices = @transform_2, window_bounds = array<i64: 2, 4>}, {pipeline_mode = #tpu.pipeline_mode<synchronous>, transform_indices = @transform_3, window_bounds = array<i64: 36, 4>}, {pipeline_mode = #tpu.pipeline_mode<synchronous>, transform_indices = @transform_4, window_bounds = array<i64: 2, 4>}, {transform_indices = @transform_5, window_bounds = array<i64: 1, 256, 4>}]} {
    %c0 = arith.constant 0 : index
    %c0_0 = arith.constant 0 : index
    %c0_1 = arith.constant 0 : index
    %c0_2 = arith.constant 0 : index
    %0 = vector.load %arg1[%c0, %c0_0, %c0_1, %c0_2] : memref<1x1x256x4xf32, #tpu.memory_space<vmem>>, vector<1x1x256x4xf32>
    %1 = vector.shape_cast %0 : vector<1x1x256x4xf32> to vector<256x4xf32>
    %2 = tpu.iota {dimensions = array<i32: 0>} : vector<256x1xi32>
    %c16_i32 = arith.constant 16 : i32
    %c0_i32 = arith.constant 0 : i32
    %3 = arith.cmpi eq, %c16_i32, %c0_i32 : i32
    %c1_i32 = arith.constant 1 : i32
    %4 = arith.select %3, %c1_i32, %c16_i32 : i32
    %5 = vector.broadcast %4 : i32 to vector<256x1xi32>
    %6 = arith.remsi %2, %5 : vector<256x1xi32>
    %c0_i32_3 = arith.constant 0 : i32
    %7 = vector.broadcast %c0_i32_3 : i32 to vector<256x1xi32>
    %8 = arith.cmpi ne, %6, %7 : vector<256x1xi32>
    %c0_i32_4 = arith.constant 0 : i32
    %9 = vector.broadcast %c0_i32_4 : i32 to vector<256x1xi32>
    %10 = arith.cmpi slt, %6, %9 : vector<256x1xi32>
    %c0_i32_5 = arith.constant 0 : i32
    %11 = arith.cmpi slt, %4, %c0_i32_5 : i32
    %12 = vector.broadcast %11 : i1 to vector<256x1xi1>
    %13 = vector.broadcast %12 : vector<256x1xi1> to vector<256x1xi1>
    %14 = arith.xori %10, %13 : vector<256x1xi1>
    %15 = arith.andi %14, %8 : vector<256x1xi1>
    %16 = vector.broadcast %4 : i32 to vector<256x1xi32>
    %17 = arith.addi %6, %16 : vector<256x1xi32>
    %18 = arith.select %15, %17, %6 : vector<256x1xi1>, vector<256x1xi32>
    %cst = arith.constant 0.000000e+00 : f32
    %19 = vector.broadcast %cst : f32 to vector<17x4xf32>
    %20 = vector.extract_strided_slice %1 {offsets = [0, 0], sizes = [239, 4], strides = [1, 1]} : vector<256x4xf32> to vector<239x4xf32>
    %21 = tpu.concatenate %19, %20 in 0 : vector<17x4xf32>, vector<239x4xf32> -> vector<256x4xf32>
    %c1_i32_6 = arith.constant 1 : i32
    %22 = vector.broadcast %c1_i32_6 : i32 to vector<256x1xi32>
    %23 = arith.cmpi sge, %18, %22 : vector<256x1xi32>
    %cst_7 = arith.constant 0.000000e+00 : f32
    %24 = vector.broadcast %cst_7 : f32 to vector<256x4xf32>
    %25 = vector.shape_cast %23 : vector<256x1xi1> to vector<256x1xi1>
    %26 = vector.broadcast %25 : vector<256x1xi1> to vector<256x4xi1>
    %27 = arith.select %26, %21, %24 : vector<256x4xi1>, vector<256x4xf32>
    %cst_8 = arith.constant 0.000000e+00 : f32
    %28 = vector.broadcast %cst_8 : f32 to vector<16x4xf32>
    %29 = vector.extract_strided_slice %1 {offsets = [0, 0], sizes = [240, 4], strides = [1, 1]} : vector<256x4xf32> to vector<240x4xf32>
    %30 = tpu.concatenate %28, %29 in 0 : vector<16x4xf32>, vector<240x4xf32> -> vector<256x4xf32>
    %cst_9 = arith.constant 0.000000e+00 : f32
    %31 = vector.broadcast %cst_9 : f32 to vector<15x4xf32>
    %32 = vector.extract_strided_slice %1 {offsets = [0, 0], sizes = [241, 4], strides = [1, 1]} : vector<256x4xf32> to vector<241x4xf32>
    %33 = tpu.concatenate %31, %32 in 0 : vector<15x4xf32>, vector<241x4xf32> -> vector<256x4xf32>
    %c14_i32 = arith.constant 14 : i32
    %34 = vector.broadcast %c14_i32 : i32 to vector<256x1xi32>
    %35 = arith.cmpi sle, %18, %34 : vector<256x1xi32>
    %cst_10 = arith.constant 0.000000e+00 : f32
    %36 = vector.broadcast %cst_10 : f32 to vector<256x4xf32>
    %37 = vector.shape_cast %35 : vector<256x1xi1> to vector<256x1xi1>
    %38 = vector.broadcast %37 : vector<256x1xi1> to vector<256x4xi1>
    %39 = arith.select %38, %33, %36 : vector<256x4xi1>, vector<256x4xf32>
    %cst_11 = arith.constant 0.000000e+00 : f32
    %40 = vector.broadcast %cst_11 : f32 to vector<1x4xf32>
    %41 = vector.extract_strided_slice %1 {offsets = [0, 0], sizes = [255, 4], strides = [1, 1]} : vector<256x4xf32> to vector<255x4xf32>
    %42 = tpu.concatenate %40, %41 in 0 : vector<1x4xf32>, vector<255x4xf32> -> vector<256x4xf32>
    %c1_i32_12 = arith.constant 1 : i32
    %43 = vector.broadcast %c1_i32_12 : i32 to vector<256x1xi32>
    %44 = arith.cmpi sge, %18, %43 : vector<256x1xi32>
    %cst_13 = arith.constant 0.000000e+00 : f32
    %45 = vector.broadcast %cst_13 : f32 to vector<256x4xf32>
    %46 = vector.shape_cast %44 : vector<256x1xi1> to vector<256x1xi1>
    %47 = vector.broadcast %46 : vector<256x1xi1> to vector<256x4xi1>
    %48 = arith.select %47, %42, %45 : vector<256x4xi1>, vector<256x4xf32>
    %cst_14 = arith.constant 0.000000e+00 : f32
    %49 = vector.broadcast %cst_14 : f32 to vector<1x4xf32>
    %50 = vector.extract_strided_slice %1 {offsets = [1, 0], sizes = [255, 4], strides = [1, 1]} : vector<256x4xf32> to vector<255x4xf32>
    %51 = tpu.concatenate %50, %49 in 0 : vector<255x4xf32>, vector<1x4xf32> -> vector<256x4xf32>
    %c14_i32_15 = arith.constant 14 : i32
    %52 = vector.broadcast %c14_i32_15 : i32 to vector<256x1xi32>
    %53 = arith.cmpi sle, %18, %52 : vector<256x1xi32>
    %cst_16 = arith.constant 0.000000e+00 : f32
    %54 = vector.broadcast %cst_16 : f32 to vector<256x4xf32>
    %55 = vector.shape_cast %53 : vector<256x1xi1> to vector<256x1xi1>
    %56 = vector.broadcast %55 : vector<256x1xi1> to vector<256x4xi1>
    %57 = arith.select %56, %51, %54 : vector<256x4xi1>, vector<256x4xf32>
    %cst_17 = arith.constant 0.000000e+00 : f32
    %58 = vector.broadcast %cst_17 : f32 to vector<15x4xf32>
    %59 = vector.extract_strided_slice %1 {offsets = [15, 0], sizes = [241, 4], strides = [1, 1]} : vector<256x4xf32> to vector<241x4xf32>
    %60 = tpu.concatenate %59, %58 in 0 : vector<241x4xf32>, vector<15x4xf32> -> vector<256x4xf32>
    %c1_i32_18 = arith.constant 1 : i32
    %61 = vector.broadcast %c1_i32_18 : i32 to vector<256x1xi32>
    %62 = arith.cmpi sge, %18, %61 : vector<256x1xi32>
    %cst_19 = arith.constant 0.000000e+00 : f32
    %63 = vector.broadcast %cst_19 : f32 to vector<256x4xf32>
    %64 = vector.shape_cast %62 : vector<256x1xi1> to vector<256x1xi1>
    %65 = vector.broadcast %64 : vector<256x1xi1> to vector<256x4xi1>
    %66 = arith.select %65, %60, %63 : vector<256x4xi1>, vector<256x4xf32>
    %cst_20 = arith.constant 0.000000e+00 : f32
    %67 = vector.broadcast %cst_20 : f32 to vector<16x4xf32>
    %68 = vector.extract_strided_slice %1 {offsets = [16, 0], sizes = [240, 4], strides = [1, 1]} : vector<256x4xf32> to vector<240x4xf32>
    %69 = tpu.concatenate %68, %67 in 0 : vector<240x4xf32>, vector<16x4xf32> -> vector<256x4xf32>
    %cst_21 = arith.constant 0.000000e+00 : f32
    %70 = vector.broadcast %cst_21 : f32 to vector<17x4xf32>
    %71 = vector.extract_strided_slice %1 {offsets = [17, 0], sizes = [239, 4], strides = [1, 1]} : vector<256x4xf32> to vector<239x4xf32>
    %72 = tpu.concatenate %71, %70 in 0 : vector<239x4xf32>, vector<17x4xf32> -> vector<256x4xf32>
    %c14_i32_22 = arith.constant 14 : i32
    %73 = vector.broadcast %c14_i32_22 : i32 to vector<256x1xi32>
    %74 = arith.cmpi sle, %18, %73 : vector<256x1xi32>
    %cst_23 = arith.constant 0.000000e+00 : f32
    %75 = vector.broadcast %cst_23 : f32 to vector<256x4xf32>
    %76 = vector.shape_cast %74 : vector<256x1xi1> to vector<256x1xi1>
    %77 = vector.broadcast %76 : vector<256x1xi1> to vector<256x4xi1>
    %78 = arith.select %77, %72, %75 : vector<256x4xi1>, vector<256x4xf32>
    %79 = tpu.concatenate %27, %30, %39, %48, %1, %57, %66, %69, %78 in 1 : vector<256x4xf32>, vector<256x4xf32>, vector<256x4xf32>, vector<256x4xf32>, vector<256x4xf32>, vector<256x4xf32>, vector<256x4xf32>, vector<256x4xf32>, vector<256x4xf32> -> vector<256x36xf32>
    %80 = arith.truncf %79 : vector<256x36xf32> to vector<256x36xbf16>
    %c0_24 = arith.constant 0 : index
    %c0_25 = arith.constant 0 : index
    %81 = vector.load %arg2[%c0_24, %c0_25] : memref<36x4xbf16, #tpu.memory_space<vmem>>, vector<36x4xbf16>
    %cst_26 = arith.constant dense<0.000000e+00> : vector<256x4xf32>
    %82 = tpu.matmul %80, %81, %cst_26 {dimension_numbers = #tpu.dot_dimension_numbers<[1], [0], [0], [1], [0, 0, 1, 1], [], []>} : vector<256x36xbf16>, vector<36x4xbf16>, vector<256x4xf32> -> vector<256x4xf32>
    %c0_27 = arith.constant 0 : index
    %c0_28 = arith.constant 0 : index
    %83 = vector.load %arg3[%c0_27, %c0_28] : memref<2x4xf32, #tpu.memory_space<vmem>>, vector<1x4xf32>
    %84 = vector.broadcast %83 : vector<1x4xf32> to vector<256x4xf32>
    %85 = arith.mulf %82, %84 : vector<256x4xf32>
    %c1 = arith.constant 1 : index
    %c0_29 = arith.constant 0 : index
    %86 = vector.load %arg3[%c1, %c0_29] : memref<2x4xf32, #tpu.memory_space<vmem>>, vector<1x4xf32>
    %87 = vector.broadcast %86 : vector<1x4xf32> to vector<256x4xf32>
    %88 = arith.addf %85, %87 : vector<256x4xf32>
    %cst_30 = arith.constant 0.000000e+00 : f32
    %89 = vector.broadcast %cst_30 : f32 to vector<256x4xf32>
    %90 = arith.maximumf %88, %89 : vector<256x4xf32>
    %91 = tpu.iota {dimensions = array<i32: 0>} : vector<256x1xi32>
    %c16_i32_31 = arith.constant 16 : i32
    %c0_i32_32 = arith.constant 0 : i32
    %92 = arith.cmpi eq, %c16_i32_31, %c0_i32_32 : i32
    %c1_i32_33 = arith.constant 1 : i32
    %93 = arith.select %92, %c1_i32_33, %c16_i32_31 : i32
    %94 = vector.broadcast %93 : i32 to vector<256x1xi32>
    %95 = arith.remsi %91, %94 : vector<256x1xi32>
    %c0_i32_34 = arith.constant 0 : i32
    %96 = vector.broadcast %c0_i32_34 : i32 to vector<256x1xi32>
    %97 = arith.cmpi ne, %95, %96 : vector<256x1xi32>
    %c0_i32_35 = arith.constant 0 : i32
    %98 = vector.broadcast %c0_i32_35 : i32 to vector<256x1xi32>
    %99 = arith.cmpi slt, %95, %98 : vector<256x1xi32>
    %c0_i32_36 = arith.constant 0 : i32
    %100 = arith.cmpi slt, %93, %c0_i32_36 : i32
    %101 = vector.broadcast %100 : i1 to vector<256x1xi1>
    %102 = vector.broadcast %101 : vector<256x1xi1> to vector<256x1xi1>
    %103 = arith.xori %99, %102 : vector<256x1xi1>
    %104 = arith.andi %103, %97 : vector<256x1xi1>
    %105 = vector.broadcast %93 : i32 to vector<256x1xi32>
    %106 = arith.addi %95, %105 : vector<256x1xi32>
    %107 = arith.select %104, %106, %95 : vector<256x1xi1>, vector<256x1xi32>
    %cst_37 = arith.constant 0.000000e+00 : f32
    %108 = vector.broadcast %cst_37 : f32 to vector<17x4xf32>
    %109 = vector.extract_strided_slice %90 {offsets = [0, 0], sizes = [239, 4], strides = [1, 1]} : vector<256x4xf32> to vector<239x4xf32>
    %110 = tpu.concatenate %108, %109 in 0 : vector<17x4xf32>, vector<239x4xf32> -> vector<256x4xf32>
    %c1_i32_38 = arith.constant 1 : i32
    %111 = vector.broadcast %c1_i32_38 : i32 to vector<256x1xi32>
    %112 = arith.cmpi sge, %107, %111 : vector<256x1xi32>
    %cst_39 = arith.constant 0.000000e+00 : f32
    %113 = vector.broadcast %cst_39 : f32 to vector<256x4xf32>
    %114 = vector.shape_cast %112 : vector<256x1xi1> to vector<256x1xi1>
    %115 = vector.broadcast %114 : vector<256x1xi1> to vector<256x4xi1>
    %116 = arith.select %115, %110, %113 : vector<256x4xi1>, vector<256x4xf32>
    %cst_40 = arith.constant 0.000000e+00 : f32
    %117 = vector.broadcast %cst_40 : f32 to vector<16x4xf32>
    %118 = vector.extract_strided_slice %90 {offsets = [0, 0], sizes = [240, 4], strides = [1, 1]} : vector<256x4xf32> to vector<240x4xf32>
    %119 = tpu.concatenate %117, %118 in 0 : vector<16x4xf32>, vector<240x4xf32> -> vector<256x4xf32>
    %cst_41 = arith.constant 0.000000e+00 : f32
    %120 = vector.broadcast %cst_41 : f32 to vector<15x4xf32>
    %121 = vector.extract_strided_slice %90 {offsets = [0, 0], sizes = [241, 4], strides = [1, 1]} : vector<256x4xf32> to vector<241x4xf32>
    %122 = tpu.concatenate %120, %121 in 0 : vector<15x4xf32>, vector<241x4xf32> -> vector<256x4xf32>
    %c14_i32_42 = arith.constant 14 : i32
    %123 = vector.broadcast %c14_i32_42 : i32 to vector<256x1xi32>
    %124 = arith.cmpi sle, %107, %123 : vector<256x1xi32>
    %cst_43 = arith.constant 0.000000e+00 : f32
    %125 = vector.broadcast %cst_43 : f32 to vector<256x4xf32>
    %126 = vector.shape_cast %124 : vector<256x1xi1> to vector<256x1xi1>
    %127 = vector.broadcast %126 : vector<256x1xi1> to vector<256x4xi1>
    %128 = arith.select %127, %122, %125 : vector<256x4xi1>, vector<256x4xf32>
    %cst_44 = arith.constant 0.000000e+00 : f32
    %129 = vector.broadcast %cst_44 : f32 to vector<1x4xf32>
    %130 = vector.extract_strided_slice %90 {offsets = [0, 0], sizes = [255, 4], strides = [1, 1]} : vector<256x4xf32> to vector<255x4xf32>
    %131 = tpu.concatenate %129, %130 in 0 : vector<1x4xf32>, vector<255x4xf32> -> vector<256x4xf32>
    %c1_i32_45 = arith.constant 1 : i32
    %132 = vector.broadcast %c1_i32_45 : i32 to vector<256x1xi32>
    %133 = arith.cmpi sge, %107, %132 : vector<256x1xi32>
    %cst_46 = arith.constant 0.000000e+00 : f32
    %134 = vector.broadcast %cst_46 : f32 to vector<256x4xf32>
    %135 = vector.shape_cast %133 : vector<256x1xi1> to vector<256x1xi1>
    %136 = vector.broadcast %135 : vector<256x1xi1> to vector<256x4xi1>
    %137 = arith.select %136, %131, %134 : vector<256x4xi1>, vector<256x4xf32>
    %cst_47 = arith.constant 0.000000e+00 : f32
    %138 = vector.broadcast %cst_47 : f32 to vector<1x4xf32>
    %139 = vector.extract_strided_slice %90 {offsets = [1, 0], sizes = [255, 4], strides = [1, 1]} : vector<256x4xf32> to vector<255x4xf32>
    %140 = tpu.concatenate %139, %138 in 0 : vector<255x4xf32>, vector<1x4xf32> -> vector<256x4xf32>
    %c14_i32_48 = arith.constant 14 : i32
    %141 = vector.broadcast %c14_i32_48 : i32 to vector<256x1xi32>
    %142 = arith.cmpi sle, %107, %141 : vector<256x1xi32>
    %cst_49 = arith.constant 0.000000e+00 : f32
    %143 = vector.broadcast %cst_49 : f32 to vector<256x4xf32>
    %144 = vector.shape_cast %142 : vector<256x1xi1> to vector<256x1xi1>
    %145 = vector.broadcast %144 : vector<256x1xi1> to vector<256x4xi1>
    %146 = arith.select %145, %140, %143 : vector<256x4xi1>, vector<256x4xf32>
    %cst_50 = arith.constant 0.000000e+00 : f32
    %147 = vector.broadcast %cst_50 : f32 to vector<15x4xf32>
    %148 = vector.extract_strided_slice %90 {offsets = [15, 0], sizes = [241, 4], strides = [1, 1]} : vector<256x4xf32> to vector<241x4xf32>
    %149 = tpu.concatenate %148, %147 in 0 : vector<241x4xf32>, vector<15x4xf32> -> vector<256x4xf32>
    %c1_i32_51 = arith.constant 1 : i32
    %150 = vector.broadcast %c1_i32_51 : i32 to vector<256x1xi32>
    %151 = arith.cmpi sge, %107, %150 : vector<256x1xi32>
    %cst_52 = arith.constant 0.000000e+00 : f32
    %152 = vector.broadcast %cst_52 : f32 to vector<256x4xf32>
    %153 = vector.shape_cast %151 : vector<256x1xi1> to vector<256x1xi1>
    %154 = vector.broadcast %153 : vector<256x1xi1> to vector<256x4xi1>
    %155 = arith.select %154, %149, %152 : vector<256x4xi1>, vector<256x4xf32>
    %cst_53 = arith.constant 0.000000e+00 : f32
    %156 = vector.broadcast %cst_53 : f32 to vector<16x4xf32>
    %157 = vector.extract_strided_slice %90 {offsets = [16, 0], sizes = [240, 4], strides = [1, 1]} : vector<256x4xf32> to vector<240x4xf32>
    %158 = tpu.concatenate %157, %156 in 0 : vector<240x4xf32>, vector<16x4xf32> -> vector<256x4xf32>
    %cst_54 = arith.constant 0.000000e+00 : f32
    %159 = vector.broadcast %cst_54 : f32 to vector<17x4xf32>
    %160 = vector.extract_strided_slice %90 {offsets = [17, 0], sizes = [239, 4], strides = [1, 1]} : vector<256x4xf32> to vector<239x4xf32>
    %161 = tpu.concatenate %160, %159 in 0 : vector<239x4xf32>, vector<17x4xf32> -> vector<256x4xf32>
    %c14_i32_55 = arith.constant 14 : i32
    %162 = vector.broadcast %c14_i32_55 : i32 to vector<256x1xi32>
    %163 = arith.cmpi sle, %107, %162 : vector<256x1xi32>
    %cst_56 = arith.constant 0.000000e+00 : f32
    %164 = vector.broadcast %cst_56 : f32 to vector<256x4xf32>
    %165 = vector.shape_cast %163 : vector<256x1xi1> to vector<256x1xi1>
    %166 = vector.broadcast %165 : vector<256x1xi1> to vector<256x4xi1>
    %167 = arith.select %166, %161, %164 : vector<256x4xi1>, vector<256x4xf32>
    %168 = tpu.concatenate %116, %119, %128, %137, %90, %146, %155, %158, %167 in 1 : vector<256x4xf32>, vector<256x4xf32>, vector<256x4xf32>, vector<256x4xf32>, vector<256x4xf32>, vector<256x4xf32>, vector<256x4xf32>, vector<256x4xf32>, vector<256x4xf32> -> vector<256x36xf32>
    %169 = arith.truncf %168 : vector<256x36xf32> to vector<256x36xbf16>
    %c0_57 = arith.constant 0 : index
    %c0_58 = arith.constant 0 : index
    %170 = vector.load %arg4[%c0_57, %c0_58] : memref<36x4xbf16, #tpu.memory_space<vmem>>, vector<36x4xbf16>
    %cst_59 = arith.constant dense<0.000000e+00> : vector<256x4xf32>
    %171 = tpu.matmul %169, %170, %cst_59 {dimension_numbers = #tpu.dot_dimension_numbers<[1], [0], [0], [1], [0, 0, 1, 1], [], []>} : vector<256x36xbf16>, vector<36x4xbf16>, vector<256x4xf32> -> vector<256x4xf32>
    %c0_60 = arith.constant 0 : index
    %c0_61 = arith.constant 0 : index
    %172 = vector.load %arg5[%c0_60, %c0_61] : memref<2x4xf32, #tpu.memory_space<vmem>>, vector<1x4xf32>
    %173 = vector.broadcast %172 : vector<1x4xf32> to vector<256x4xf32>
    %174 = arith.mulf %171, %173 : vector<256x4xf32>
    %c1_62 = arith.constant 1 : index
    %c0_63 = arith.constant 0 : index
    %175 = vector.load %arg5[%c1_62, %c0_63] : memref<2x4xf32, #tpu.memory_space<vmem>>, vector<1x4xf32>
    %176 = vector.broadcast %175 : vector<1x4xf32> to vector<256x4xf32>
    %177 = arith.addf %174, %176 : vector<256x4xf32>
    %178 = arith.addf %177, %1 : vector<256x4xf32>
    %cst_64 = arith.constant 0.000000e+00 : f32
    %179 = vector.broadcast %cst_64 : f32 to vector<256x4xf32>
    %180 = arith.maximumf %178, %179 : vector<256x4xf32>
    %c0_65 = arith.constant 0 : index
    %c0_66 = arith.constant 0 : index
    %c0_67 = arith.constant 0 : index
    %181 = vector.load %arg6[%c0_65, %c0_66, %c0_67] : memref<1x256x4xf32, #tpu.memory_space<vmem>>, vector<1x256x4xf32>
    %182 = vector.shape_cast %181 : vector<1x256x4xf32> to vector<256x4xf32>
    %183 = vector.shape_cast %180 : vector<256x4xf32> to vector<1x256x4xf32>
    tpu.vector_store %arg6[%c0_65, %c0_66, %c0_67], %183 {strides = array<i32>} : memref<1x256x4xf32, #tpu.memory_space<vmem>>, vector<1x256x4xf32>,
    return
  }
  func.func @transform_0(%arg0: i32) -> (i32, i32, i32, i32) {
    %c0_i32 = arith.constant 0 : i32
    %c0_i32_0 = arith.constant 0 : i32
    %c0_i32_1 = arith.constant 0 : i32
    %c0_i32_2 = arith.constant 0 : i32
    return %arg0, %c0_i32, %c0_i32_0, %c0_i32_1 : i32, i32, i32, i32
  }
  func.func @transform_1(%arg0: i32) -> (i32, i32) {
    %c0_i32 = arith.constant 0 : i32
    %c0_i32_0 = arith.constant 0 : i32
    %c0_i32_1 = arith.constant 0 : i32
    return %c0_i32, %c0_i32_0 : i32, i32
  }
  func.func @transform_2(%arg0: i32) -> (i32, i32) {
    %c0_i32 = arith.constant 0 : i32
    %c0_i32_0 = arith.constant 0 : i32
    %c0_i32_1 = arith.constant 0 : i32
    return %c0_i32, %c0_i32_0 : i32, i32
  }
  func.func @transform_3(%arg0: i32) -> (i32, i32) {
    %c0_i32 = arith.constant 0 : i32
    %c0_i32_0 = arith.constant 0 : i32
    %c0_i32_1 = arith.constant 0 : i32
    return %c0_i32, %c0_i32_0 : i32, i32
  }
  func.func @transform_4(%arg0: i32) -> (i32, i32) {
    %c0_i32 = arith.constant 0 : i32
    %c0_i32_0 = arith.constant 0 : i32
    %c0_i32_1 = arith.constant 0 : i32
    return %c0_i32, %c0_i32_0 : i32, i32
  }
  func.func @transform_5(%arg0: i32) -> (i32, i32, i32) {
    %c0_i32 = arith.constant 0 : i32
    %c0_i32_0 = arith.constant 0 : i32
    %c0_i32_1 = arith.constant 0 : i32
    return %arg0, %c0_i32, %c0_i32_0 : i32, i32, i32
  }
}

</mosaic_0001>

<bundles_post_ra>
// kernel: tpu_custom_call.1
= control target key start
LH: loop header
LB: loop body
LE: loop exit
PB: predicated region body
PF: predicated region fallthrough
CT: control target
= control target key end

     0   :  { %s6403_s18 = smov 0   ;;  %s10423_s0 = inlined_call_operand.vmem [shape: f32[2,1,256,4], index: 0, kind: input, shape index: {}]   ;;  %s10424_s1 = inlined_call_operand.vmem [shape: bf16[36,4], index: 1, kind: input, shape index: {}]   ;;  %s10425_s2 = inlined_call_operand.vmem [shape: f32[2,4], index: 2, kind: input, shape index: {}]   ;;  %s10426_s3 = inlined_call_operand.vmem [shape: bf16[36,4], index: 3, kind: input, shape index: {}]   ;;  %s10427_s4 = inlined_call_operand.vmem [shape: f32[2,4], index: 4, kind: input, shape index: {}]   ;;  %s10428_s5 = inlined_call_operand.vmem [shape: f32[2,256,4], index: 5, kind: output, shape index: {}]  }
   0x1 LB: > { %s4858_s19 = sadd.s32 4294967295, %s6362_s18   ;;  %p4862_p0 = scmp.ge.s32.totalorder %s6362_s18, 1  ;;  %s6362_s18 = sphi %s6403_s18, %s15_s18  }
   0x2   : > { %p187_p1 = scmp.lt.s32.totalorder %s6362_s18, 3 }
   0x4   : > { %p188_p2 = pnand %p4862_p0, %p187_p1 }
   0x6   : > { %191 = sbr.rel (%p188_p2) target bundleno = 1325 (0x52d), region = 40 }
   0xb   : > { %p215_p3 = scmp.lt.s32.totalorder %s4858_s19, 1  ;;  %v258_v0 = vlaneseq  ;;  %v10429_v6 = vmov 0.0   ;;  %s6365_s24 = smov 4   ;;  %vm10500_vm0 = vcmask 1046528   ;;  %v10819_v35 = vmov 0 }
   0xc   : > { %v10824_v53 = vmov 0  ;;  %v10828_v55 = vmov 0  ;;  %s6366_s25 = smov 8   ;;  %s6367_s26 = smov 12  }
   0xd   : > { %s11936_s19 = smov (!%p215_p3, %s4858_s19), 1  ;;  %v6421_v1 = vshrl.u32 %v258_v0, 7  ;;  %s6368_s27 = smov 16  }
   0xe   : > { %s4911_s20 = sshll.u32 %s11936_s19, 8  ;;  %s6369_s28 = smov 20  }
   0xf   : > { %s6419_s23 = scalar_lea.vmem %s10423_s0, %s4911_s20  ;;  %v260_v15 = vadd.s32 8, %v6421_v1  ;;  %v262_v19 = vadd.s32 24, %v6421_v1  ;;  %v264_v20 = vadd.s32 40, %v6421_v1  ;;  %v266_v50 = vadd.s32 56, %v6421_v1  ;;  %s6370_s29 = smov 24  }
  0x10   : > { %v6424_v2 = vld [vmem:[%s6419_s23 + $0x18] sm:$0xff]  ;;  %v6427_v3 = vld [vmem:[%s6419_s23 + $0x20] sm:$0xff]  ;;  %v6437_v8 = vld [vmem:[%s6419_s23 + $0x28] sm:$0xff]  ;;  %v268_v51 = vadd.s32 72, %v6421_v1  ;;  %v270_v57 = vadd.s32 88, %v6421_v1  ;;  %v272_v58 = vadd.s32 104, %v6421_v1  ;;  %s9977_s21 = scalar_lea.vmem %s10428_s5, %s4911_s20 }
  0x11   : > { %v6430_v4 = vld [vmem:[%s6419_s23] sm:$0xff]  ;;  %v5056_v5 = vpack.i.bf16 %v6427_v3, %v6424_v2  ;;  %v6440_v9 = vld [vmem:[%s6419_s23 + $0x30] sm:$0xff]  ;;  %v6443_v10 = vld [vmem:[%s6419_s23 + $0x8] sm:$0xff]  ;;  %v302_v24 = vand.u32 15, %v260_v15  ;;  %v316_v30 = vand.u32 15, %v262_v19  ;;  %v330_v31 = vand.u32 15, %v264_v20 }
  0x12   : > { %v5046_v7 = vpack.i.bf16 %v6430_v4, %v10429_v6  ;;  %v6446_v11 = vld [vmem:[%s6419_s23 + $0x10] sm:$0xff]  ;;  %v5061_v12 = vpack.i.bf16 %v6440_v9, %v6437_v8  ;;  %v6455_v14 = vld [vmem:[%s6419_s23 + $0x48] sm:$0xff]  ;;  %v6462_v17 = vld [vmem:[%s6419_s23 + $0x38] sm:$0xff]  ;;  %v924_v28 = vrot.slane %v6430_v4, 1  ;;  %v929_v36 = vrot.slane %v6424_v2, 1  ;;  %s6371_s11 = smov 28  }
  0x13   : > { %5057 = vrot.lane.b32.xlu1 %v5056_v5, %s6365_s24  ;;  %v5051_v13 = vpack.i.bf16 %v6446_v11, %v6443_v10  ;;  %v6459_v16 = vld [vmem:[%s6419_s23 + $0x50] sm:$0xff]  ;;  %v6465_v18 = vld [vmem:[%s6419_s23 + $0x40] sm:$0xff]  ;;  %v6476_v23 = vld [vmem:[%s6419_s23 + $0x68] sm:$0xff]  ;;  %vm6500_vm1 = vcmp.le.s32.totalorder %v302_v24, 14  ;;  %v925_v40 = vrot.slane %v6443_v10, 1  ;;  %v927_v41 = vrot.slane %v6446_v11, 1 }
  0x14   : > { %5047 = vrot.lane.b32.xlu0 %v5046_v7, %s6365_s24  ;;  %v5071_v21 = vpack.i.bf16 %v6459_v16, %v6455_v14  ;;  %v5066_v22 = vpack.i.bf16 %v6465_v18, %v6462_v17  ;;  %v6479_v25 = vld [vmem:[%s6419_s23 + $0x70] sm:$0xff]  ;;  %v6482_v26 = vld [vmem:[%s6419_s23 + $0x58] sm:$0xff]  ;;  %v6485_v27 = vld [vmem:[%s6419_s23 + $0x60] sm:$0xff]  ;;  %v10820_v35 = vsel %vm6500_vm1, 4294967295, %v10819_v35  ;;  %v1016_v39 = vsel %vm10500_vm0, 0.0, %v924_v28  ;;  %s6372_s12 = smov 32  }
  0x15   : > { %v6489_v29 = vld [vmem:[%s6419_s23 + $0x88] sm:$0xff]  ;;  %v5081_v32 = vpack.i.bf16 %v6479_v25, %v6476_v23  ;;  %v5076_v33 = vpack.i.bf16 %v6485_v27, %v6482_v26  ;;  %v6498_v34 = vld [vmem:[%s6419_s23 + $0x90] sm:$0xff]  ;;  %10821 = vst [vmem:[#allocation2_spill] sm:$0xff] %v10820_v35  ;;  %v6506_v37 = vld [vmem:[%s6419_s23 + $0x78] sm:$0xff]  ;;  %v931_v42 = vrot.slane %v6427_v3, 1  ;;  %v1113_v49 = vsel %vm6500_vm1, %v1016_v39, 0.0 }
  0x16   : > { %v6509_v38 = vld [vmem:[%s6419_s23 + $0x80] sm:$0xff]  ;;  %v5091_v43 = vpack.i.bf16 %v6498_v34, %v6489_v29  ;;  %v6522_v45 = vld [vmem:[%s6419_s23 + $0xa8] sm:$0xff]  ;;  %v6525_v46 = vld [vmem:[%s6419_s23 + $0xb0] sm:$0xff]  ;;  %v6538_v52 = vsel %vm10500_vm0, %v925_v40, %v927_v41  ;;  %vm6540_vm2 = vcmp.le.s32.totalorder %v316_v30, 14  ;;  %vm6547_vm3 = vcmp.le.s32.totalorder %v330_v31, 14 }
  0x17   : > { %5062 = vrot.lane.b32.xlu1 %v5061_v12, %s6365_s24  ;;  %v5086_v44 = vpack.i.bf16 %v6509_v38, %v6506_v37  ;;  %v6528_v47 = vld [vmem:[%s6419_s23 + $0x98] sm:$0xff]  ;;  %v6531_v48 = vld [vmem:[%s6419_s23 + $0xa0] sm:$0xff]  ;;  %10823 = vst [vmem:[#allocation4_spill] sm:$0xff] %v6538_v52  ;;  %v10825_v53 = vsel %vm6540_vm2, 4294967295, %v10824_v53  ;;  %v6545_v54 = vsel %vm10500_vm0, %v929_v36, %v931_v42  ;;  %v10829_v55 = vsel %vm6547_vm3, 4294967295, %v10828_v55  ;;  %v6563_v61 = vld [vmem:[%s6419_s23 + $0xc8] sm:$0xff] }
  0x18   : > { %5052 = vrot.lane.b32.xlu0 %v5051_v13, %s6365_s24  ;;  %10822 = vst [vmem:[#allocation3_spill] sm:$0xff] %v6528_v47  ;;  %10826 = vst [vmem:[#allocation5_spill] sm:$0xff] %v10825_v53  ;;  %v6552_v56 = vsel %vm10500_vm0, %v924_v28, %v925_v40  ;;  %v5101_v59 = vpack.i.bf16 %v6525_v46, %v6522_v45  ;;  %v5096_v60 = vpack.i.bf16 %v6531_v48, %v6528_v47  ;;  %v6570_v0 = vld [vmem:[%s6419_s23 + $0xd0] sm:$0xff]  ;;  %v6573_v5 = vld [vmem:[%s6419_s23 + $0xb8] sm:$0xff] }
  0x19   : > { %10827 = vst [vmem:[#allocation6_spill] sm:$0xff] %v6545_v54  ;;  %10830 = vst [vmem:[#allocation7_spill] sm:$0xff] %v10829_v55  ;;  %v6566_v62 = vpack.i.bf16 %v1113_v49, %v10429_v6  ;;  %v274_v63 = vadd.s32 120, %v6421_v1  ;;  %v6576_v7 = vld [vmem:[%s6419_s23 + $0xc0] sm:$0xff]  ;;  %v1115_v12 = vsel %vm6540_vm2, %v6538_v52, 0.0  ;;  %v6582_v13 = vsel %vm10500_vm0, %v927_v41, %v929_v36  ;;  %v6591_v28 = vld [vmem:[%s6419_s23 + $0xd8] sm:$0xff] }
  0x1a   : > { %10831 = vst [vmem:[#allocation8_spill] sm:$0xff] %v6552_v56  ;;  %10832 = vst [vmem:[#allocation9_spill] sm:$0xff] %v6582_v13  ;;  %v1117_v15 = vsel %vm6547_vm3, %v6545_v54, 0.0  ;;  %v344_v19 = vand.u32 15, %v266_v50  ;;  %v933_v20 = vrot.slane %v6437_v8, 1  ;;  %v937_v24 = vrot.slane %v6462_v17, 1 }
  0x1b   : > { %5072 = vrot.lane.b32.xlu1 %v5071_v21, %s6365_s24  ;;  %v935_v21 = vrot.slane %v6440_v9, 1  ;;  %v6594_v30 = vld [vmem:[%s6419_s23 + $0xe0] sm:$0xff]  ;;  %v939_v31 = vrot.slane %v6465_v18, 1  ;;  %v943_v36 = vrot.slane %v6459_v16, 1  ;;  %v5111_v39 = vpack.i.bf16 %v6570_v0, %v6563_v61 }
  0x1c   : > { %5067 = vrot.lane.b32.xlu0 %v5066_v22, %s6365_s24  ;;  %v358_v22 = vand.u32 15, %v268_v51  ;;  %v5106_v40 = vpack.i.bf16 %v6576_v7, %v6573_v5  ;;  %v5126_v41 = vpack.i.bf16 %v1115_v12, %v6552_v56  ;;  %v945_v49 = vrot.slane %v6482_v26, 1  ;;  %v6647_v56 = vld [vmem:[%s6419_s23 + $0xe8] sm:$0xff] }
  0x1d   : > { %v947_v50 = vrot.slane %v6485_v27, 1  ;;  %v276_v51 = vadd.s32 136, %v6421_v1  ;;  %vm6620_vm4 = vcmp.le.s32.totalorder %v344_v19, 14  ;;  %v6625_v12 = vsel %vm10500_vm0, %v937_v24, %v939_v31 }
  0x1e   : > { %10838 = vst [vmem:[#allocation13_spill] sm:$0xff] %v6625_v12  ;;  %vm6627_vm5 = vcmp.le.s32.totalorder %v358_v22, 14  ;;  %v10846_v19 = vmov 0  ;;  %v949_v22 = vrot.slane %v6476_v23, 1  ;;  %v951_v55 = vrot.slane %v6479_v25, 1 }
  0x1f   : > { %5082 = vrot.lane.b32.xlu1 %v5081_v32, %s6365_s24  ;;  %v372_v32 = vand.u32 15, %v270_v57  ;;  %v5116_v57 = vpack.i.bf16 %v6594_v30, %v6591_v28  ;;  %v953_v35 = vrot.slane %v6506_v37, 1  ;;  %v280_v52 = vadd.s32 168, %v6421_v1 }
  0x20   : > { %5077 = vrot.lane.b32.xlu0 %v5076_v33, %s6365_s24  ;;  %v941_v33 = vrot.slane %v6455_v14, 1  ;;  %v1121_v53 = vsel %vm6627_vm5, %v6625_v12, 0.0  ;;  %v965_v12 = vrot.slane %v6522_v45, 1 }
  0x21   : > { %vm6634_vm6 = vcmp.le.s32.totalorder %v372_v32, 14  ;;  %v6650_v32 = vsel %vm10500_vm0, %v945_v49, %v947_v50 }
  0x22   : > { %v6632_v6 = vsel %vm10500_vm0, %v941_v33, %v943_v36  ;;  %10849 = vst [vmem:[#allocation18_spill] sm:$0xff] %v6650_v32 }
  0x23   : > { %5092 = vrot.lane.b32.xlu1 %v5091_v43, %s6365_s24  ;;  %v386_v43 = vand.u32 15, %v272_v58  ;;  %v10835_v58 = vmov 0  ;;  %10842 = vst [vmem:[#allocation15_spill] sm:$0xff] %v6632_v6  ;;  %v1123_v54 = vsel %vm6634_vm6, %v6632_v6, 0.0  ;;  %v10856_v6 = vmov 0 }
  0x24   : > { %5087 = vrot.lane.b32.xlu0 %v5086_v44, %s6365_s24  ;;  %v6607_v44 = vpack.i.bf16 %v1117_v15, %v6582_v13  ;;  %v10836_v58 = vsel %vm6620_vm4, 4294967295, %v10835_v58  ;;  %v10839_v15 = vmov 0  ;;  %v414_v13 = vand.u32 15, %v276_v51 }
  0x25   : > { %10837 = vst [vmem:[#allocation12_spill] sm:$0xff] %v10836_v58  ;;  %v10840_v15 = vsel %vm6627_vm5, 4294967295, %v10839_v15  ;;  %vm6640_vm7 = vcmp.le.s32.totalorder %v386_v43, 14  ;;  %v278_v43 = vadd.s32 152, %v6421_v1  ;;  %v6666_v51 = vsel %vm10500_vm0, %v939_v31, %v941_v33 }
  0x26   : > { %10841 = vst [vmem:[#allocation14_spill] sm:$0xff] %v10840_v15  ;;  %v10847_v19 = vsel %vm6640_vm7, 4294967295, %v10846_v19  ;;  %10850 = vst [vmem:[#allocation19_spill] sm:$0xff] %v6666_v51  ;;  %v6682_v31 = vsel %vm10500_vm0, %v949_v22, %v951_v55  ;;  %v10852_v33 = vmov 0  ;;  %vm6691_vm9 = vcmp.le.s32.totalorder %v414_v13, 14 }
  0x27   : > { %5102 = vrot.lane.b32.xlu1 %v5101_v59, %s6365_s24  ;;  %v6615_v59 = vsel %vm10500_vm0, %v931_v42, %v933_v20  ;;  %v10843_v42 = vmov 0  ;;  %10848 = vst [vmem:[#allocation17_spill] sm:$0xff] %v10847_v19  ;;  %10851 = vst [vmem:[#allocation20_spill] sm:$0xff] %v6682_v31  ;;  %v10857_v6 = vsel %vm6691_vm9, 4294967295, %v10856_v6  ;;  %v442_v19 = vand.u32 15, %v280_v52 }
  0x28   : > { %5097 = vrot.lane.b32.xlu0 %v5096_v60, %s6365_s24  ;;  %10833 = vst [vmem:[#allocation10_spill] sm:$0xff] %v6615_v59  ;;  %v6618_v60 = vsel %vm10500_vm0, %v933_v20, %v935_v21  ;;  %v10844_v42 = vsel %vm6634_vm6, 4294967295, %v10843_v42  ;;  %v400_v20 = vand.u32 15, %v274_v63  ;;  %v6658_v63 = vsel %vm10500_vm0, %v935_v21, %v937_v24  ;;  %10858 = vst [vmem:[#allocation23_spill] sm:$0xff] %v10857_v6 }
  0x29   : > { %10834 = vst [vmem:[#allocation11_spill] sm:$0xff] %v6618_v60  ;;  %10845 = vst [vmem:[#allocation16_spill] sm:$0xff] %v10844_v42  ;;  %v6676_v21 = vsel %vm10500_vm0, %v943_v36, %v945_v49  ;;  %v1125_v24 = vsel %vm6640_vm7, %v6650_v32, 0.0  ;;  %v957_v36 = vrot.slane %v6489_v29, 1  ;;  %v959_v49 = vrot.slane %v6498_v34, 1 }
  0x2a   : > { %vm6684_vm8 = vcmp.le.s32.totalorder %v400_v20, 14  ;;  %v961_v42 = vrot.slane %v6528_v47, 1  ;;  %v963_v20 = vrot.slane %v6531_v48, 1  ;;  %v967_v13 = vrot.slane %v6525_v46, 1 }
  0x2b   : > { %5112 = vrot.lane.b32.xlu1 %v5111_v39, %s6365_s24  ;;  %v955_v39 = vrot.slane %v6509_v38, 1  ;;  %v10853_v33 = vsel %vm6684_vm8, 4294967295, %v10852_v33  ;;  %v5146_v52 = vpack.i.bf16 %v1123_v54, %v6666_v51  ;;  %v6708_v47 = vsel %vm10500_vm0, %v947_v50, %v949_v22 }
  0x2c   : > { %5107 = vrot.lane.b32.xlu0 %v5106_v40, %s6365_s24  ;;  %v1119_v40 = vsel %vm6620_vm4, %v6618_v60, 0.0  ;;  %v282_v60 = vadd.s32 184, %v6421_v1  ;;  %10854 = vst [vmem:[#allocation21_spill] sm:$0xff] %v10853_v33  ;;  %10859 = vst [vmem:[#allocation24_spill] sm:$0xff] %v6708_v47  ;;  %v10862_v54 = vmov 0  ;;  %vm6730_vm11 = vcmp.le.s32.totalorder %v442_v19, 14 }
  0x2d   : > { %v6689_v15 = vsel %vm10500_vm0, %v953_v35, %v955_v39  ;;  %v5136_v32 = vpack.i.bf16 %v1119_v40, %v6615_v59  ;;  %v5151_v40 = vpack.i.bf16 %v1125_v24, %v6676_v21  ;;  %v6715_v59 = vsel %vm10500_vm0, %v951_v55, %v953_v35 }
  0x2e   : > { %10855 = vst [vmem:[#allocation22_spill] sm:$0xff] %v6689_v15  ;;  %v456_v58 = vand.u32 15, %v282_v60  ;;  %v1127_v60 = vsel %vm6684_vm8, %v6682_v31, 0.0  ;;  %10860 = vst [vmem:[#allocation25_spill] sm:$0xff] %v6715_v59  ;;  %v10866_v50 = vmov 0  ;;  %v6735_v35 = vsel %vm10500_vm0, %v965_v12, %v967_v13 }
  0x2f   : > { %1344 = vrot.lane.b32.xlu1 %v6647_v56, %s6365_s24  ;;  %v10867_v50 = vsel %vm6730_vm11, 4294967295, %v10866_v50  ;;  %10869 = vst [vmem:[#allocation30_spill] sm:$0xff] %v6735_v35  ;;  %v10870_v55 = vmov 0  ;;  %v284_v22 = vadd.s32 200, %v6421_v1  ;;  %v286_v24 = vadd.s32 216, %v6421_v1 }
  0x30   : > { %5117 = vrot.lane.b32.xlu0 %v5116_v57, %s6365_s24  ;;  %v428_v57 = vand.u32 15, %v278_v43  ;;  %v5141_v43 = vpack.i.bf16 %v1121_v53, %v6658_v63  ;;  %v6721_v53 = vsel %vm10500_vm0, %v957_v36, %v959_v49  ;;  %10868 = vst [vmem:[#allocation29_spill] sm:$0xff] %v10867_v50  ;;  %vm6737_vm12 = vcmp.le.s32.totalorder %v456_v58, 14 }
  0x31   : > { %10861 = vst [vmem:[#allocation26_spill] sm:$0xff] %v6721_v53  ;;  %v10871_v55 = vsel %vm6737_vm12, 4294967295, %v10870_v55  ;;  %v5156_v19 = vpack.i.bf16 %v1127_v60, %v6708_v47  ;;  %v6749_v6 = vsel %vm10500_vm0, %v955_v39, %v957_v36  ;;  %v288_v58 = vadd.s32 232, %v6421_v1 }
  0x32   : > { %vm6723_vm10 = vcmp.le.s32.totalorder %v428_v57, 14  ;;  %10872 = vst [vmem:[#allocation31_spill] sm:$0xff] %v10871_v55  ;;  %10873 = vst [vmem:[#allocation32_spill] sm:$0xff] %v6749_v6  ;;  %v6756_v33 = vsel %vm10500_vm0, %v959_v49, %v961_v42  ;;  %v1135_v39 = vsel %vm6737_vm12, %v6735_v35, 0.0  ;;  %v969_v36 = vrot.slane %v6573_v5, 1 }
  0x33   : > { %5127 = vrot.lane.b32.xlu1 %v5126_v41, %s6366_s25  ;;  %v10863_v54 = vsel %vm6723_vm10, 4294967295, %v10862_v54  ;;  %v6728_v41 = vsel %vm10500_vm0, %v961_v42, %v963_v20  ;;  %v1131_v31 = vsel %vm6723_vm10, %v6721_v53, 0.0  ;;  %10874 = vst [vmem:[#allocation33_spill] sm:$0xff] %v6756_v33  ;;  %v6771_v53 = vld [vmem:[%s6419_s23 + $0xf0] sm:$0xff]  ;;  %v470_v42 = vand.u32 15, %v284_v22 }
  0x34   : > { %5122 = vrot.lane.b32.xlu0 %v6566_v62, %s6366_s25  ;;  %v1129_v62 = vsel %vm6691_vm9, %v6689_v15, 0.0  ;;  %10864 = vst [vmem:[#allocation27_spill] sm:$0xff] %v10863_v54  ;;  %10865 = vst [vmem:[#allocation28_spill] sm:$0xff] %v6728_v41  ;;  %v1133_v60 = vsel %vm6730_vm11, %v6728_v41, 0.0  ;;  %v973_v49 = vrot.slane %v6563_v61, 1  ;;  %v498_v50 = vand.u32 15, %v288_v58 }
  0x35   : > { %v5161_v57 = vpack.i.bf16 %v1129_v62, %v6715_v59  ;;  %v971_v62 = vrot.slane %v6576_v7, 1  ;;  %v977_v35 = vrot.slane %v6591_v28, 1  ;;  %v979_v55 = vrot.slane %v6594_v30, 1 }
  0x36   : > { %v261_v54 = vadd.s32 16, %v6421_v1  ;;  %v5166_v41 = vpack.i.bf16 %v1131_v31, %v6749_v6  ;;  %v981_v22 = vrot.slane %v6647_v56, 1  ;;  %v5171_v59 = vpack.i.bf16 %v1133_v60, %v6756_v33 }
  0x37   : > { %5137 = vrot.lane.b32.xlu1 %v5136_v32, %s6366_s25  ;;  %v290_v32 = vadd.s32 248, %v6421_v1  ;;  %v6789_v58 = vsel %vm10500_vm0, %v969_v36, %v971_v62  ;;  %vm6791_vm14 = vcmp.le.s32.totalorder %v470_v42, 14  ;;  %v10878_v15 = vmov 0 }
  0x38   : > { %5132 = vrot.lane.b32.xlu0 %v6607_v44, %s6366_s25  ;;  %v6759_v44 = vsel %vm10500_vm0, %v963_v20, %v965_v12  ;;  %v484_v12 = vand.u32 15, %v286_v24  ;;  %v975_v20 = vrot.slane %v6570_v0, 1  ;;  %v10489_v24 = vrot.slane %v6771_v53, 1  ;;  %10877 = vst [vmem:[#allocation36_spill] sm:$0xff] %v6789_v58 }
  0x39   : > { %10875 = vst [vmem:[#allocation34_spill] sm:$0xff] %v6759_v44  ;;  %v512_v47 = vand.u32 15, %v290_v32  ;;  %v10879_v15 = vsel %vm6791_vm14, 4294967295, %v10878_v15  ;;  %v10882_v32 = vmov 0  ;;  %v263_v60 = vadd.s32 32, %v6421_v1 }
  0x3a   : > { %10880 = vst [vmem:[#allocation37_spill] sm:$0xff] %v10879_v15  ;;  %v6796_v31 = vsel %vm10500_vm0, %v973_v49, %v975_v20  ;;  %vm6798_vm15 = vcmp.le.s32.totalorder %v484_v12, 14  ;;  %vm6811_vm13 = vcmp.le.s32.totalorder %v498_v50, 14  ;;  %v309_v42 = vand.u32 15, %v261_v54 }
  0x3b   : > { %5147 = vrot.lane.b32.xlu1 %v5146_v52, %s6366_s25  ;;  %v6786_v52 = vsel %vm10500_vm0, %v967_v13, %v969_v36  ;;  %10881 = vst [vmem:[#allocation38_spill] sm:$0xff] %v6796_v31  ;;  %v10883_v32 = vsel %vm6798_vm15, 4294967295, %v10882_v32  ;;  %v6806_v13 = vsel %vm10500_vm0, %v971_v62, %v973_v49  ;;  %v10887_v36 = vmov 0 }
  0x3c   : > { %5142 = vrot.lane.b32.xlu0 %v5141_v43, %s6366_s25  ;;  %v5176_v43 = vpack.i.bf16 %v1135_v39, %v6759_v44  ;;  %10876 = vst [vmem:[#allocation35_spill] sm:$0xff] %v6786_v52  ;;  %10884 = vst [vmem:[#allocation39_spill] sm:$0xff] %v10883_v32  ;;  %v6809_v39 = vsel %vm10500_vm0, %v977_v35, %v979_v55  ;;  %v10888_v36 = vsel %vm6811_vm13, 4294967295, %v10887_v36  ;;  %vm6820_vm11 = vcmp.le.s32.totalorder %v512_v47, 14 }
  0x3d   : > { %10885 = vst [vmem:[#allocation40_spill] sm:$0xff] %v6806_v13  ;;  %10886 = vst [vmem:[#allocation41_spill] sm:$0xff] %v6809_v39  ;;  %v6818_v12 = vsel %vm10500_vm0, %v981_v22, %v10489_v24  ;;  %v709_v62 = vrot.slane %v6446_v11, 7  ;;  %v1137_v50 = vsel %vm6791_vm14, %v6789_v58, 0.0  ;;  %v1139_v54 = vsel %vm6798_vm15, %v6796_v31, 0.0 }
  0x3e   : > { %10889 = vst [vmem:[#allocation42_spill] sm:$0xff] %v10888_v36  ;;  %10890 = vst [vmem:[#allocation43_spill] sm:$0xff] %v6818_v12  ;;  %v6833_v49 = vsel %vm10500_vm0, %v975_v20, %v977_v35  ;;  %v265_v47 = vadd.s32 48, %v6421_v1  ;;  %v1141_v24 = vsel %vm6811_vm13, %v6809_v39, 0.0  ;;  %v6840_v44 = vsel %vm10500_vm0, %v979_v55, %v981_v22 }
  0x3f   : > { %5157 = vrot.lane.b32.xlu1 %v5156_v19, %s6366_s25  ;;  %v707_v19 = vrot.slane %v6443_v10, 7  ;;  %10894 = vst [vmem:[#allocation45_spill] sm:$0xff] %v6833_v49  ;;  %10895 = vst [vmem:[#allocation46_spill] sm:$0xff] %v6840_v44  ;;  %v323_v6 = vand.u32 15, %v263_v60  ;;  %v711_v15 = vrot.slane %v6424_v2, 7  ;;  %v1143_v35 = vsel %vm6820_vm11, %v6818_v12, 0.0 }
  0x40   : > { %5152 = vrot.lane.b32.xlu0 %v5151_v40, %s6366_s25  ;;  %v10891_v40 = vmov 0  ;;  %vm6848_vm14 = vcmp.ge.s32.totalorder %v309_v42, 1  ;;  %v10896_v20 = vmov 0  ;;  %v295_v31 = vand.u32 15, %v6421_v1 }
  0x41   : > { %v10892_v40 = vsel %vm6820_vm11, 4294967295, %v10891_v40  ;;  %v10897_v20 = vsel %vm6848_vm14, 4294967295, %v10896_v20  ;;  %v706_v55 = vrot.slane %v6430_v4, 7  ;;  %vm10899_vm0 = vcmask 1040384  }
  0x42   : > { %10893 = vst [vmem:[#allocation44_spill] sm:$0xff] %v10892_v40  ;;  %10898 = vst [vmem:[#allocation47_spill] sm:$0xff] %v10897_v20  ;;  %v6855_v22 = vsel %vm10899_vm0, %v707_v19, %v709_v62  ;;  %v267_v60 = vadd.s32 64, %v6421_v1  ;;  %v5181_v40 = vpack.i.bf16 %v1137_v50, %v6786_v52  ;;  %v5186_v42 = vpack.i.bf16 %v1139_v54, %v6806_v13 }
  0x43   : > { %5167 = vrot.lane.b32.xlu1 %v5166_v41, %s6366_s25  ;;  %10900 = vst [vmem:[#allocation48_spill] sm:$0xff] %v6855_v22  ;;  %v717_v41 = vrot.slane %v6440_v9, 7  ;;  %v337_v12 = vand.u32 15, %v265_v47  ;;  %v269_v32 = vadd.s32 80, %v6421_v1  ;;  %v5191_v39 = vpack.i.bf16 %v1141_v24, %v6833_v49  ;;  %vm10908_vm12 = vmmov %vm10899_vm0 }
  0x44   : > { %5162 = vrot.lane.b32.xlu0 %v5161_v57, %s6366_s25  ;;  %v715_v57 = vrot.slane %v6437_v8, 7  ;;  %v5196_v58 = vpack.i.bf16 %v1143_v35, %v6840_v44  ;;  %vm6865_vm11 = vcmp.ge.s32.totalorder %v323_v6, 1  ;;  %v10901_v33 = vmov 0  ;;  %vm10910_vm9 = vmmov %vm10899_vm0 }
  0x45   : > { %v10902_v33 = vsel %vm6865_vm11, 4294967295, %v10901_v33  ;;  %v713_v51 = vrot.slane %v6427_v3, 7  ;;  %v6873_v50 = vsel %vm10899_vm0, %v709_v62, %v711_v15  ;;  %v1153_v54 = vsel %vm6848_vm14, %v6855_v22, 0.0  ;;  %vm10915_vm14 = vmmov %vm10910_vm9 }
  0x46   : > { %10903 = vst [vmem:[#allocation49_spill] sm:$0xff] %v10902_v33  ;;  %10904 = vst [vmem:[#allocation50_spill] sm:$0xff] %v6873_v50  ;;  %vm6878_vm15 = vcmp.ge.s32.totalorder %v295_v31, 1  ;;  %v10905_v24 = vmov 0  ;;  %v719_v6 = vrot.slane %v6462_v17, 7  ;;  %v6884_v47 = vsel %vm10908_vm12, 0.0, %v706_v55 }
  0x47   : > { %5177 = vrot.lane.b32.xlu1 %v5176_v43, %s6366_s25  ;;  %v10906_v24 = vsel %vm6878_vm15, 4294967295, %v10905_v24  ;;  %10909 = vst [vmem:[#allocation52_spill] sm:$0xff] %v6884_v47  ;;  %v351_v35 = vand.u32 15, %v267_v60  ;;  %v271_v43 = vadd.s32 96, %v6421_v1  ;;  %vm6890_vm0 = vcmp.ge.s32.totalorder %v337_v12, 1  ;;  %vm10917_vm12 = vmmov %vm10910_vm9 }
  0x48   : > { %5172 = vrot.lane.b32.xlu0 %v5171_v59, %s6366_s25  ;;  %10907 = vst [vmem:[#allocation51_spill] sm:$0xff] %v10906_v24  ;;  %v6887_v59 = vsel %vm10910_vm9, %v715_v57, %v717_v41  ;;  %v10912_v62 = vmov 0  ;;  %v365_v22 = vand.u32 15, %v269_v32  ;;  %v723_v31 = vrot.slane %v6455_v14, 7 }
  0x49   : > { %10911 = vst [vmem:[#allocation53_spill] sm:$0xff] %v6887_v59  ;;  %v10913_v62 = vsel %vm6890_vm0, 4294967295, %v10912_v62  ;;  %v725_v20 = vrot.slane %v6459_v16, 7  ;;  %v6897_v44 = vsel %vm10915_vm14, %v706_v55, %v707_v19  ;;  %v6900_v13 = vsel %vm10917_vm12, %v711_v15, %v713_v51  ;;  %vm10920_vm14 = vmmov %vm10910_vm9 }
  0x4a   : > { %10914 = vst [vmem:[#allocation54_spill] sm:$0xff] %v10913_v62  ;;  %10916 = vst [vmem:[#allocation55_spill] sm:$0xff] %v6897_v44  ;;  %v721_v60 = vrot.slane %v6465_v18, 7  ;;  %v273_v49 = vadd.s32 112, %v6421_v1  ;;  %v5206_v32 = vpack.i.bf16 %v6873_v50, %v1153_v54  ;;  %v1151_v12 = vsel %vm6878_vm15, %v6884_v47, 0.0 }
  0x4b   : > { %10918 = vst [vmem:[#allocation56_spill] sm:$0xff] %v6900_v13  ;;  %5187 = vrot.lane.b32.xlu1 %v5186_v42, %s6366_s25  ;;  %v6911_v19 = vsel %vm10910_vm9, %v717_v41, %v719_v6  ;;  %v6914_v15 = vsel %vm10920_vm14, %v713_v51, %v715_v57  ;;  %vm6916_vm12 = vcmp.ge.s32.totalorder %v351_v35, 1  ;;  %v10922_v55 = vmov 0  ;;  %vm10929_vm15 = vmmov %vm10910_vm9 }
  0x4c   : > { %5182 = vrot.lane.b32.xlu0 %v5181_v40, %s6366_s25  ;;  %10919 = vst [vmem:[#allocation57_spill] sm:$0xff] %v6911_v19  ;;  %10921 = vst [vmem:[#allocation58_spill] sm:$0xff] %v6914_v15  ;;  %v10923_v55 = vsel %vm6916_vm12, 4294967295, %v10922_v55  ;;  %v1157_v40 = vsel %vm6890_vm0, %v6887_v59, 0.0  ;;  %v379_v42 = vand.u32 15, %v271_v43  ;;  %v727_v54 = vrot.slane %v6482_v26, 7 }
  0x4d   : > { %10924 = vst [vmem:[#allocation59_spill] sm:$0xff] %v10923_v55  ;;  %v1155_v47 = vsel %vm6865_vm11, %v6900_v13, 0.0  ;;  %v6928_v41 = vsel %vm10910_vm9, %v723_v31, %v725_v20  ;;  %vm6930_vm14 = vcmp.ge.s32.totalorder %v365_v22, 1  ;;  %v10926_v51 = vmov 0 }
  0x4e   : > { %10925 = vst [vmem:[#allocation60_spill] sm:$0xff] %v6928_v41  ;;  %v10927_v51 = vsel %vm6930_vm14, 4294967295, %v10926_v51  ;;  %v275_v57 = vadd.s32 128, %v6421_v1  ;;  %v6936_v35 = vsel %vm10929_vm15, %v719_v6, %v721_v60  ;;  %v393_v59 = vand.u32 15, %v273_v49  ;;  %vm10931_vm15 = vmmov %vm10910_vm9 }
  0x4f   : > { %10928 = vst [vmem:[#allocation61_spill] sm:$0xff] %v10927_v51  ;;  %10930 = vst [vmem:[#allocation62_spill] sm:$0xff] %v6936_v35  ;;  %v731_v43 = vrot.slane %v6476_v23, 7  ;;  %v733_v62 = vrot.slane %v6479_v25, 7  ;;  %5197 = vrot.lane.b32.xlu1 %v5196_v58, %s6366_s25  ;;  %v5201_v33 = vpack.i.bf16 %v6897_v44, %v1151_v12  ;;  %v5216_v22 = vpack.i.bf16 %v6911_v19, %v1157_v40 }
  0x50   : > { %5192 = vrot.lane.b32.xlu0 %v5191_v39, %s6366_s25  ;;  %v729_v50 = vrot.slane %v6485_v27, 7  ;;  %v277_v24 = vadd.s32 144, %v6421_v1  ;;  %v5211_v6 = vpack.i.bf16 %v6914_v15, %v1155_v47  ;;  %v6948_v49 = vsel %vm10931_vm15, %v725_v20, %v727_v54  ;;  %vm10936_vm11 = vmmov %vm10931_vm15 }
  0x51   : > { %10932 = vst [vmem:[#allocation63_spill] sm:$0xff] %v6948_v49  ;;  %vm6950_vm9 = vcmp.ge.s32.totalorder %v379_v42, 1  ;;  %v10933_v13 = vmov 0  ;;  %v1161_v58 = vsel %vm6930_vm14, %v6928_v41, 0.0  ;;  %v6958_v39 = vsel %vm10936_vm11, %v721_v60, %v723_v31  ;;  %vm10938_vm15 = vmmov %vm10936_vm11 }
  0x52   : > { %v10934_v13 = vsel %vm6950_vm9, 4294967295, %v10933_v13  ;;  %10937 = vst [vmem:[#allocation65_spill] sm:$0xff] %v6958_v39  ;;  %v1159_v12 = vsel %vm6916_vm12, %v6936_v35, 0.0  ;;  %v407_v40 = vand.u32 15, %v275_v57  ;;  %v735_v47 = vrot.slane %v6506_v37, 7  ;;  %vm10968_vm10 = vmmov %vm10936_vm11 }
  0x53   : > { %10935 = vst [vmem:[#allocation64_spill] sm:$0xff] %v10934_v13  ;;  %v6965_v20 = vsel %vm10938_vm15, %v731_v43, %v733_v62  ;;  %vm6967_vm0 = vcmp.ge.s32.totalorder %v393_v59, 1  ;;  %v10940_v42 = vmov 0  ;;  %v279_v44 = vadd.s32 160, %v6421_v1  ;;  %5207 = vrot.lane.b32.xlu1 %v5206_v32, %s6367_s26  ;;  %vm10944_vm15 = vmmov %vm10936_vm11 }
  0x54   : > { %10939 = vst [vmem:[#allocation66_spill] sm:$0xff] %v6965_v20  ;;  %v10941_v42 = vsel %vm6967_vm0, 4294967295, %v10940_v42  ;;  %v739_v41 = vrot.slane %v6489_v29, 7  ;;  %5202 = vrot.lane.b32.xlu0 %v5201_v33, %s6367_s26  ;;  %v6976_v31 = vsel %vm10936_vm11, %v727_v54, %v729_v50  ;;  %v421_v60 = vand.u32 15, %v277_v24 }
  0x55   : > { %10942 = vst [vmem:[#allocation67_spill] sm:$0xff] %v10941_v42  ;;  %10943 = vst [vmem:[#allocation68_spill] sm:$0xff] %v6976_v31  ;;  %v741_v57 = vrot.slane %v6498_v34, 7  ;;  %v737_v59 = vrot.slane %v6509_v38, 7  ;;  %v5226_v55 = vpack.i.bf16 %v6948_v49, %v1161_v58  ;;  %v5221_v51 = vpack.i.bf16 %v6958_v39, %v1159_v12  ;;  %v10950_v12 = vld [vmem:[#allocation3_spill] sm:$0xff] }
  0x56   : > { %v281_v19 = vadd.s32 176, %v6421_v1  ;;  %v6984_v35 = vsel %vm10944_vm15, %v733_v62, %v735_v47  ;;  %vm6986_vm12 = vcmp.ge.s32.totalorder %v407_v40, 1  ;;  %v10946_v32 = vmov 0  ;;  %vm10951_vm15 = vmmov %vm10936_vm11 }
  0x57   : > { %10945 = vst [vmem:[#allocation69_spill] sm:$0xff] %v6984_v35  ;;  %v10947_v32 = vsel %vm6986_vm12, 4294967295, %v10946_v32  ;;  %v1165_v33 = vsel %vm6967_vm0, %v6965_v20, 0.0  ;;  %v6994_v24 = vsel %vm10936_vm11, %v729_v50, %v731_v43  ;;  %v1163_v54 = vsel %vm6950_vm9, %v6976_v31, 0.0  ;;  %5217 = vrot.lane.b32.xlu1 %v5216_v22, %s6367_s26 }
  0x58   : > { %10948 = vst [vmem:[#allocation70_spill] sm:$0xff] %v10947_v32  ;;  %10949 = vst [vmem:[#allocation71_spill] sm:$0xff] %v6994_v24  ;;  %v435_v58 = vand.u32 15, %v279_v44  ;;  %v743_v49 = vrot.slane %v10950_v12, 7  ;;  %v283_v62 = vadd.s32 192, %v6421_v1  ;;  %5212 = vrot.lane.b32.xlu0 %v5211_v6, %s6367_s26  ;;  %v7004_v40 = vsel %vm10951_vm15, %v739_v41, %v741_v57 }
  0x59   : > { %10952 = vst [vmem:[#allocation3_spill] sm:$0xff] %v7004_v40  ;;  %vm7006_vm0 = vcmp.ge.s32.totalorder %v421_v60, 1  ;;  %v10953_v20 = vmov 0  ;;  %v7011_v50 = vsel %vm10936_vm11, %v735_v47, %v737_v59  ;;  %v747_v44 = vrot.slane %v6522_v45, 7  ;;  %vm10957_vm15 = vmmov %vm10936_vm11 }
  0x5a   : > { %v10954_v20 = vsel %vm7006_vm0, 4294967295, %v10953_v20  ;;  %10956 = vst [vmem:[#allocation73_spill] sm:$0xff] %v7011_v50  ;;  %v449_v43 = vand.u32 15, %v281_v19  ;;  %v749_v13 = vrot.slane %v6525_v46, 7  ;;  %v745_v42 = vrot.slane %v6531_v48, 7 }
  0x5b   : > { %10955 = vst [vmem:[#allocation72_spill] sm:$0xff] %v10954_v20  ;;  %v285_v22 = vadd.s32 208, %v6421_v1  ;;  %v5236_v6 = vpack.i.bf16 %v6984_v35, %v1165_v33  ;;  %v5231_v31 = vpack.i.bf16 %v6994_v24, %v1163_v54  ;;  %v7020_v60 = vsel %vm10957_vm15, %v741_v57, %v743_v49  ;;  %5227 = vrot.lane.b32.xlu1 %v5226_v55, %s6367_s26  ;;  %vm10963_vm15 = vmmov %vm10936_vm11 }
  0x5c   : > { %10958 = vst [vmem:[#allocation74_spill] sm:$0xff] %v7020_v60  ;;  %vm7022_vm9 = vcmp.ge.s32.totalorder %v435_v58, 1  ;;  %v10959_v39 = vmov 0  ;;  %v463_v47 = vand.u32 15, %v283_v62  ;;  %v751_v19 = vrot.slane %v6573_v5, 7  ;;  %5222 = vrot.lane.b32.xlu0 %v5221_v51, %s6367_s26 }
  0x5d   : > { %v10960_v39 = vsel %vm7022_vm9, 4294967295, %v10959_v39  ;;  %v1169_v33 = vsel %vm7006_vm0, %v7004_v40, 0.0  ;;  %v7033_v54 = vsel %vm10936_vm11, %v737_v59, %v739_v41  ;;  %v1167_v57 = vsel %vm6986_vm12, %v7011_v50, 0.0  ;;  %vm10970_vm11 = vmmov %vm10968_vm10 }
  0x5e   : > { %10961 = vst [vmem:[#allocation75_spill] sm:$0xff] %v10960_v39  ;;  %10962 = vst [vmem:[#allocation76_spill] sm:$0xff] %v7033_v54  ;;  %v287_v58 = vadd.s32 224, %v6421_v1  ;;  %v7040_v62 = vsel %vm10963_vm15, %v747_v44, %v749_v13  ;;  %vm7042_vm14 = vcmp.ge.s32.totalorder %v449_v43, 1  ;;  %v10965_v55 = vmov 0 }
  0x5f   : > { %10964 = vst [vmem:[#allocation77_spill] sm:$0xff] %v7040_v62  ;;  %v10966_v55 = vsel %vm7042_vm14, 4294967295, %v10965_v55  ;;  %v7047_v51 = vsel %vm10968_vm10, %v743_v49, %v745_v42  ;;  %v477_v40 = vand.u32 15, %v285_v22  ;;  %v755_v41 = vrot.slane %v6563_v61, 7  ;;  %5237 = vrot.lane.b32.xlu1 %v5236_v6, %s6367_s26  ;;  %v7079_v6 = vld [vmem:[%s6419_s23 + $0xf8] sm:$0xff] }
  0x60   : > { %10967 = vst [vmem:[#allocation78_spill] sm:$0xff] %v10966_v55  ;;  %10969 = vst [vmem:[#allocation79_spill] sm:$0xff] %v7047_v51  ;;  %v757_v59 = vrot.slane %v6570_v0, 7  ;;  %v753_v32 = vrot.slane %v6576_v7, 7  ;;  %v289_v20 = vadd.s32 240, %v6421_v1  ;;  %v5246_v35 = vpack.i.bf16 %v7020_v60, %v1169_v33  ;;  %5232 = vrot.lane.b32.xlu0 %v5231_v31, %s6367_s26 }
  0x61   : > { %v5241_v43 = vpack.i.bf16 %v7033_v54, %v1167_v57  ;;  %v7056_v50 = vsel %vm10970_vm11, %v749_v13, %v751_v19  ;;  %vm7058_vm15 = vcmp.ge.s32.totalorder %v463_v47, 1  ;;  %v10971_v49 = vmov 0 }
  0x62   : > { %v10972_v49 = vsel %vm7058_vm15, 4294967295, %v10971_v49  ;;  %v1173_v22 = vsel %vm7042_vm14, %v7040_v62, 0.0  ;;  %v7068_v1 = vsel %vm10968_vm10, %v745_v42, %v747_v44  ;;  %v1171_v13 = vsel %vm7022_vm9, %v7047_v51, 0.0  ;;  %vm10977_vm14 = vmmov %vm10968_vm10 }
  0x63   : > { %10973 = vst [vmem:[#allocation80_spill] sm:$0xff] %v10972_v49  ;;  %v491_v33 = vand.u32 15, %v287_v58  ;;  %v759_v47 = vrot.slane %v6591_v28, 7  ;;  %vm7074_vm11 = vcmp.ge.s32.totalorder %v477_v40, 1  ;;  %v10974_v57 = vmov 0  ;;  %5247 = vrot.lane.b32.xlu1 %v5246_v35, %s6367_s26  ;;  %vm10978_vm9 = vmmov %vm10968_vm10 }
  0x64   : > { %v10975_v57 = vsel %vm7074_vm11, 4294967295, %v10974_v57  ;;  %v763_v31 = vrot.slane %v6647_v56, 7  ;;  %v1145_v62 = vrot.slane %v6771_v53, 7  ;;  %v7084_v42 = vsel %vm10977_vm14, %v755_v41, %v757_v59  ;;  %5242 = vrot.lane.b32.xlu0 %v5241_v43, %s6367_s26  ;;  %vm10979_vm14 = vmmov %vm10978_vm9 }
  0x65   : > { %10976 = vst [vmem:[#allocation81_spill] sm:$0xff] %v10975_v57  ;;  %v7087_v44 = vsel %vm10968_vm10, %v751_v19, %v753_v32  ;;  %v505_v39 = vand.u32 15, %v289_v20  ;;  %v761_v58 = vrot.slane %v6594_v30, 7  ;;  %v5256_v40 = vpack.i.bf16 %v7056_v50, %v1173_v22  ;;  %vm10986_vm0 = vmmov %vm10978_vm9 }
  0x66   : > { %v5251_v55 = vpack.i.bf16 %v7068_v1, %v1171_v13  ;;  %v10619_v60 = vrot.slane %v7079_v6, 7  ;;  %v7096_v51 = vsel %vm10978_vm9, %v757_v59, %v759_v47  ;;  %v1177_v19 = vsel %vm7074_vm11, %v7084_v42, 0.0 }
  0x67   : > { %v7102_v20 = vsel %vm10979_vm14, %v753_v32, %v755_v41  ;;  %v1175_v35 = vsel %vm7058_vm15, %v7087_v44, 0.0  ;;  %vm7107_vm10 = vcmp.ge.s32.totalorder %v491_v33, 1  ;;  %v10980_v43 = vmov 0  ;;  %5257 = vrot.lane.b32.xlu1 %v5256_v40, %s6367_s26  ;;  %vm10988_vm14 = vmmov %vm10986_vm0 }
  0x68   : > { %v10981_v43 = vsel %vm7107_vm10, 4294967295, %v10980_v43  ;;  %vm7111_vm12 = vcmp.ge.s32.totalorder %v505_v39, 1  ;;  %v10983_v22 = vmov 0  ;;  %v1146_v59 = vsel %vm10978_vm9, %v763_v31, %v1145_v62  ;;  %5252 = vrot.lane.b32.xlu0 %v5251_v55, %s6367_s26  ;;  %vm10989_vm15 = vmmov %vm10986_vm0 }
  0x69   : > { %10982 = vst [vmem:[#allocation82_spill] sm:$0xff] %v10981_v43  ;;  %v10984_v22 = vsel %vm7111_vm12, 4294967295, %v10983_v22  ;;  %v7117_v13 = vsel %vm10986_vm0, %v759_v47, %v761_v58  ;;  %v5266_v32 = vpack.i.bf16 %v7096_v51, %v1177_v19  ;;  %v5261_v41 = vpack.i.bf16 %v7102_v20, %v1175_v35 }
  0x6a   : > { %10985 = vst [vmem:[#allocation83_spill] sm:$0xff] %v10984_v22  ;;  %10987 = vst [vmem:[#allocation84_spill] sm:$0xff] %v7117_v13  ;;  %v1148_v39 = vsel %vm10988_vm14, %v1145_v62, %v10619_v60  ;;  %v1181_v33 = vsel %vm7111_vm12, %v1146_v59, 0.0  ;;  %v7129_v49 = vsel %vm10989_vm15, %v761_v58, %v763_v31  ;;  %v1179_v47 = vsel %vm7107_vm10, %v7117_v13, 0.0  ;;  %v6295_v22 = vld [vmem:[%s6419_s23 + $0x10] sm:$0xff] }
  0x6b   : > { %10990 = vst [vmem:[#allocation85_spill] sm:$0xff] %v7129_v49  ;;  %v1183_v55 = vrot.slane %v7079_v6, 1  ;;  %vm10991_vm0 = vcmask 1046528   ;;  %5267 = vrot.lane.b32.xlu1 %v5266_v32, %s6367_s26  ;;  %v5276_v62 = vpack.i.bf16 %v1148_v39, %v1181_v33  ;;  %v5271_v19 = vpack.i.bf16 %v7129_v49, %v1179_v47 }
  0x6c   : > { %5262 = vrot.lane.b32.xlu0 %v5261_v41, %s6367_s26  ;;  %v10992_v35 = vrot.slane %v6771_v53, 1  ;;  %vm10993_vm15 = vmmov %vm10991_vm0  ;;  %v5286_v32 = vpack.i.bf16 %v6424_v2, %v6446_v11  ;;  %v5281_v41 = vpack.i.bf16 %v6443_v10, %v6430_v4  ;;  %v1250_v33 = vsel %vm7107_vm10, %v1146_v59, 0.0  ;;  %v11010_v59 = vld [vmem:[#allocation11_spill] sm:$0xff] }
  0x6d   : > { %v7136_v40 = vsel %vm10991_vm0, %v1183_v55, 0.0  ;;  %v7160_v47 = vpack.i.bf16 %v1148_v39, %v1250_v33  ;;  %v5306_v2 = vpack.i.bf16 %v6482_v26, %v6459_v16  ;;  %v5301_v4 = vpack.i.bf16 %v6455_v14, %v6465_v18  ;;  %v11178_v39 = vld [vmem:[#allocation67_spill] sm:$0xff] }
  0x6e   : > { %v7144_v31 = vsel %vm10993_vm15, %v10992_v35, %v1183_v55  ;;  %v1282_v58 = vsel %vm6811_vm13, %v7136_v40, 0.0  ;;  %v5296_v55 = vpack.i.bf16 %v6462_v17, %v6440_v9  ;;  %v5316_v9 = vpack.i.bf16 %v6506_v37, %v6479_v25 }
  0x6f   : > { %v7150_v60 = vpack.i.bf16 %v1282_v58, %v7144_v31  ;;  %5277 = vrot.lane.b32.xlu1 %v5276_v62, %s6367_s26  ;;  %v5291_v62 = vpack.i.bf16 %v6437_v8, %v6427_v3  ;;  %v5311_v3 = vpack.i.bf16 %v6476_v23, %v6485_v27  ;;  %v5326_v8 = vpack.i.bf16 %v10950_v12, %v6498_v34  ;;  %v11000_v34 = vld [vmem:[#allocation6_spill] sm:$0xff] }
  0x70   : > { %5272 = vrot.lane.b32.xlu0 %v5271_v19, %s6367_s26  ;;  %v5321_v10 = vpack.i.bf16 %v6489_v29, %v6509_v38  ;;  %v5336_v11 = vpack.i.bf16 %v6573_v5, %v6525_v46  ;;  %v5331_v14 = vpack.i.bf16 %v6522_v45, %v6531_v48  ;;  %v5346_v18 = vpack.i.bf16 %v6591_v28, %v6570_v0  ;;  %v11002_v45 = vld [vmem:[#allocation4_spill] sm:$0xff]  ;;  %v11006_v5 = vld [vmem:[#allocation9_spill] sm:$0xff] }
  0x71   : > { %10994 = vst [vmem:[#allocation86_spill] sm:$0xff] %v7150_v60  ;;  %v5341_v23 = vpack.i.bf16 %v6563_v61, %v6576_v7  ;;  %v7210_v27 = vpack.i.bf16 %v7079_v6, %v6771_v53  ;;  %v5351_v29 = vpack.i.bf16 %v6647_v56, %v6594_v30  ;;  %v1191_v38 = vsel %vm6540_vm2, %v11000_v34, 0.0  ;;  %v11007_v56 = vld [vmem:[#allocation8_spill] sm:$0xff]  ;;  %v11008_v30 = vld [vmem:[#allocation13_spill] sm:$0xff]  ;;  %v11033_v60 = vld [vmem:[#allocation26_spill] sm:$0xff] }
  0x72   : > { %v1189_v48 = vsel %vm6500_vm1, %v11002_v45, 0.0  ;;  %v5366_v7 = vpack.i.bf16 %v1191_v38, %v11006_v5  ;;  %v1195_v12 = vsel %vm6620_vm4, %v11008_v30, 0.0  ;;  %v1193_v19 = vsel %vm6547_vm3, %v11010_v59, 0.0  ;;  %v11024_v45 = vld [vmem:[#allocation20_spill] sm:$0xff] }
  0x73   : > { %5287 = vrot.lane.b32.xlu1 %v5286_v32, %s6368_s27  ;;  %10999 = vst [vmem:[#allocation91_spill] sm:$0xff] %v7210_v27  ;;  %v5361_v28 = vpack.i.bf16 %v1189_v48, %v11007_v56  ;;  %v5376_v32 = vpack.i.bf16 %v1195_v12, %v6658_v63  ;;  %v11028_v12 = vld [vmem:[#allocation25_spill] sm:$0xff]  ;;  %v11167_v48 = vld [vmem:[#allocation59_spill] sm:$0xff] }
  0x74   : > { %5282 = vrot.lane.b32.xlu0 %v5281_v41, %s6368_s27  ;;  %v11014_v41 = vld [vmem:[#allocation10_spill] sm:$0xff] }
  0x75   : > { %v5371_v33 = vpack.i.bf16 %v1193_v19, %v11014_v41 }
  0x77   : > { %5297 = vrot.lane.b32.xlu1 %v5296_v55, %s6368_s27  ;;  %v11015_v55 = vld [vmem:[#allocation18_spill] sm:$0xff] }
  0x78   : > { %5292 = vrot.lane.b32.xlu0 %v5291_v62, %s6368_s27 }
  0x7b   : > { %5307 = vrot.lane.b32.xlu1 %v5306_v2, %s6368_s27  ;;  %v1199_v2 = vsel %vm6634_vm6, %v11015_v55, 0.0 }
  0x7c   : > { %5302 = vrot.lane.b32.xlu0 %v5301_v4, %s6368_s27  ;;  %v11017_v4 = vld [vmem:[#allocation15_spill] sm:$0xff] }
  0x7f   : > { %5317 = vrot.lane.b32.xlu1 %v5316_v9, %s6368_s27  ;;  %v11174_v9 = vld [vmem:[#allocation66_spill] sm:$0xff] }
  0x80   : > { %5312 = vrot.lane.b32.xlu0 %v5311_v3, %s6368_s27  ;;  %v1197_v3 = vsel %vm6627_vm5, %v11017_v4, 0.0 }
  0x83   : > { %5327 = vrot.lane.b32.xlu1 %v5326_v8, %s6368_s27 }
  0x84   : > { %5322 = vrot.lane.b32.xlu0 %v5321_v10, %s6368_s27 }
  0x85   : > { %v7192_v16 = vpop.permute.xlu1 %5057 }
  0x86   : > { %10995 = vst [vmem:[#allocation87_spill] sm:$0xff] %v7192_v16  ;;  %v7194_v17 = vpop.permute.xlu0 %5047  ;;  %v11052_v16 = vld [vmem:[#allocation38_spill] sm:$0xff] }
  0x87   : > { %10996 = vst [vmem:[#allocation88_spill] sm:$0xff] %v7194_v17  ;;  %5337 = vrot.lane.b32.xlu1 %v5336_v11, %s6368_s27  ;;  %v5386_v11 = vpack.i.bf16 %v1199_v2, %v6676_v21  ;;  %v11030_v2 = vld [vmem:[#allocation28_spill] sm:$0xff] }
  0x88   : > { %5332 = vrot.lane.b32.xlu0 %v5331_v14, %s6368_s27  ;;  %v11021_v14 = vld [vmem:[#allocation19_spill] sm:$0xff] }
  0x89   : > { %v7202_v25 = vpop.permute.xlu1 %5062 }
  0x8a   : > { %10997 = vst [vmem:[#allocation89_spill] sm:$0xff] %v7202_v25  ;;  %v7204_v26 = vpop.permute.xlu0 %5052 }
  0x8b   : > { %10998 = vst [vmem:[#allocation90_spill] sm:$0xff] %v7204_v26  ;;  %5347 = vrot.lane.b32.xlu1 %v5346_v18, %s6368_s27  ;;  %v5381_v18 = vpack.i.bf16 %v1197_v3, %v11021_v14  ;;  %v11031_v3 = vld [vmem:[#allocation27_spill] sm:$0xff]  ;;  %v11044_v26 = vld [vmem:[#allocation29_spill] sm:$0xff] }
  0x8c   : > { %5342 = vrot.lane.b32.xlu0 %v5341_v23, %s6368_s27  ;;  %v11022_v23 = vld [vmem:[#allocation22_spill] sm:$0xff]  ;;  %vm11032_vm9 = vnez %v11031_v3  ;;  %vm11045_vm15 = vnez %v11044_v26  ;;  %v11150_v3 = vld [vmem:[#allocation43_spill] sm:$0xff] }
  0x8d   : > { %v7220_v61 = vpop.permute.xlu1 %5072  ;;  %v1203_v38 = vsel %vm6684_vm8, %v11022_v23, 0.0 }
  0x8e   : > { %11004 = vst [vmem:[#allocation6_spill] sm:$0xff] %v7220_v61  ;;  %v7222_v0 = vpop.permute.xlu0 %5067  ;;  %v5396_v19 = vpack.i.bf16 %v1203_v38, %v11028_v12  ;;  %v11039_v38 = vld [vmem:[#allocation32_spill] sm:$0xff]  ;;  %v11043_v61 = vld [vmem:[#allocation30_spill] sm:$0xff] }
  0x8f   : > { %11005 = vst [vmem:[#allocation4_spill] sm:$0xff] %v7222_v0  ;;  %5357 = vrot.lane.b32.xlu1 %v7210_v27, %s6368_s27  ;;  %v1209_v25 = vsel %vm11045_vm15, %v11043_v61, 0.0 }
  0x90   : > { %5352 = vrot.lane.b32.xlu0 %v5351_v29, %s6368_s27 }
  0x91   : > { %v7235_v35 = vpop.permute.xlu1 %5082 }
  0x92   : > { %11012 = vst [vmem:[#allocation9_spill] sm:$0xff] %v7235_v35  ;;  %v7237_v58 = vpop.permute.xlu0 %5077  ;;  %v11041_v35 = vld [vmem:[#allocation31_spill] sm:$0xff]  ;;  %v11192_v37 = vld [vmem:[#allocation90_spill] sm:$0xff] }
  0x93   : > { %11013 = vst [vmem:[#allocation8_spill] sm:$0xff] %v7237_v58  ;;  %5367 = vrot.lane.b32.xlu1 %v5366_v7, %s6369_s28  ;;  %v1201_v7 = vsel %vm6640_vm7, %v11024_v45, 0.0  ;;  %vm11042_vm0 = vnez %v11041_v35 }
  0x94   : > { %5362 = vrot.lane.b32.xlu0 %v5361_v28, %s6369_s28 }
  0x95   : > { %v7249_v8 = vpop.permute.xlu1 %5092 }
  0x96   : > { %11019 = vst [vmem:[#allocation13_spill] sm:$0xff] %v7249_v8  ;;  %v7251_v10 = vpop.permute.xlu0 %5087  ;;  %v11034_v8 = vld [vmem:[#allocation23_spill] sm:$0xff] }
  0x97   : > { %11020 = vst [vmem:[#allocation11_spill] sm:$0xff] %v7251_v10  ;;  %5377 = vrot.lane.b32.xlu1 %v5376_v32, %s6369_s28  ;;  %v11029_v32 = vld [vmem:[#allocation24_spill] sm:$0xff]  ;;  %v1207_v10 = vsel %vm11032_vm9, %v11030_v2, 0.0  ;;  %vm11035_vm14 = vnez %v11034_v8 }
  0x98   : > { %5372 = vrot.lane.b32.xlu0 %v5371_v33, %s6369_s28  ;;  %v5391_v33 = vpack.i.bf16 %v1201_v7, %v11029_v32  ;;  %v1205_v58 = vsel %vm11035_vm14, %v11033_v60, 0.0 }
  0x99   : > { %v7263_v56 = vpop.permute.xlu1 %5102  ;;  %v5401_v7 = vpack.i.bf16 %v1205_v58, %v11039_v38 }
  0x9a   : > { %11026 = vst [vmem:[#allocation10_spill] sm:$0xff] %v7263_v56  ;;  %v7265_v28 = vpop.permute.xlu0 %5097 }
  0x9b   : > { %11027 = vst [vmem:[#allocation18_spill] sm:$0xff] %v7265_v28  ;;  %5387 = vrot.lane.b32.xlu1 %v5386_v11, %s6369_s28  ;;  %v11038_v11 = vld [vmem:[#allocation33_spill] sm:$0xff]  ;;  %v11040_v28 = vld [vmem:[#allocation36_spill] sm:$0xff] }
  0x9c   : > { %5382 = vrot.lane.b32.xlu0 %v5381_v18, %s6369_s28  ;;  %v5406_v18 = vpack.i.bf16 %v1207_v10, %v11038_v11  ;;  %v1211_v0 = vsel %vm11042_vm0, %v11040_v28, 0.0  ;;  %v11053_v28 = vld [vmem:[#allocation37_spill] sm:$0xff] }
  0x9d   : > { %v7277_v27 = vpop.permute.xlu1 %5112  ;;  %v5416_v10 = vpack.i.bf16 %v1211_v0, %v6786_v52  ;;  %vm11054_vm0 = vnez %v11053_v28 }
  0x9e   : > { %11036 = vst [vmem:[#allocation15_spill] sm:$0xff] %v7277_v27  ;;  %v7279_v56 = vpop.permute.xlu0 %5107  ;;  %v1213_v26 = vsel %vm11054_vm0, %v11052_v16, 0.0 }
  0x9f   : > { %11037 = vst [vmem:[#allocation19_spill] sm:$0xff] %v7279_v56  ;;  %5397 = vrot.lane.b32.xlu1 %v5396_v19, %s6369_s28  ;;  %v11048_v19 = vld [vmem:[#allocation34_spill] sm:$0xff]  ;;  %v11050_v56 = vld [vmem:[#allocation39_spill] sm:$0xff] }
  0xa0   : > { %5392 = vrot.lane.b32.xlu0 %v5391_v33, %s6369_s28  ;;  %v5411_v58 = vpack.i.bf16 %v1209_v25, %v11048_v19  ;;  %v11049_v33 = vld [vmem:[#allocation41_spill] sm:$0xff]  ;;  %vm11051_vm10 = vnez %v11050_v56  ;;  %v11061_v56 = vld [vmem:[#allocation43_spill] sm:$0xff] }
  0xa1   : > { %v7291_v17 = vpop.permute.xlu1 %1344  ;;  %v1215_v43 = vsel %vm11051_vm10, %v11049_v33, 0.0  ;;  %v1217_v28 = vsel %vm6811_vm13, %v11061_v56, 0.0 }
  0xa2   : > { %11046 = vst [vmem:[#allocation22_spill] sm:$0xff] %v7291_v17  ;;  %v7293_v27 = vpop.permute.xlu0 %5117 }
  0xa3   : > { %11047 = vst [vmem:[#allocation20_spill] sm:$0xff] %v7293_v27  ;;  %5407 = vrot.lane.b32.xlu1 %v5406_v18, %s6369_s28  ;;  %v11057_v18 = vld [vmem:[#allocation45_spill] sm:$0xff]  ;;  %v11059_v27 = vld [vmem:[#allocation44_spill] sm:$0xff] }
  0xa4   : > { %5402 = vrot.lane.b32.xlu0 %v5401_v7, %s6369_s28  ;;  %v5426_v0 = vpack.i.bf16 %v1215_v43, %v11057_v18  ;;  %v11058_v7 = vld [vmem:[#allocation40_spill] sm:$0xff]  ;;  %vm11060_vm15 = vnez %v11059_v27  ;;  %v11069_v18 = vld [vmem:[#allocation51_spill] sm:$0xff] }
  0xa5   : > { %v7307_v17 = vpop.permute.xlu1 %5127  ;;  %v5421_v25 = vpack.i.bf16 %v1213_v26, %v11058_v7  ;;  %v1219_v33 = vsel %vm11060_vm15, %v7136_v40, 0.0  ;;  %v11068_v27 = vld [vmem:[#allocation48_spill] sm:$0xff]  ;;  %vm11070_vm15 = vnez %v11069_v18 }
  0xa6   : > { %v7305_v35 = vpop.permute.xlu0 %5122  ;;  %11056 = vst [vmem:[#allocation24_spill] sm:$0xff] %v7307_v17  ;;  %v5436_v43 = vpack.i.bf16 %v1219_v33, %v7144_v31  ;;  %v11066_v17 = vld [vmem:[#allocation47_spill] sm:$0xff]  ;;  %v1222_v36 = vsel %vm11070_vm15, %v11068_v27, 0.0  ;;  %v11073_v33 = vld [vmem:[#allocation50_spill] sm:$0xff] }
  0xa7   : > { %11055 = vst [vmem:[#allocation25_spill] sm:$0xff] %v7305_v35  ;;  %5417 = vrot.lane.b32.xlu1 %v5416_v10, %s6369_s28  ;;  %v11064_v10 = vld [vmem:[#allocation46_spill] sm:$0xff]  ;;  %vm11067_vm0 = vnez %v11066_v17  ;;  %v11078_v17 = vld [vmem:[#allocation49_spill] sm:$0xff] }
  0xa8   : > { %5412 = vrot.lane.b32.xlu0 %v5411_v58, %s6369_s28  ;;  %v5431_v26 = vpack.i.bf16 %v1217_v28, %v11064_v10  ;;  %v11065_v58 = vld [vmem:[#allocation56_spill] sm:$0xff]  ;;  %v5441_v28 = vpack.i.bf16 %v11073_v33, %v1222_v36  ;;  %v11083_v36 = vld [vmem:[#allocation57_spill] sm:$0xff] }
  0xa9   : > { %v7321_v35 = vpop.permute.xlu1 %5137  ;;  %v1224_v40 = vsel %vm11067_vm0, %v11065_v58, 0.0  ;;  %v11077_v58 = vld [vmem:[#allocation53_spill] sm:$0xff]  ;;  %vm11079_vm0 = vnez %v11078_v17 }
  0xaa   : > { %v7319_v52 = vpop.permute.xlu0 %5132  ;;  %11063 = vst [vmem:[#allocation26_spill] sm:$0xff] %v7321_v35  ;;  %v5446_v31 = vpack.i.bf16 %v6914_v15, %v1224_v40  ;;  %v1226_v18 = vsel %vm11079_vm0, %v11077_v58, 0.0  ;;  %v11085_v15 = vld [vmem:[#allocation61_spill] sm:$0xff] }
  0xab   : > { %11062 = vst [vmem:[#allocation28_spill] sm:$0xff] %v7319_v52  ;;  %5427 = vrot.lane.b32.xlu1 %v5426_v0, %s6369_s28  ;;  %v11074_v0 = vld [vmem:[#allocation62_spill] sm:$0xff]  ;;  %v5451_v40 = vpack.i.bf16 %v11083_v36, %v1226_v18  ;;  %vm11086_vm15 = vnez %v11085_v15  ;;  %v11094_v36 = vld [vmem:[#allocation67_spill] sm:$0xff]  ;;  %v11097_v15 = vld [vmem:[#allocation64_spill] sm:$0xff] }
  0xac   : > { %5422 = vrot.lane.b32.xlu0 %v5421_v25, %s6369_s28  ;;  %v11075_v25 = vld [vmem:[#allocation54_spill] sm:$0xff]  ;;  %vm11095_vm0 = vnez %v11094_v36 }
  0xad   : > { %v7335_v52 = vpop.permute.xlu1 %5147  ;;  %vm11076_vm13 = vnez %v11075_v25  ;;  %v11088_v25 = vld [vmem:[#allocation59_spill] sm:$0xff] }
  0xae   : > { %v7333_v56 = vpop.permute.xlu0 %5142  ;;  %11072 = vst [vmem:[#allocation32_spill] sm:$0xff] %v7335_v52  ;;  %v1228_v35 = vsel %vm11076_vm13, %v11074_v0, 0.0  ;;  %v11084_v52 = vld [vmem:[#allocation68_spill] sm:$0xff]  ;;  %vm11089_vm13 = vnez %v11088_v25 }
  0xaf   : > { %11071 = vst [vmem:[#allocation33_spill] sm:$0xff] %v7333_v56  ;;  %5437 = vrot.lane.b32.xlu1 %v5436_v43, %s6369_s28  ;;  %v11082_v43 = vld [vmem:[#allocation65_spill] sm:$0xff]  ;;  %v1232_v33 = vsel %vm11086_vm15, %v11084_v52, 0.0  ;;  %v11087_v0 = vld [vmem:[#allocation60_spill] sm:$0xff]  ;;  %v11096_v52 = vld [vmem:[#allocation66_spill] sm:$0xff]  ;;  %vm11098_vm15 = vnez %v11097_v15 }
  0xb0   : > { %5432 = vrot.lane.b32.xlu0 %v5431_v26, %s6369_s28  ;;  %v5456_v26 = vpack.i.bf16 %v11082_v43, %v1228_v35  ;;  %v1230_v58 = vsel %vm11089_vm13, %v11087_v0, 0.0  ;;  %v5466_v35 = vpack.i.bf16 %v6994_v24, %v1232_v33  ;;  %v1234_v0 = vsel %vm11098_vm15, %v11096_v52, 0.0  ;;  %v11105_v24 = vld [vmem:[#allocation3_spill] sm:$0xff] }
  0xb1   : > { %v7349_v56 = vpop.permute.xlu1 %5157 }
  0xb2   : > { %v7347_v27 = vpop.permute.xlu0 %5152  ;;  %11081 = vst [vmem:[#allocation34_spill] sm:$0xff] %v7349_v56 }
  0xb3   : > { %11080 = vst [vmem:[#allocation30_spill] sm:$0xff] %v7347_v27  ;;  %5447 = vrot.lane.b32.xlu1 %v5446_v31, %s6370_s29  ;;  %v11092_v31 = vld [vmem:[#allocation63_spill] sm:$0xff] }
  0xb4   : > { %5442 = vrot.lane.b32.xlu0 %v5441_v28, %s6370_s29  ;;  %v5461_v18 = vpack.i.bf16 %v11092_v31, %v1230_v58  ;;  %v11093_v28 = vld [vmem:[#allocation73_spill] sm:$0xff] }
  0xb5   : > { %v7363_v56 = vpop.permute.xlu1 %5167  ;;  %v1236_v43 = vsel %vm11095_vm0, %v11093_v28, 0.0  ;;  %v11106_v28 = vld [vmem:[#allocation70_spill] sm:$0xff] }
  0xb6   : > { %v7361_v27 = vpop.permute.xlu0 %5162  ;;  %11091 = vst [vmem:[#allocation40_spill] sm:$0xff] %v7363_v56  ;;  %v5476_v33 = vpack.i.bf16 %v7033_v54, %v1236_v43  ;;  %v11103_v56 = vld [vmem:[#allocation72_spill] sm:$0xff]  ;;  %vm11107_vm0 = vnez %v11106_v28  ;;  %v11114_v54 = vld [vmem:[#allocation75_spill] sm:$0xff] }
  0xb7   : > { %11090 = vst [vmem:[#allocation38_spill] sm:$0xff] %v7361_v27  ;;  %5457 = vrot.lane.b32.xlu1 %v5456_v26, %s6370_s29  ;;  %v11101_v26 = vld [vmem:[#allocation69_spill] sm:$0xff]  ;;  %vm11104_vm13 = vnez %v11103_v56  ;;  %v1238_v36 = vsel %vm11107_vm0, %v11105_v24, 0.0  ;;  %v11185_v28 = vld [vmem:[#allocation79_spill] sm:$0xff] }
  0xb8   : > { %5452 = vrot.lane.b32.xlu0 %v5451_v40, %s6370_s29  ;;  %v5471_v58 = vpack.i.bf16 %v11101_v26, %v1234_v0  ;;  %v11102_v40 = vld [vmem:[#allocation79_spill] sm:$0xff]  ;;  %v11113_v26 = vld [vmem:[#allocation77_spill] sm:$0xff] }
  0xb9   : > { %v7377_v27 = vpop.permute.xlu1 %5177  ;;  %v1240_v31 = vsel %vm11104_vm13, %v11102_v40, 0.0  ;;  %vm11115_vm13 = vnez %v11114_v54 }
  0xba   : > { %v7375_v25 = vpop.permute.xlu0 %5172  ;;  %11100 = vst [vmem:[#allocation92_spill] sm:$0xff] %v7377_v27  ;;  %v5486_v43 = vpack.i.bf16 %v7068_v1, %v1240_v31  ;;  %v1242_v40 = vsel %vm11115_vm13, %v11113_v26, 0.0  ;;  %vm11121_vm13 = vcmask 1040384  }
  0xbb   : > { %11099 = vst [vmem:[#allocation46_spill] sm:$0xff] %v7375_v25  ;;  %5467 = vrot.lane.b32.xlu1 %v5466_v35, %s6370_s29  ;;  %v11110_v35 = vld [vmem:[#allocation74_spill] sm:$0xff] }
  0xbc   : > { %5462 = vrot.lane.b32.xlu0 %v5461_v18, %s6370_s29  ;;  %v5481_v0 = vpack.i.bf16 %v11110_v35, %v1238_v36  ;;  %v11111_v18 = vld [vmem:[#allocation78_spill] sm:$0xff]  ;;  %v5491_v36 = vpack.i.bf16 %v7056_v50, %v1242_v40 }
  0xbd   : > { %v7391_v25 = vpop.permute.xlu1 %5187  ;;  %vm11112_vm15 = vnez %v11111_v18 }
  0xbe   : > { %v7389_v52 = vpop.permute.xlu0 %5182  ;;  %11109 = vst [vmem:[#allocation93_spill] sm:$0xff] %v7391_v25  ;;  %v1244_v27 = vsel %vm11112_vm15, %v7087_v44, 0.0 }
  0xbf   : > { %11108 = vst [vmem:[#allocation3_spill] sm:$0xff] %v7389_v52  ;;  %5477 = vrot.lane.b32.xlu1 %v5476_v33, %s6370_s29  ;;  %v5496_v31 = vpack.i.bf16 %v7102_v20, %v1244_v27  ;;  %v1248_v33 = vsel %vm7074_vm11, %v7117_v13, 0.0  ;;  %v6286_v27 = vld [vmem:[%s10424_s1 + $0x10] ss:$0 sps:$4 sm:$0x33]   ;;  %vm10674_vm11 = vcmask 1041408  }
  0xc0   : > { %5472 = vrot.lane.b32.xlu0 %v5471_v58, %s6370_s29  ;;  %v11118_v58 = vld [vmem:[#allocation80_spill] sm:$0xff]  ;;  %v5506_v40 = vpack.i.bf16 %v7129_v49, %v1248_v33  ;;  %5027 = vmatprep.subr.msk.bf16.mxu0 %vm10674_vm11, %v6286_v27 }
  0xc1   : > { %v7405_v52 = vpop.permute.xlu1 %5197  ;;  %vm11119_vm15 = vnez %v11118_v58  ;;  %v11267_v58 = vld [vmem:[#allocation34_spill] sm:$0xff] }
  0xc2   : > { %v7403_v56 = vpop.permute.xlu0 %5192  ;;  %11117 = vst [vmem:[#allocation94_spill] sm:$0xff] %v7405_v52  ;;  %v1246_v25 = vsel %vm11119_vm15, %v7084_v42, 0.0 }
  0xc3   : > { %11116 = vst [vmem:[#allocation77_spill] sm:$0xff] %v7403_v56  ;;  %5487 = vrot.lane.b32.xlu1 %v5486_v43, %s6370_s29  ;;  %v11120_v43 = vrot.slane %v7079_v6, 7  ;;  %v5501_v13 = vpack.i.bf16 %v7096_v51, %v1246_v25  ;;  %v6287_v25 = vld [vmem:[%s10424_s1 + $0x8] sm:$0xff]  }
  0xc4   : > { %5482 = vrot.lane.b32.xlu0 %v5481_v0, %s6370_s29 }
  0xc5   : > { %v7417_v35 = vpop.permute.xlu1 %5207  ;;  %v1221_v0 = vsel %vm11121_vm13, %v11120_v43, 0.0 }
  0xc6   : > { %v7419_v56 = vpop.permute.xlu0 %5202  ;;  %v1252_v52 = vsel %vm7111_vm12, %v1221_v0, 0.0 }
  0xc7   : > { %5497 = vrot.lane.b32.xlu1 %v5496_v31, %s6370_s29  ;;  %v2549_v31 = vsel %vm10674_vm11, %v6286_v27, 0  ;;  %v6288_v27 = vld [vmem:[%s10424_s1] sm:$0xff]  }
  0xc8   : > { %5492 = vrot.lane.b32.xlu0 %v5491_v36, %s6370_s29  ;;  %4952 = vmatpush3.bf16.msra.mxu0 %v2549_v31  ;;  %v11124_v36 = vmov 0.0   ;;  %v6294_v31 = vld [vmem:[%s6419_s23 + $0x18] sm:$0xff] }
  0xc9   : > { %v7434_v6 = vpop.permute.xlu1 %5217  ;;  %v5516_v33 = vpack.i.bf16 %v11124_v36, %v1252_v52  ;;  %4953 = vmatprep.subr.bf16.mxu0 %v6287_v25  ;;  %v6293_v52 = vld [vmem:[%s6419_s23 + $0x28] sm:$0xff]  ;;  %v5521_v36 = vpack.i.bf16 %v6294_v31, %v6295_v22  ;;  %v1256_v22 = vsel %vm6540_vm2, %v11010_v59, 0.0  ;;  %v1260_v59 = vsel %vm6620_vm4, %v11017_v4, 0.0 }
  0xca   : > { %11122 = vst [vmem:[#allocation95_spill] sm:$0xff] %v7434_v6  ;;  %v7436_v43 = vpop.permute.xlu0 %5212  ;;  %v6299_v6 = vld [vmem:[%s6419_s23 + $0x38] sm:$0xff] }
  0xcb   : > { %11123 = vst [vmem:[#allocation96_spill] sm:$0xff] %v7436_v43  ;;  %5507 = vrot.lane.b32.xlu1 %v5506_v40, %s6370_s29  ;;  %v6298_v43 = vld [vmem:[%s6419_s23 + $0x30] sm:$0xff] }
  0xcc   : > { %5502 = vrot.lane.b32.xlu0 %v5501_v13, %s6370_s29  ;;  %4954 = vmatpush3.bf16.msra.mxu0 %v6287_v25  ;;  %v6292_v13 = vld [vmem:[%s6419_s23 + $0x20] sm:$0xff] }
  0xcd   : > { %v7445_v0 = vpop.permute.xlu1 %5227  ;;  %v5526_v40 = vpack.i.bf16 %v6293_v52, %v6292_v13  ;;  %4955 = vmatprep.subr.bf16.mxu0 %v6288_v27  ;;  %v5531_v13 = vpack.i.bf16 %v6299_v6, %v6298_v43  ;;  %v1254_v52 = vsel %vm6500_vm1, %v11000_v34, 0.0  ;;  %v1258_v34 = vsel %vm6547_vm3, %v11008_v30, 0.0  ;;  %v6300_v30 = vld [vmem:[%s6419_s23 + $0x68] sm:$0xff] }
  0xce   : > { %11125 = vst [vmem:[#allocation97_spill] sm:$0xff] %v7445_v0  ;;  %v7447_v49 = vpop.permute.xlu0 %5222  ;;  %v5541_v6 = vpack.i.bf16 %v1254_v52, %v11006_v5  ;;  %v5556_v5 = vpack.i.bf16 %v1260_v59, %v11021_v14  ;;  %v1262_v14 = vsel %vm6627_vm5, %v11015_v55, 0.0  ;;  %v6304_v55 = vld [vmem:[%s6419_s23 + $0x88] sm:$0xff] }
  0xcf   : > { %11126 = vst [vmem:[#allocation98_spill] sm:$0xff] %v7447_v49  ;;  %5517 = vrot.lane.b32.xlu1 %v5516_v33, %s6370_s29  ;;  %v6297_v33 = vld [vmem:[%s6419_s23 + $0x40] sm:$0xff] }
  0xd0   : > { %5512 = vrot.lane.b32.xlu0 %v7160_v47, %s6370_s29  ;;  %4956 = vmatpush3.bf16.msra.mxu0 %v6288_v27  ;;  %v6296_v47 = vld [vmem:[%s6419_s23 + $0x48] sm:$0xff] }
  0xd1   : > { %v7459_v25 = vpop.permute.xlu1 %5237  ;;  %v5536_v0 = vpack.i.bf16 %v6296_v47, %v6297_v33  ;;  %v6301_v47 = vld [vmem:[%s6419_s23 + $0x60] sm:$0xff] }
  0xd2   : > { %v7461_v49 = vpop.permute.xlu0 %5232  ;;  %v5566_v33 = vpack.i.bf16 %v6300_v30, %v6301_v47  ;;  %v6306_v47 = vld [vmem:[%s6419_s23 + $0x70] sm:$0xff] }
  0xd3   : > { %5527 = vrot.lane.b32.xlu1 %v5526_v40, %s6371_s11 }
  0xd4   : > { %5522 = vrot.lane.b32.xlu0 %v5521_v36, %s6371_s11  ;;  %v5546_v36 = vpack.i.bf16 %v1256_v22, %v11014_v41  ;;  %v5551_v41 = vpack.i.bf16 %v1258_v34, %v6658_v63  ;;  %v6303_v22 = vld [vmem:[%s6419_s23 + $0x58] sm:$0xff]  ;;  %v1264_v63 = vsel %vm6634_vm6, %v11024_v45, 0.0  ;;  %v5571_v34 = vpack.i.bf16 %v1262_v14, %v6676_v21 }
  0xd5   : > { %v7475_v27 = vpop.permute.xlu1 %5247  ;;  %v5576_v59 = vpack.i.bf16 %v1264_v63, %v11029_v32  ;;  %v1268_v21 = vsel %vm6684_vm8, %v11033_v60, 0.0  ;;  %v1266_v32 = vsel %vm6640_vm7, %v11022_v23, 0.0  ;;  %v6308_v23 = vld [vmem:[%s6419_s23 + $0xa8] sm:$0xff]  ;;  %vm11180_vm7 = vnez %v11114_v54  ;;  %v11197_v54 = vld [vmem:[#allocation6_spill] sm:$0xff] }
  0xd6   : > { %v7477_v31 = vpop.permute.xlu0 %5242  ;;  %v5596_v63 = vpack.i.bf16 %v1268_v21, %v11039_v38  ;;  %v5591_v14 = vpack.i.bf16 %v1266_v32, %v11028_v12  ;;  %v1272_v12 = vsel %vm11032_vm9, %v11043_v61, 0.0  ;;  %v1270_v38 = vsel %vm11035_vm14, %v11030_v2, 0.0  ;;  %v6312_v2 = vld [vmem:[%s6419_s23 + $0xc8] sm:$0xff] }
  0xd7   : > { %5537 = vrot.lane.b32.xlu1 %v5536_v0, %s6371_s11  ;;  %v5616_v21 = vpack.i.bf16 %v1272_v12, %v11048_v19  ;;  %v5611_v32 = vpack.i.bf16 %v1270_v38, %v11038_v11  ;;  %v11140_v19 = vld [vmem:[#allocation31_spill] sm:$0xff]  ;;  %vm11168_vm9 = vnez %v11167_v48  ;;  %vm11170_vm14 = vnez %v11097_v15  ;;  %v11181_v15 = vld [vmem:[#allocation73_spill] sm:$0xff]  ;;  %v11182_v48 = vld [vmem:[#allocation72_spill] sm:$0xff] }
  0xd8   : > { %5532 = vrot.lane.b32.xlu0 %v5531_v13, %s6371_s11  ;;  %v6302_v13 = vld [vmem:[%s6419_s23 + $0x50] sm:$0xff]  ;;  %vm11141_vm13 = vnez %v11140_v19 }
  0xd9   : > { %v7489_v43 = vpop.permute.xlu1 %5257  ;;  %v5561_v52 = vpack.i.bf16 %v6303_v22, %v6302_v13  ;;  %v1276_v11 = vsel %vm11141_vm13, %v11052_v16, 0.0  ;;  %v6318_v19 = vld [vmem:[%s6419_s23 + $0xd0] sm:$0xff]  ;;  %vm11159_vm13 = vnez %v11078_v17 }
  0xda   : > { %v7491_v0 = vpop.permute.xlu0 %5252  ;;  %v11177_v17 = vld [vmem:[#allocation68_spill] sm:$0xff] }
  0xdb   : > { %5547 = vrot.lane.b32.xlu1 %v5546_v36, %s6372_s12 }
  0xdc   : > { %5542 = vrot.lane.b32.xlu0 %v5541_v6, %s6372_s12 }
  0xdd   : > { %v7497_v4 = vpop.permute.xlu1 %5267 }
  0xde   : > { %v7499_v40 = vpop.permute.xlu0 %5262 }
  0xdf   : > { %11127 = vst [vmem:[#allocation99_spill] sm:$0xff] %v7499_v40  ;;  %5557 = vrot.lane.b32.xlu1 %v5556_v5, %s6372_s12  ;;  %v11242_v40 = vld [vmem:[#allocation24_spill] sm:$0xff] }
  0xe0   : > { %5552 = vrot.lane.b32.xlu0 %v5551_v41, %s6372_s12  ;;  %v6305_v41 = vld [vmem:[%s6419_s23 + $0x80] sm:$0xff] }
  0xe1   : > { %v7513_v36 = vpop.permute.xlu1 %5277  ;;  %v5586_v30 = vpack.i.bf16 %v6304_v55, %v6305_v41  ;;  %v6310_v41 = vld [vmem:[%s6419_s23 + $0x90] sm:$0xff] }
  0xe2   : > { %11128 = vst [vmem:[#allocation100_spill] sm:$0xff] %v7513_v36  ;;  %v7515_v6 = vpop.permute.xlu0 %5272 }
  0xe3   : > { %11129 = vst [vmem:[#allocation101_spill] sm:$0xff] %v7515_v6  ;;  %5567 = vrot.lane.b32.xlu1 %v5566_v33, %s6371_s11  ;;  %v6307_v33 = vld [vmem:[%s6419_s23 + $0x78] sm:$0xff] }
  0xe4   : > { %5562 = vrot.lane.b32.xlu0 %v5561_v52, %s6371_s11  ;;  %v5581_v13 = vpack.i.bf16 %v6307_v33, %v6306_v47 }
  0xe5   : > { %v7521_v5 = vpop.permute.xlu1 %5287 }
  0xe6   : > { %11130 = vst [vmem:[#allocation102_spill] sm:$0xff] %v7521_v5  ;;  %v7523_v45 = vpop.permute.xlu0 %5282  ;;  %v11237_v5 = vld [vmem:[#allocation25_spill] sm:$0xff] }
  0xe7   : > { %11131 = vst [vmem:[#allocation103_spill] sm:$0xff] %v7523_v45  ;;  %5577 = vrot.lane.b32.xlu1 %v5576_v59, %s6372_s12  ;;  %v11236_v45 = vld [vmem:[#allocation20_spill] sm:$0xff]  ;;  %v5124_v6 = vunpack.i.l.bf16 %v11237_v5 }
  0xe8   : > { %5572 = vrot.lane.b32.xlu0 %v5571_v34, %s6372_s12  ;;  %v6309_v34 = vld [vmem:[%s6419_s23 + $0xa0] sm:$0xff] }
  0xe9   : > { %v7537_v22 = vpop.permute.xlu1 %5297  ;;  %v5606_v55 = vpack.i.bf16 %v6308_v23, %v6309_v34  ;;  %v6314_v34 = vld [vmem:[%s6419_s23 + $0xb0] sm:$0xff] }
  0xea   : > { %11132 = vst [vmem:[#allocation104_spill] sm:$0xff] %v7537_v22  ;;  %v7539_v52 = vpop.permute.xlu0 %5292 }
  0xeb   : > { %11133 = vst [vmem:[#allocation105_spill] sm:$0xff] %v7539_v52  ;;  %5587 = vrot.lane.b32.xlu1 %v5586_v30, %s6371_s11  ;;  %v6311_v30 = vld [vmem:[%s6419_s23 + $0x98] sm:$0xff]  ;;  %v11235_v52 = vld [vmem:[#allocation76_spill] sm:$0xff] }
  0xec   : > { %5582 = vrot.lane.b32.xlu0 %v5581_v13, %s6371_s11  ;;  %v5601_v47 = vpack.i.bf16 %v6311_v30, %v6310_v41  ;;  %v11142_v30 = vld [vmem:[#allocation36_spill] sm:$0xff] }
  0xed   : > { %v7545_v59 = vpop.permute.xlu1 %5307 }
  0xee   : > { %11134 = vst [vmem:[#allocation106_spill] sm:$0xff] %v7545_v59  ;;  %v7547_v60 = vpop.permute.xlu0 %5302 }
  0xef   : > { %11135 = vst [vmem:[#allocation107_spill] sm:$0xff] %v7547_v60  ;;  %5597 = vrot.lane.b32.xlu1 %v5596_v63, %s6372_s12 }
  0xf0   : > { %5592 = vrot.lane.b32.xlu0 %v5591_v14, %s6372_s12  ;;  %v6313_v14 = vld [vmem:[%s6419_s23 + $0xc0] sm:$0xff] }
  0xf1   : > { %v7561_v33 = vpop.permute.xlu1 %5317  ;;  %v5626_v23 = vpack.i.bf16 %v6312_v2, %v6313_v14  ;;  %v11147_v2 = vld [vmem:[#allocation35_spill] sm:$0xff] }
  0xf2   : > { %11136 = vst [vmem:[#allocation108_spill] sm:$0xff] %v7561_v33  ;;  %v7563_v13 = vpop.permute.xlu0 %5312 }
  0xf3   : > { %11137 = vst [vmem:[#allocation109_spill] sm:$0xff] %v7563_v13  ;;  %5607 = vrot.lane.b32.xlu1 %v5606_v55, %s6371_s11  ;;  %v6315_v55 = vld [vmem:[%s6419_s23 + $0xb8] sm:$0xff] }
  0xf4   : > { %5602 = vrot.lane.b32.xlu0 %v5601_v47, %s6371_s11  ;;  %v5621_v41 = vpack.i.bf16 %v6315_v55, %v6314_v34  ;;  %v11143_v47 = vld [vmem:[#allocation29_spill] sm:$0xff]  ;;  %v6316_v55 = vld [vmem:[%s6419_s23 + $0xe0] sm:$0xff] }
  0xf5   : > { %v7569_v63 = vpop.permute.xlu1 %5327  ;;  %vm11144_vm11 = vnez %v11143_v47  ;;  %v6319_v47 = vld [vmem:[%s6419_s23 + $0xd8] sm:$0xff] }
  0xf6   : > { %11138 = vst [vmem:[#allocation110_spill] sm:$0xff] %v7569_v63  ;;  %v7571_v61 = vpop.permute.xlu0 %5322  ;;  %v1274_v12 = vsel %vm11144_vm11, %v11142_v30, 0.0  ;;  %v6317_v30 = vld [vmem:[%s6419_s23 + $0xe8] sm:$0xff]  ;;  %vm11179_vm11 = vnez %v11178_v39  ;;  %v11190_v39 = vld [vmem:[#allocation88_spill] sm:$0xff] }
  0xf7   : > { %11139 = vst [vmem:[#allocation111_spill] sm:$0xff] %v7571_v61  ;;  %5617 = vrot.lane.b32.xlu1 %v5616_v21, %s6372_s12  ;;  %v5631_v14 = vpack.i.bf16 %v1274_v12, %v11147_v2  ;;  %v5646_v36 = vpack.i.bf16 %v6317_v30, %v6316_v55  ;;  %v11153_v12 = vld [vmem:[#allocation37_spill] sm:$0xff]  ;;  %v11160_v55 = vld [vmem:[#allocation52_spill] sm:$0xff]  ;;  %v11161_v30 = vld [vmem:[#allocation47_spill] sm:$0xff]  ;;  %v5049_v46 = vunpack.i.l.bf16 %v11190_v39 }
  0xf8   : > { %5612 = vrot.lane.b32.xlu0 %v5611_v32, %s6372_s12  ;;  %v5636_v32 = vpack.i.bf16 %v1276_v11, %v11058_v7  ;;  %v1280_v7 = vsel %vm11051_vm10, %v11150_v3, 0.0  ;;  %v11152_v11 = vld [vmem:[#allocation41_spill] sm:$0xff]  ;;  %vm11154_vm12 = vnez %v11153_v12  ;;  %vm11162_vm10 = vnez %v11161_v30 }
  0xf9   : > { %v7585_v38 = vpop.permute.xlu1 %5337  ;;  %v1278_v2 = vsel %vm11154_vm12, %v11152_v11, 0.0  ;;  %v892_v11 = vsel %vm11162_vm10, %v11160_v55, 0.0  ;;  %v906_v55 = vsel %vm11107_vm0, %v11174_v9, 0.0  ;;  %vm11186_vm0 = vnez %v11111_v18  ;;  %v11191_v30 = vld [vmem:[#allocation89_spill] sm:$0xff]  ;;  %v11268_v18 = vld [vmem:[#allocation38_spill] sm:$0xff] }
  0xfa   : > { %11145 = vst [vmem:[#allocation36_spill] sm:$0xff] %v7585_v38  ;;  %v7587_v21 = vpop.permute.xlu0 %5332  ;;  %v5050_v9 = vunpack.i.h.bf16 %v11190_v39  ;;  %v5065_v53 = vunpack.i.h.bf16 %v11191_v30  ;;  %v5074_v39 = vunpack.i.l.bf16 %v11197_v54 }
  0xfb   : > { %11146 = vst [vmem:[#allocation112_spill] sm:$0xff] %v7587_v21  ;;  %5627 = vrot.lane.b32.xlu1 %v5626_v23, %s6371_s11  ;;  %v5641_v23 = vpack.i.bf16 %v6319_v47, %v6318_v19  ;;  %v11158_v47 = vld [vmem:[#allocation48_spill] sm:$0xff] }
  0xfc   : > { %5622 = vrot.lane.b32.xlu0 %v5621_v41, %s6371_s11  ;;  %v894_v3 = vsel %vm11159_vm13, %v11158_v47, 0.0  ;;  %v11163_v41 = vld [vmem:[#allocation56_spill] sm:$0xff] }
  0xfd   : > { %v7593_v34 = vpop.permute.xlu1 %5347 }
  0xfe   : > { %11148 = vst [vmem:[#allocation35_spill] sm:$0xff] %v7593_v34  ;;  %v7595_v16 = vpop.permute.xlu0 %5342  ;;  %v11198_v34 = vld [vmem:[#allocation4_spill] sm:$0xff] }
  0xff   : > { %11149 = vst [vmem:[#allocation113_spill] sm:$0xff] %v7595_v16  ;;  %5637 = vrot.lane.b32.xlu1 %v5636_v32, %s6372_s12  ;;  %v5656_v32 = vpack.i.bf16 %v1280_v7, %v11064_v10  ;;  %v11169_v10 = vld [vmem:[#allocation60_spill] sm:$0xff]  ;;  %v5075_v16 = vunpack.i.h.bf16 %v11197_v54  ;;  %v5070_v21 = vunpack.i.h.bf16 %v11198_v34  ;;  %v5069_v38 = vunpack.i.l.bf16 %v11198_v34  ;;  %v11207_v34 = vld [vmem:[#allocation58_spill] sm:$0xff] }
 0x100   : > { %5632 = vrot.lane.b32.xlu0 %v5631_v14, %s6372_s12  ;;  %v11157_v14 = vld [vmem:[#allocation45_spill] sm:$0xff]  ;;  %v902_v7 = vsel %vm11170_vm14, %v11169_v10, 0.0  ;;  %v910_v10 = vsel %vm11180_vm7, %v11105_v24, 0.0  ;;  %vm11183_vm14 = vnez %v11182_v48  ;;  %v11187_v24 = vld [vmem:[#allocation82_spill] sm:$0xff]  ;;  %v11205_v54 = vld [vmem:[#allocation8_spill] sm:$0xff]  ;;  %v5165_v48 = vunpack.i.h.bf16 %v11268_v18 }
 0x101   : > { %v7609_v8 = vpop.permute.xlu1 %5357  ;;  %v5651_v19 = vpack.i.bf16 %v1278_v2, %v11157_v14  ;;  %v11171_v2 = vld [vmem:[#allocation62_spill] sm:$0xff]  ;;  %v11172_v14 = vld [vmem:[#allocation61_spill] sm:$0xff]  ;;  %vm11188_vm7 = vnez %v11187_v24  ;;  %v5080_v63 = vunpack.i.h.bf16 %v11205_v54  ;;  %v5079_v13 = vunpack.i.l.bf16 %v11205_v54 }
 0x102   : > { %11155 = vst [vmem:[#allocation43_spill] sm:$0xff] %v7609_v8  ;;  %v7611_v29 = vpop.permute.xlu0 %5352  ;;  %v11164_v8 = vld [vmem:[#allocation54_spill] sm:$0xff]  ;;  %vm11173_vm8 = vnez %v11172_v14  ;;  %v11184_v14 = vld [vmem:[#allocation87_spill] sm:$0xff]  ;;  %v11215_v54 = vld [vmem:[#allocation65_spill] sm:$0xff] }
 0x103   : > { %11156 = vst [vmem:[#allocation41_spill] sm:$0xff] %v7611_v29  ;;  %5647 = vrot.lane.b32.xlu1 %v5646_v36, %s6371_s11  ;;  %vm11165_vm12 = vnez %v11164_v8  ;;  %v11166_v36 = vld [vmem:[#allocation53_spill] sm:$0xff]  ;;  %v900_v47 = vsel %vm11173_vm8, %v11171_v2, 0.0  ;;  %v5059_v8 = vunpack.i.l.bf16 %v11184_v14  ;;  %v11195_v2 = vld [vmem:[#allocation50_spill] sm:$0xff] }
 0x104   : > { %5642 = vrot.lane.b32.xlu0 %v5641_v23, %s6371_s11  ;;  %v896_v12 = vsel %vm11165_vm12, %v11163_v41, 0.0  ;;  %v898_v23 = vsel %vm11168_vm9, %v11166_v36, 0.0  ;;  %v904_v36 = vsel %vm11179_vm11, %v11177_v17, 0.0  ;;  %v5060_v17 = vunpack.i.h.bf16 %v11184_v14 }
 0x105   : > { %v7638_v62 = vpop.permute.xlu1 %5367  ;;  %vm11189_vm11 = vnez %v10975_v57  ;;  %v5064_v14 = vunpack.i.l.bf16 %v11191_v30  ;;  %vm11196_vm9 = vcmask 31744  }
 0x106   : > { %11175 = vst [vmem:[#allocation45_spill] sm:$0xff] %v7638_v62  ;;  %v7640_v41 = vpop.permute.xlu0 %5362  ;;  %v7679_v62 = vsel %vm11196_vm9, %v11195_v2, %v5059_v8  ;;  %vm11199_vm5 = vmmov %vm11196_vm9 }
 0x107   : > { %11176 = vst [vmem:[#allocation48_spill] sm:$0xff] %v7640_v41  ;;  %5657 = vrot.lane.b32.xlu1 %v5656_v32, %s6372_s12  ;;  %v5055_v32 = vunpack.i.h.bf16 %v11192_v37  ;;  %v7685_v30 = vsel %vm11199_vm5, %v896_v12, %v5060_v17  ;;  %vm11202_vm9 = vmmov %vm11199_vm5 }
 0x108   : > { %5652 = vrot.lane.b32.xlu0 %v5651_v19, %s6372_s12  ;;  %v5054_v19 = vunpack.i.l.bf16 %v11192_v37  ;;  %v11200_v37 = vld [vmem:[#allocation9_spill] sm:$0xff]  ;;  %v7693_v8 = vsel %vm11202_vm9, 0.0, %v5049_v46  ;;  %vm11204_vm8 = vmmov %vm11199_vm5 }
 0x109   : > { %v7673_v29 = vpop.permute.xlu1 %5377  ;;  %v5085_v61 = vunpack.i.h.bf16 %v11200_v37  ;;  %11203 = vst [vmem:[#allocation53_spill] sm:$0xff] %v7693_v8  ;;  %v2201_v2 = vsel %vm11204_vm8, %v892_v11, %v5050_v9  ;;  %vm11206_vm6 = vmmov %vm11199_vm5 }
 0x10a   : > { %11193 = vst [vmem:[#allocation52_spill] sm:$0xff] %v7673_v29  ;;  %v7675_v41 = vpop.permute.xlu0 %5372  ;;  %v5084_v29 = vunpack.i.l.bf16 %v11200_v37  ;;  %v7699_v12 = vsel %vm11206_vm6, %v898_v23, %v5065_v53  ;;  %vm11208_vm13 = vmmov %vm11199_vm5 }
 0x10b   : > { %11194 = vst [vmem:[#allocation56_spill] sm:$0xff] %v7675_v41  ;;  %v11201_v41 = vld [vmem:[#allocation91_spill] sm:$0xff]  ;;  %v7703_v17 = vsel %vm11208_vm13, %v11207_v34, %v5064_v14  ;;  %vm11209_vm3 = vmmov %vm11199_vm5  ;;  %v11218_v14 = vld [vmem:[#allocation13_spill] sm:$0xff] }
 0x10c   : > { %5662 = vrot.lane.b32.xlu0 %v11201_v41, %s6371_s11  ;;  %v7706_v37 = vsel %vm11209_vm3, %v894_v3, %v5055_v32  ;;  %v11210_v41 = vld [vmem:[#allocation55_spill] sm:$0xff]  ;;  %vm11211_vm9 = vmmov %vm11209_vm3  ;;  %v5095_v3 = vunpack.i.h.bf16 %v11218_v14  ;;  %v11219_v32 = vld [vmem:[#allocation57_spill] sm:$0xff] }
 0x10d   : > { %v2202_v46 = vsel %vm11211_vm9, %v11210_v41, %v5054_v19  ;;  %v7710_v33 = vpop.permute.xlu1 %5387  ;;  %vm11214_vm8 = vmmov %vm11209_vm3  ;;  %v7727_v34 = vsel %vm11209_vm3, %v11219_v32, %v5069_v38  ;;  %v11221_v41 = vld [vmem:[#allocation71_spill] sm:$0xff] }
 0x10e   : > { %11212 = vst [vmem:[#allocation60_spill] sm:$0xff] %v7710_v33  ;;  %v7712_v11 = vpop.permute.xlu0 %5382  ;;  %v7715_v9 = vsel %vm11214_vm8, %v902_v7, %v5075_v16  ;;  %vm11216_vm6 = vmmov %vm11209_vm3  ;;  %v5094_v7 = vunpack.i.l.bf16 %v11218_v14  ;;  %v11227_v38 = vld [vmem:[#allocation11_spill] sm:$0xff] }
 0x10f   : > { %11213 = vst [vmem:[#allocation62_spill] sm:$0xff] %v7712_v11  ;;  %v7719_v53 = vsel %vm11216_vm6, %v11215_v54, %v5074_v39  ;;  %vm11217_vm5 = vmmov %vm11209_vm3  ;;  %v11223_v39 = vld [vmem:[#allocation86_spill] sm:$0xff]  ;;  %v5090_v32 = vunpack.i.h.bf16 %v11227_v38 }
 0x110   : > { %v7722_v23 = vsel %vm11217_vm5, %v900_v47, %v5070_v21  ;;  %vm11220_vm13 = vmmov %vm11209_vm3  ;;  %5667 = vrot.lane.b32.xlu0 %v11223_v39, %s6372_s12  ;;  %v11225_v47 = vld [vmem:[#allocation63_spill] sm:$0xff] }
 0x111   : > { %v7730_v19 = vsel %vm11220_vm13, %v906_v55, %v5085_v61  ;;  %vm11222_vm9 = vmmov %vm11209_vm3  ;;  %v5089_v61 = vunpack.i.l.bf16 %v11227_v38  ;;  %v11228_v55 = vld [vmem:[#allocation10_spill] sm:$0xff]  ;;  %v7752_v39 = vpop.permute.xlu1 %5397  ;;  %v11234_v38 = vld [vmem:[#allocation19_spill] sm:$0xff] }
 0x112   : > { %v7734_v16 = vsel %vm11222_vm9, %v11221_v41, %v5084_v29  ;;  %vm11224_vm5 = vmmov %vm11209_vm3  ;;  %v5105_v11 = vunpack.i.h.bf16 %v11228_v55  ;;  %v5104_v29 = vunpack.i.l.bf16 %v11228_v55  ;;  %v11229_v41 = vld [vmem:[#allocation18_spill] sm:$0xff]  ;;  %11230 = vst [vmem:[#allocation66_spill] sm:$0xff] %v7752_v39  ;;  %v5110_v59 = vunpack.i.h.bf16 %v11234_v38 }
 0x113   : > { %v7740_v21 = vsel %vm11224_vm5, %v904_v36, %v5080_v63  ;;  %vm11226_vm8 = vmmov %vm11209_vm3  ;;  %v5100_v14 = vunpack.i.h.bf16 %v11229_v41  ;;  %v5099_v33 = vunpack.i.l.bf16 %v11229_v41  ;;  %v7754_v63 = vpop.permute.xlu0 %5392  ;;  %v2218_v55 = vsel %vm11209_vm3, %v11235_v52, %v5094_v7 }
 0x114   : > { %v7744_v54 = vsel %vm11226_vm8, %v11225_v47, %v5079_v13  ;;  %11231 = vst [vmem:[#allocation68_spill] sm:$0xff] %v7754_v63  ;;  %vm11232_vm6 = vmmov %vm11209_vm3  ;;  %v11233_v13 = vld [vmem:[#allocation15_spill] sm:$0xff]  ;;  %v5109_v22 = vunpack.i.l.bf16 %v11234_v38  ;;  %v5119_v41 = vunpack.i.l.bf16 %v11236_v45  ;;  %v5125_v39 = vunpack.i.h.bf16 %v11237_v5  ;;  %v11240_v63 = vld [vmem:[#allocation69_spill] sm:$0xff] }
 0x115   : > { %v7757_v36 = vsel %vm11232_vm6, %v910_v10, %v5095_v3  ;;  %v5115_v47 = vunpack.i.h.bf16 %v11233_v13  ;;  %v5114_v60 = vunpack.i.l.bf16 %v11233_v13  ;;  %v11238_v10 = vsel %vm11183_vm14, %v11181_v15, 0.0  ;;  %vm11239_vm13 = vmmov %vm11209_vm3  ;;  %v11248_v5 = vld [vmem:[#allocation74_spill] sm:$0xff] }
 0x116   : > { %v7772_v3 = vsel %vm11239_vm13, %v11238_v10, %v5090_v32  ;;  %vm11241_vm9 = vmmov %vm11209_vm3  ;;  %v5129_v52 = vunpack.i.l.bf16 %v11242_v40  ;;  %v11243_v7 = vsel %vm11119_vm15, %v11113_v26, 0.0  ;;  %v11246_v32 = vsel %vm11186_vm0, %v11185_v28, 0.0  ;;  %v7800_v10 = vpop.permute.xlu1 %5407 }
 0x117   : > { %v2216_v13 = vsel %vm11241_vm9, %v11240_v63, %v5089_v61  ;;  %vm11244_vm5 = vmmov %vm11209_vm3  ;;  %v7798_v63 = vsel %vm11209_vm3, %v11248_v5, %v5099_v33  ;;  %v7802_v26 = vpop.permute.xlu0 %5402  ;;  %v11252_v33 = vsel %vm11189_vm11, %v7087_v44, 0.0  ;;  %v11263_v5 = vld [vmem:[#allocation32_spill] sm:$0xff]  ;;  %vm11436_vm11 = vcmask 1046528  }
 0x118   : > { %v7783_v38 = vsel %vm11244_vm5, %v11243_v7, %v5105_v11  ;;  %vm11245_vm8 = vmmov %vm11209_vm3 }
 0x119   : > { %v7787_v15 = vsel %vm11245_vm8, %v7068_v1, %v5104_v29  ;;  %vm11247_vm6 = vmmov %vm11209_vm3  ;;  %v11249_v1 = vsel %vm11188_vm7, %v7084_v42, 0.0 }
 0x11a   : > { %v7794_v61 = vsel %vm11247_vm6, %v11246_v32, %v5100_v14  ;;  %vm11250_vm13 = vmmov %vm11209_vm3  ;;  %v5130_v14 = vunpack.i.h.bf16 %v11242_v40 }
 0x11b   : > { %v7809_v11 = vsel %vm11250_vm13, %v11249_v1, %v5115_v47  ;;  %vm11251_vm9 = vmmov %vm11209_vm3  ;;  %v5150_v1 = vunpack.i.h.bf16 %v11263_v5  ;;  %v7851_v24 = vpop.permute.xlu0 %5412 }
 0x11c   : > { %v7813_v28 = vsel %vm11251_vm9, %v7102_v20, %v5114_v60  ;;  %vm11253_vm5 = vmmov %vm11209_vm3  ;;  %v11257_v60 = vld [vmem:[#allocation28_spill] sm:$0xff] }
 0x11d   : > { %v7820_v29 = vsel %vm11253_vm5, %v11252_v33, %v5110_v59  ;;  %vm11254_vm8 = vmmov %vm11209_vm3  ;;  %v5135_v47 = vunpack.i.h.bf16 %v11257_v60  ;;  %v7849_v33 = vpop.permute.xlu1 %5417 }
 0x11e   : > { %v7825_v7 = vsel %vm11254_vm8, %v7056_v50, %v5109_v22  ;;  %vm11255_vm6 = vmmov %vm11209_vm3  ;;  %vm11256_vm3 = vcmask 64512   ;;  %v5134_v50 = vunpack.i.l.bf16 %v11257_v60  ;;  %v11261_v22 = vld [vmem:[#allocation26_spill] sm:$0xff] }
 0x11f   : > { %v7829_v42 = vsel %vm11255_vm6, %v7096_v51, %v5119_v41  ;;  %v7833_v20 = vsel %vm11256_vm3, %v7693_v8, %v5125_v39  ;;  %vm11258_vm13 = vmmov %vm11256_vm3  ;;  %v5140_v59 = vunpack.i.h.bf16 %v11261_v22  ;;  %v5139_v51 = vunpack.i.l.bf16 %v11261_v22  ;;  %v11262_v41 = vld [vmem:[#allocation33_spill] sm:$0xff] }
 0x120   : > { %v7838_v44 = vsel %vm11258_vm13, %v7693_v8, %v5124_v6  ;;  %vm11260_vm9 = vmmov %vm11256_vm3  ;;  %v5145_v32 = vunpack.i.h.bf16 %v11262_v41  ;;  %v5144_v39 = vunpack.i.l.bf16 %v11262_v41  ;;  %v5160_v41 = vunpack.i.h.bf16 %v11267_v58 }
 0x121   : > { %11259 = vst [vmem:[#allocation73_spill] sm:$0xff] %v7838_v44  ;;  %v7841_v40 = vsel %vm11260_vm9, %v2201_v2, %v5129_v52  ;;  %vm11264_vm5 = vmmov %vm11256_vm3  ;;  %v5149_v2 = vunpack.i.l.bf16 %v11263_v5  ;;  %v11265_v52 = vld [vmem:[#allocation30_spill] sm:$0xff]  ;;  %v5159_v8 = vunpack.i.l.bf16 %v11267_v58  ;;  %v11270_v5 = vld [vmem:[#allocation40_spill] sm:$0xff]  ;;  %vm10749_vm13 = vcmask 97280  }
 0x122   : > { %v2235_v6 = vsel %vm11264_vm5, %v2202_v46, %v5130_v14  ;;  %v5155_v60 = vunpack.i.h.bf16 %v11265_v52  ;;  %v5154_v57 = vunpack.i.l.bf16 %v11265_v52  ;;  %vm11266_vm8 = vmmov %vm11256_vm3  ;;  %v7870_v46 = vsel %vm11256_vm3, %v7703_v17, %v5140_v59 }
 0x123   : > { %v7859_v22 = vsel %vm11266_vm8, %v7679_v62, %v5135_v47  ;;  %vm11269_vm6 = vmmov %vm11256_vm3  ;;  %v5164_v14 = vunpack.i.l.bf16 %v11268_v18  ;;  %v5170_v52 = vunpack.i.h.bf16 %v11270_v5  ;;  %v7888_v47 = vpop.permute.xlu1 %5427  ;;  %v7890_v18 = vpop.permute.xlu0 %5422 }
 0x124   : > { %v7866_v45 = vsel %vm11269_vm6, %v7706_v37, %v5134_v50  ;;  %vm11271_vm9 = vmmov %vm11256_vm3  ;;  %11275 = vst [vmem:[#allocation87_spill] sm:$0xff] %v7888_v47  ;;  %v7894_v50 = vsel %vm11256_vm3, %v7722_v23, %v5149_v2  ;;  %v7914_v23 = vsel %vm11256_vm3, %v2216_v13, %v5165_v48  ;;  %v11286_v13 = vld [vmem:[#allocation93_spill] sm:$0xff] }
 0x125   : > { %v2238_v62 = vsel %vm11271_vm9, %v7685_v30, %v5139_v51  ;;  %vm11272_vm5 = vmmov %vm11256_vm3  ;;  %11276 = vst [vmem:[#allocation79_spill] sm:$0xff] %v7890_v18  ;;  %v11281_v51 = vld [vmem:[#allocation46_spill] sm:$0xff]  ;;  %v5190_v2 = vunpack.i.h.bf16 %v11286_v13 }
 0x126   : > { %v7878_v58 = vsel %vm11272_vm5, %v7727_v34, %v5145_v32  ;;  %vm11273_vm8 = vmmov %vm11256_vm3  ;;  %v5169_v34 = vunpack.i.l.bf16 %v11270_v5 }
 0x127   : > { %v7882_v37 = vsel %vm11273_vm8, %v7699_v12, %v5144_v39  ;;  %vm11274_vm6 = vmmov %vm11256_vm3 }
 0x128   : > { %v7886_v17 = vsel %vm11274_vm6, %v7719_v53, %v5150_v1  ;;  %vm11277_vm9 = vmmov %vm11256_vm3 }
 0x129   : > { %v7898_v30 = vsel %vm11277_vm9, %v7744_v54, %v5155_v60  ;;  %vm11278_vm5 = vmmov %vm11256_vm3  ;;  %v5175_v54 = vunpack.i.h.bf16 %v11281_v51  ;;  %v7930_v60 = vpop.permute.xlu1 %5437 }
 0x12a   : > { %v7902_v12 = vsel %vm11278_vm5, %v7715_v9, %v5154_v57  ;;  %vm11279_vm8 = vmmov %vm11256_vm3  ;;  %v5174_v9 = vunpack.i.l.bf16 %v11281_v51  ;;  %11287 = vst [vmem:[#allocation88_spill] sm:$0xff] %v7930_v60  ;;  %v5205_v60 = vunpack.i.h.bf16 %v7419_v56 }
 0x12b   : > { %v7907_v53 = vsel %vm11279_vm8, %v7734_v16, %v5160_v41  ;;  %vm11280_vm6 = vmmov %vm11256_vm3  ;;  %v11284_v16 = vld [vmem:[#allocation92_spill] sm:$0xff]  ;;  %v7932_v41 = vpop.permute.xlu0 %5432 }
 0x12c   : > { %v7911_v59 = vsel %vm11280_vm6, %v7740_v21, %v5159_v8  ;;  %vm11282_vm9 = vmmov %vm11256_vm3  ;;  %v5180_v39 = vunpack.i.h.bf16 %v11284_v16  ;;  %v5179_v1 = vunpack.i.l.bf16 %v11284_v16  ;;  %v11285_v8 = vld [vmem:[#allocation3_spill] sm:$0xff]  ;;  %11288 = vst [vmem:[#allocation89_spill] sm:$0xff] %v7932_v41  ;;  %v5210_v16 = vunpack.i.h.bf16 %v7417_v35 }
 0x12d   : > { %v7919_v32 = vsel %vm11282_vm9, %v7730_v19, %v5164_v14  ;;  %vm11283_vm5 = vmmov %vm11256_vm3  ;;  %v5185_v21 = vunpack.i.h.bf16 %v11285_v8  ;;  %v5184_v48 = vunpack.i.l.bf16 %v11285_v8  ;;  %v11290_v14 = vld [vmem:[#allocation77_spill] sm:$0xff]  ;;  %v5209_v8 = vunpack.i.l.bf16 %v7417_v35 }
 0x12e   : > { %v7922_v57 = vsel %vm11283_vm5, %v2218_v55, %v5170_v52  ;;  %vm11289_vm8 = vmmov %vm11256_vm3  ;;  %v5189_v55 = vunpack.i.l.bf16 %v11286_v13  ;;  %v5195_v5 = vunpack.i.h.bf16 %v11290_v14  ;;  %v5194_v52 = vunpack.i.l.bf16 %v11290_v14  ;;  %v11293_v13 = vld [vmem:[#allocation95_spill] sm:$0xff] }
 0x12f   : > { %v2250_v19 = vsel %vm11289_vm8, %v7772_v3, %v5169_v34  ;;  %vm11291_vm6 = vmmov %vm11256_vm3  ;;  %v7948_v41 = vsel %vm11256_vm3, %v7757_v36, %v5174_v9  ;;  %v5204_v34 = vunpack.i.l.bf16 %v7419_v56  ;;  %v5219_v14 = vunpack.i.l.bf16 %v11293_v13  ;;  %v7972_v56 = vpop.permute.xlu0 %5442 }
 0x130   : > { %v7941_v51 = vsel %vm11291_vm6, %v7798_v63, %v5175_v54  ;;  %vm11292_vm9 = vmmov %vm11256_vm3  ;;  %v7968_v36 = vsel %vm11256_vm3, %v7813_v28, %v5190_v2  ;;  %v7989_v28 = vsel %vm10749_vm13, %v7841_v40, %v5209_v8  ;;  %v11301_v40 = vld [vmem:[#allocation97_spill] sm:$0xff]  ;;  %v5240_v8 = vunpack.i.h.bf16 %v7459_v25 }
 0x131   : > { %v7952_v3 = vsel %vm11292_vm9, %v7787_v15, %v5180_v39  ;;  %vm11294_vm5 = vmmov %vm11256_vm3  ;;  %v7970_v15 = vpop.permute.xlu1 %5447  ;;  %v7992_v39 = vsel %vm10749_vm13, %v2235_v6, %v5210_v16  ;;  %v5229_v2 = vunpack.i.l.bf16 %v11301_v40  ;;  %v5230_v6 = vunpack.i.h.bf16 %v11301_v40 }
 0x132   : > { %v2254_v63 = vsel %vm11294_vm5, %v7794_v61, %v5179_v1  ;;  %vm11295_vm8 = vmmov %vm11256_vm3  ;;  %v11300_v1 = vld [vmem:[#allocation96_spill] sm:$0xff]  ;;  %v5249_v40 = vunpack.i.l.bf16 %v7475_v27 }
 0x133   : > { %v7960_v35 = vsel %vm11295_vm8, %v7825_v7, %v5185_v21  ;;  %vm11296_vm6 = vmmov %vm11256_vm3  ;;  %v5220_v7 = vunpack.i.h.bf16 %v11293_v13  ;;  %v8001_v21 = vsel %vm10749_vm13, %v7838_v44, %v5204_v34  ;;  %v8014_v16 = vpop.permute.xlu0 %5452  ;;  %v5235_v34 = vunpack.i.h.bf16 %v7461_v49 }
 0x134   : > { %v7964_v54 = vsel %vm11296_vm6, %v7783_v38, %v5184_v48  ;;  %vm11297_vm9 = vmmov %vm11256_vm3  ;;  %v5214_v48 = vunpack.i.l.bf16 %v11300_v1  ;;  %v5234_v13 = vunpack.i.l.bf16 %v7461_v49  ;;  %vm10756_vm6 = vcmask 130048  }
 0x135   : > { %v7976_v9 = vsel %vm11297_vm9, %v7820_v29, %v5189_v55  ;;  %vm11298_vm5 = vmmov %vm11256_vm3  ;;  %v7996_v29 = vsel %vm10749_vm13, %v7833_v20, %v5205_v60  ;;  %v11302_v55 = vld [vmem:[#allocation98_spill] sm:$0xff]  ;;  %v5239_v60 = vunpack.i.l.bf16 %v7459_v25  ;;  %v8034_v25 = vsel %vm10749_vm13, %v7894_v50, %v5229_v2 }
 0x136   : > { %v7980_v61 = vsel %vm11298_vm5, %v7829_v42, %v5195_v5  ;;  %vm11299_vm8 = vmmov %vm11256_vm3  ;;  %v5215_v42 = vunpack.i.h.bf16 %v11300_v1  ;;  %v5225_v5 = vunpack.i.h.bf16 %v11302_v55  ;;  %v5224_v20 = vunpack.i.l.bf16 %v11302_v55 }
 0x137   : > { %v7984_v38 = vsel %vm11299_vm8, %v7809_v11, %v5194_v52  ;;  %v8004_v11 = vsel %vm10749_vm13, %v2238_v62, %v5219_v14  ;;  %v8012_v52 = vpop.permute.xlu1 %5457  ;;  %v8018_v62 = vsel %vm10749_vm13, %v7870_v46, %v5220_v7  ;;  %v5250_v1 = vunpack.i.h.bf16 %v7475_v27  ;;  %vm11437_vm15 = vmmov %vm11436_vm11 }
 0x138   : > { %v8025_v14 = vsel %vm10749_vm13, %v7859_v22, %v5215_v42  ;;  %v5245_v55 = vunpack.i.h.bf16 %v7477_v31  ;;  %v2269_v46 = vsel %vm10749_vm13, %v7866_v45, %v5214_v48  ;;  %v5244_v49 = vunpack.i.l.bf16 %v7477_v31  ;;  %v8056_v31 = vpop.permute.xlu0 %5462 }
 0x139   : > { %v5259_v7 = vunpack.i.l.bf16 %v7489_v43  ;;  %v8040_v22 = vsel %vm10749_vm13, %v7886_v17, %v5230_v6  ;;  %v8044_v27 = vsel %vm10749_vm13, %v7878_v58, %v5225_v5  ;;  %v8048_v42 = vsel %vm10749_vm13, %v7882_v37, %v5224_v20  ;;  %v11303_v5 = vld [vmem:[#allocation99_spill] sm:$0xff] }
 0x13a   : > { %v8052_v45 = vsel %vm10749_vm13, %v7911_v59, %v5239_v60  ;;  %v8060_v17 = vsel %vm10749_vm13, %v7907_v53, %v5240_v8  ;;  %v8064_v58 = vsel %vm10749_vm13, %v7898_v30, %v5235_v34  ;;  %v8068_v37 = vsel %vm10749_vm13, %v7902_v12, %v5234_v13  ;;  %v11304_v60 = vld [vmem:[#allocation101_spill] sm:$0xff] }
 0x13b   : > { %v8054_v50 = vpop.permute.xlu1 %5467  ;;  %v5260_v48 = vunpack.i.h.bf16 %v7489_v43  ;;  %v8072_v59 = vsel %vm10749_vm13, %v2250_v19, %v5249_v40  ;;  %v8076_v2 = vsel %vm10749_vm13, %v7922_v57, %v5250_v1  ;;  %v8080_v53 = vsel %vm10749_vm13, %v7914_v23, %v5245_v55  ;;  %v11306_v55 = vld [vmem:[#allocation103_spill] sm:$0xff] }
 0x13c   : > { %v5255_v30 = vunpack.i.h.bf16 %v7491_v0  ;;  %v8085_v6 = vsel %vm10749_vm13, %v7919_v32, %v5244_v49  ;;  %v8088_v12 = vsel %vm10749_vm13, %v2254_v63, %v5259_v7  ;;  %v5254_v43 = vunpack.i.l.bf16 %v7491_v0  ;;  %v8098_v13 = vpop.permute.xlu0 %5472  ;;  %v11305_v63 = vld [vmem:[#allocation102_spill] sm:$0xff] }
 0x13d   : > { %v5269_v19 = vunpack.i.l.bf16 %v7497_v4  ;;  %v5270_v57 = vunpack.i.h.bf16 %v7497_v4  ;;  %v5265_v20 = vunpack.i.h.bf16 %v11303_v5  ;;  %v5264_v23 = vunpack.i.l.bf16 %v11303_v5  ;;  %v11307_v5 = vld [vmem:[#allocation104_spill] sm:$0xff] }
 0x13e   : > { %v5275_v8 = vunpack.i.h.bf16 %v11304_v60  ;;  %v8102_v32 = vsel %vm10749_vm13, %v7952_v3, %v5260_v48  ;;  %v5274_v0 = vunpack.i.l.bf16 %v11304_v60  ;;  %v5290_v1 = vunpack.i.h.bf16 %v11305_v63 }
 0x13f   : > { %v8096_v34 = vpop.permute.xlu1 %5477  ;;  %v5289_v4 = vunpack.i.l.bf16 %v11305_v63  ;;  %v8109_v40 = vsel %vm10749_vm13, %v7941_v51, %v5255_v30  ;;  %v5285_v49 = vunpack.i.h.bf16 %v11306_v55  ;;  %v5284_v7 = vunpack.i.l.bf16 %v11306_v55  ;;  %v11308_v63 = vld [vmem:[#allocation105_spill] sm:$0xff] }
 0x140   : > { %v5299_v44 = vunpack.i.l.bf16 %v11307_v5  ;;  %v2285_v3 = vsel %vm10749_vm13, %v7948_v41, %v5254_v43  ;;  %v8118_v48 = vsel %vm10749_vm13, %v7976_v9, %v5269_v19  ;;  %v5300_v60 = vunpack.i.h.bf16 %v11307_v5  ;;  %v8140_v43 = vpop.permute.xlu0 %5482 }
 0x141   : > { %v5294_v18 = vunpack.i.l.bf16 %v11308_v63  ;;  %v8124_v51 = vsel %vm10749_vm13, %v7968_v36, %v5270_v57  ;;  %v8128_v30 = vsel %vm10749_vm13, %v7960_v35, %v5265_v20  ;;  %v8132_v55 = vsel %vm10749_vm13, %v7964_v54, %v5264_v23 }
 0x142   : > { %11309 = vst [vmem:[#allocation90_spill] sm:$0xff] %v8128_v30  ;;  %v8136_v41 = vsel %vm10749_vm13, %v7980_v61, %v5275_v8  ;;  %v8144_v36 = vsel %vm10749_vm13, %v7984_v38, %v5274_v0  ;;  %v8148_v35 = vsel %vm10756_vm6, %v7989_v28, %v5289_v4  ;;  %v8152_v54 = vsel %vm10756_vm6, %v7992_v39, %v5290_v1  ;;  %v11312_v28 = vld [vmem:[#allocation106_spill] sm:$0xff]  ;;  %v11313_v8 = vld [vmem:[#allocation107_spill] sm:$0xff]  ;;  %v11314_v1 = vld [vmem:[#allocation108_spill] sm:$0xff] }
 0x143   : > { %11310 = vst [vmem:[#allocation50_spill] sm:$0xff] %v8136_v41  ;;  %v8138_v9 = vpop.permute.xlu1 %5487  ;;  %11311 = vst [vmem:[#allocation6_spill] sm:$0xff] %v8144_v36  ;;  %v5295_v19 = vunpack.i.h.bf16 %v11308_v63  ;;  %v8157_v61 = vsel %vm10756_vm6, %v8001_v21, %v5284_v7  ;;  %v8161_v57 = vsel %vm10756_vm6, %v7996_v29, %v5285_v49  ;;  %v8165_v38 = vsel %vm10756_vm6, %v8004_v11, %v5299_v44  ;;  %v11315_v11 = vld [vmem:[#allocation109_spill] sm:$0xff]  ;;  %v11319_v36 = vld [vmem:[#allocation36_spill] sm:$0xff] }
 0x144   : > { %v5309_v20 = vunpack.i.l.bf16 %v11312_v28  ;;  %v8170_v39 = vsel %vm10756_vm6, %v8018_v62, %v5300_v60  ;;  %v8173_v23 = vsel %vm10756_vm6, %v2269_v46, %v5294_v18  ;;  %v5310_v21 = vunpack.i.h.bf16 %v11312_v28  ;;  %v8183_v5 = vpop.permute.xlu0 %5492  ;;  %v11317_v46 = vld [vmem:[#allocation110_spill] sm:$0xff] }
 0x145   : > { %v5304_v0 = vunpack.i.l.bf16 %v11313_v8  ;;  %v5305_v29 = vunpack.i.h.bf16 %v11313_v8  ;;  %v5320_v4 = vunpack.i.h.bf16 %v11314_v1  ;;  %v5319_v44 = vunpack.i.l.bf16 %v11314_v1  ;;  %v11318_v8 = vld [vmem:[#allocation111_spill] sm:$0xff] }
 0x146   : > { %v5314_v49 = vunpack.i.l.bf16 %v11315_v11  ;;  %v8187_v18 = vsel %vm10756_vm6, %v8025_v14, %v5295_v19  ;;  %v5315_v62 = vunpack.i.h.bf16 %v11315_v11  ;;  %v5330_v60 = vunpack.i.h.bf16 %v11317_v46 }
 0x147   : > { %v8181_v7 = vpop.permute.xlu1 %5497  ;;  %v5329_v63 = vunpack.i.l.bf16 %v11317_v46  ;;  %vm10755_vm3 = vcmask 162816   ;;  %v2308_v28 = vsel %vm10756_vm6, %v8034_v25, %v5309_v20  ;;  %v5325_v1 = vunpack.i.h.bf16 %v11318_v8 }
 0x148   : > { %11316 = vst [vmem:[#allocation4_spill] sm:$0xff] %v8181_v7  ;;  %v5324_v41 = vunpack.i.l.bf16 %v11318_v8  ;;  %v5339_v30 = vunpack.i.l.bf16 %v11319_v36  ;;  %v2309_v14 = vsel %vm10756_vm6, %v8040_v22, %v5310_v21  ;;  %v2306_v19 = vsel %vm10756_vm6, %v8048_v42, %v5304_v0  ;;  %v11320_v7 = vld [vmem:[#allocation112_spill] sm:$0xff] }
 0x149   : > { %v5340_v11 = vunpack.i.h.bf16 %v11319_v36  ;;  %v5334_v46 = vunpack.i.l.bf16 %v11320_v7  ;;  %v8205_v47 = vsel %vm10756_vm6, %v8044_v27, %v5305_v29  ;;  %v8209_v25 = vsel %vm10756_vm6, %v8052_v45, %v5319_v44  ;;  %v8221_v36 = vpop.permute.xlu0 %5502 }
 0x14a   : > { %v8213_v20 = vsel %vm10756_vm6, %v8060_v17, %v5320_v4  ;;  %v8217_v22 = vsel %vm10756_vm6, %v8068_v37, %v5314_v49  ;;  %11322 = vst [vmem:[#allocation91_spill] sm:$0xff] %v8221_v36  ;;  %v8225_v27 = vsel %vm10756_vm6, %v8064_v58, %v5315_v62  ;;  %v8229_v45 = vsel %vm10756_vm6, %v8072_v59, %v5329_v63  ;;  %v11323_v59 = vld [vmem:[#allocation35_spill] sm:$0xff]  ;;  %v11329_v63 = vld [vmem:[#allocation52_spill] sm:$0xff] }
 0x14b   : > { %v8219_v42 = vpop.permute.xlu1 %5507  ;;  %v8233_v17 = vsel %vm10756_vm6, %v8076_v2, %v5330_v60  ;;  %v5335_v21 = vunpack.i.h.bf16 %v11320_v7  ;;  %v8238_v37 = vsel %vm10756_vm6, %v8085_v6, %v5324_v41  ;;  %v8242_v0 = vsel %vm10756_vm6, %v8080_v53, %v5325_v1  ;;  %v11324_v41 = vld [vmem:[#allocation113_spill] sm:$0xff] }
 0x14c   : > { %11321 = vst [vmem:[#allocation9_spill] sm:$0xff] %v8219_v42  ;;  %v8246_v58 = vsel %vm10756_vm6, %v8088_v12, %v5339_v30  ;;  %v5349_v29 = vunpack.i.l.bf16 %v11323_v59  ;;  %v8251_v2 = vsel %vm10756_vm6, %v8102_v32, %v5340_v11  ;;  %v8254_v4 = vsel %vm10756_vm6, %v2285_v3, %v5334_v46  ;;  %v11325_v53 = vld [vmem:[#allocation45_spill] sm:$0xff]  ;;  %v11326_v12 = vld [vmem:[#allocation48_spill] sm:$0xff]  ;;  %v11335_v42 = vld [vmem:[#allocation62_spill] sm:$0xff] }
 0x14d   : > { %v5350_v6 = vunpack.i.h.bf16 %v11323_v59  ;;  %v5344_v44 = vunpack.i.l.bf16 %v11324_v41  ;;  %vm10754_vm9 = vcmask 195584   ;;  %v5370_v49 = vunpack.i.h.bf16 %v11325_v53  ;;  %v8264_v32 = vpop.permute.xlu0 %5512  ;;  %v11330_v11 = vld [vmem:[#allocation56_spill] sm:$0xff] }
 0x14e   : > { %v5369_v7 = vunpack.i.l.bf16 %v11325_v53  ;;  %v5365_v30 = vunpack.i.h.bf16 %v11326_v12  ;;  %v5364_v62 = vunpack.i.l.bf16 %v11326_v12  ;;  %11328 = vst [vmem:[#allocation58_spill] sm:$0xff] %v8264_v32  ;;  %v8268_v3 = vsel %vm10756_vm6, %v8109_v40, %v5335_v21 }
 0x14f   : > { %v8262_v60 = vpop.permute.xlu1 %5517  ;;  %v5380_v8 = vunpack.i.h.bf16 %v11329_v63  ;;  %v5379_v1 = vunpack.i.l.bf16 %v11329_v63  ;;  %v5374_v46 = vunpack.i.l.bf16 %v11330_v11  ;;  %vm10753_vm5 = vcmask 228352  }
 0x150   : > { %11327 = vst [vmem:[#allocation8_spill] sm:$0xff] %v8262_v60  ;;  %v8275_v59 = vsel %vm10756_vm6, %v8118_v48, %v5349_v29  ;;  %v5375_v12 = vunpack.i.h.bf16 %v11330_v11  ;;  %v11332_v60 = vld [vmem:[#allocation60_spill] sm:$0xff]  ;;  %v8282_v40 = vsel %vm10756_vm6, %v8124_v51, %v5350_v6  ;;  %v8286_v21 = vsel %vm10756_vm6, %v8132_v55, %v5344_v44 }
 0x151   : > { %11331 = vst [vmem:[#allocation55_spill] sm:$0xff] %v8275_v59  ;;  %v5389_v32 = vunpack.i.l.bf16 %v11332_v60  ;;  %11333 = vst [vmem:[#allocation65_spill] sm:$0xff] %v8282_v40  ;;  %v5390_v63 = vunpack.i.h.bf16 %v11332_v60  ;;  %v5384_v36 = vunpack.i.l.bf16 %v11335_v42  ;;  %v2333_v48 = vsel %vm10755_vm3, %v8148_v35, %v5369_v7  ;;  %v5523_v53 = vpop.permute.xlu0 %5522 }
 0x152   : > { %11334 = vst [vmem:[#allocation13_spill] sm:$0xff] %v8286_v21  ;;  %v2334_v29 = vsel %vm10755_vm3, %v8152_v54, %v5370_v49  ;;  %v2331_v11 = vsel %vm10755_vm3, %v8157_v61, %v5364_v62  ;;  %v2332_v51 = vsel %vm10755_vm3, %v8161_v57, %v5365_v30  ;;  %vm10752_vm8 = vcmask 261120  }
 0x153   : > { %v5528_v6 = vpop.permute.xlu1 %5527  ;;  %v2337_v55 = vsel %vm10755_vm3, %v8165_v38, %v5379_v1  ;;  %v8302_v44 = vsel %vm10755_vm3, %v8170_v39, %v5380_v8  ;;  %v2335_v35 = vsel %vm10755_vm3, %v8173_v23, %v5374_v46  ;;  %v5385_v54 = vunpack.i.h.bf16 %v11335_v42  ;;  %v11337_v8 = vld [vmem:[#allocation68_spill] sm:$0xff] }
 0x154   : > { %v2336_v61 = vsel %vm10755_vm3, %v8187_v18, %v5375_v12  ;;  %v8310_v57 = vsel %vm10755_vm3, %v2308_v28, %v5389_v32  ;;  %v5450_v49 = vunpack.i.h.bf16 %v7970_v15  ;;  %v5449_v7 = vunpack.i.l.bf16 %v7970_v15 }
 0x155   : > { %v8315_v38 = vsel %vm10755_vm3, %v2309_v14, %v5390_v63  ;;  %v8318_v39 = vsel %vm10755_vm3, %v2306_v19, %v5384_v36  ;;  %v5445_v23 = vunpack.i.h.bf16 %v7972_v56  ;;  %v5444_v42 = vunpack.i.l.bf16 %v7972_v56  ;;  %v5533_v32 = vpop.permute.xlu0 %5532  ;;  %v11336_v14 = vld [vmem:[#allocation66_spill] sm:$0xff] }
 0x156   : > { %vm10751_vm13 = vcmask 293888   ;;  %v5455_v18 = vunpack.i.h.bf16 %v8014_v16  ;;  %v5454_v28 = vunpack.i.l.bf16 %v8014_v16  ;;  %v5530_v30 = vunpack.i.h.bf16 %v5528_v6 }
 0x157   : > { %v5529_v62 = vunpack.i.l.bf16 %v5528_v6  ;;  %v5538_v60 = vpop.permute.xlu1 %5537  ;;  %v8326_v15 = vsel %vm10755_vm3, %v8205_v47, %v5385_v54  ;;  %v5400_v19 = vunpack.i.h.bf16 %v11336_v14  ;;  %v5399_v36 = vunpack.i.l.bf16 %v11336_v14 }
 0x158   : > { %v2366_v56 = vsel %vm10754_vm9, %v2333_v48, %v5449_v7  ;;  %v2367_v46 = vsel %vm10754_vm9, %v2334_v29, %v5450_v49  ;;  %v5525_v12 = vunpack.i.h.bf16 %v5523_v53  ;;  %v5524_v16 = vunpack.i.l.bf16 %v5523_v53 }
 0x159   : > { %v5460_v63 = vunpack.i.h.bf16 %v8012_v52  ;;  %v5459_v6 = vunpack.i.l.bf16 %v8012_v52  ;;  %v2364_v21 = vsel %vm10754_vm9, %v2331_v11, %v5444_v42  ;;  %v2365_v47 = vsel %vm10754_vm9, %v2332_v51, %v5445_v23  ;;  %v5543_v29 = vpop.permute.xlu0 %5542 }
 0x15a   : > { %v2368_v54 = vsel %vm10754_vm9, %v2335_v35, %v5454_v28  ;;  %v2369_v14 = vsel %vm10754_vm9, %v2336_v61, %v5455_v18  ;;  %v2399_v1 = vsel %vm10753_vm5, %v2366_v56, %v5529_v62  ;;  %v2400_v48 = vsel %vm10753_vm5, %v2367_v46, %v5530_v30 }
 0x15b   : > { %v5548_v7 = vpop.permute.xlu1 %5547  ;;  %v5545_v40 = vunpack.i.h.bf16 %v5543_v29  ;;  %v5544_v59 = vunpack.i.l.bf16 %v5543_v29  ;;  %v5535_v41 = vunpack.i.h.bf16 %v5533_v32  ;;  %v5534_v52 = vunpack.i.l.bf16 %v5533_v32 }
 0x15c   : > { %v5550_v49 = vunpack.i.h.bf16 %v5548_v7  ;;  %v5549_v53 = vunpack.i.l.bf16 %v5548_v7  ;;  %v2397_v11 = vsel %vm10753_vm5, %v2364_v21, %v5524_v16  ;;  %v2398_v51 = vsel %vm10753_vm5, %v2365_v47, %v5525_v12 }
 0x15d   : > { %v2430_v23 = vsel %vm10752_vm8, %v2397_v11, %v5544_v59  ;;  %v2431_v42 = vsel %vm10752_vm8, %v2398_v51, %v5545_v40  ;;  %v5540_v18 = vunpack.i.h.bf16 %v5538_v60  ;;  %v5539_v28 = vunpack.i.l.bf16 %v5538_v60  ;;  %v5553_v62 = vpop.permute.xlu0 %5552 }
 0x15e   : > { %v2432_v35 = vsel %vm10752_vm8, %v2399_v1, %v5549_v53  ;;  %v2433_v61 = vsel %vm10752_vm8, %v2400_v48, %v5550_v49  ;;  %v2462_v56 = vpack.c.bf16 %v2431_v42, %v2430_v23  ;;  %v5555_v29 = vunpack.i.h.bf16 %v5553_v62 }
 0x15f   : > { %v5558_v30 = vpop.permute.xlu1 %5557  ;;  %v2463_v46 = vpack.c.bf16 %v2433_v61, %v2432_v35  ;;  %v5554_v21 = vunpack.i.l.bf16 %v5553_v62  ;;  %v5394_v12 = vunpack.i.l.bf16 %v11337_v8  ;;  %v2370_v1 = vsel %vm10754_vm9, %v2337_v55, %v5459_v6 }
 0x160   : > { %v5560_v7 = vunpack.i.h.bf16 %v5558_v30  ;;  %v5559_v32 = vunpack.i.l.bf16 %v5558_v30  ;;  %v2401_v16 = vsel %vm10753_vm5, %v2368_v54, %v5534_v52  ;;  %v2402_v59 = vsel %vm10753_vm5, %v2369_v14, %v5535_v41  ;;  %4957 = vmatprep.mubr.msk.bf16.mxu0 %vm10751_vm13, %v2462_v56 }
 0x161   : > { %v2371_v40 = vsel %vm10754_vm9, %v8302_v44, %v5460_v63  ;;  %v5464_v60 = vunpack.i.l.bf16 %v8056_v31  ;;  %v2434_v47 = vsel %vm10752_vm8, %v2401_v16, %v5554_v21  ;;  %v2435_v48 = vsel %vm10752_vm8, %v2402_v59, %v5555_v29  ;;  %4958 = vmatmul.mubr.msk.bf16.vlgmr.msra.gmra.mxu0 %vm10751_vm13, %v2463_v46  ;;  %v5563_v54 = vpop.permute.xlu0 %5562 }
 0x162   : > { %v5465_v49 = vunpack.i.h.bf16 %v8056_v31  ;;  %v2403_v55 = vsel %vm10753_vm5, %v2370_v1, %v5539_v28  ;;  %v2404_v6 = vsel %vm10753_vm5, %v2371_v40, %v5540_v18  ;;  %v2464_v14 = vpack.c.bf16 %v2435_v48, %v2434_v47 }
 0x163   : > { %v5568_v41 = vpop.permute.xlu1 %5567  ;;  %v8363_v44 = vsel %vm10755_vm3, %v8209_v25, %v5399_v36  ;;  %v8367_v63 = vsel %vm10755_vm3, %v8213_v20, %v5400_v19  ;;  %v2436_v53 = vsel %vm10752_vm8, %v2403_v55, %v5559_v32  ;;  %v2437_v52 = vsel %vm10752_vm8, %v2404_v6, %v5560_v7 }
 0x164   : > { %v2343_v31 = vsel %vm10755_vm3, %v8217_v22, %v5394_v12  ;;  %v5469_v11 = vunpack.i.l.bf16 %v8054_v50  ;;  %v5565_v51 = vunpack.i.h.bf16 %v5563_v54  ;;  %v5564_v35 = vunpack.i.l.bf16 %v5563_v54  ;;  %4961 = vmatprep.mubr.msk.bf16.mxu0 %vm10751_vm13, %v2464_v14 }
 0x165   : > { %v5410_v25 = vunpack.i.h.bf16 %v7800_v10  ;;  %v5409_v36 = vunpack.i.l.bf16 %v7800_v10  ;;  %v5470_v20 = vunpack.i.h.bf16 %v8054_v50  ;;  %v2372_v19 = vsel %vm10754_vm9, %v8318_v39, %v5464_v60  ;;  %v5573_v18 = vpop.permute.xlu0 %5572 }
 0x166   : > { %v2373_v61 = vsel %vm10754_vm9, %v8326_v15, %v5465_v49  ;;  %v5570_v23 = vunpack.i.h.bf16 %v5568_v41  ;;  %v5569_v22 = vunpack.i.l.bf16 %v5568_v41  ;;  %v2465_v28 = vpack.c.bf16 %v2437_v52, %v2436_v53 }
 0x167   : > { %v5578_v42 = vpop.permute.xlu1 %5577  ;;  %v5575_v56 = vunpack.i.h.bf16 %v5573_v18  ;;  %v5574_v46 = vunpack.i.l.bf16 %v5573_v18  ;;  %v5404_v7 = vunpack.i.l.bf16 %v7802_v26  ;;  %v2374_v10 = vsel %vm10754_vm9, %v8310_v57, %v5469_v11 }
 0x168   : > { %v5580_v30 = vunpack.i.h.bf16 %v5578_v42  ;;  %v5579_v62 = vunpack.i.l.bf16 %v5578_v42  ;;  %v2405_v50 = vsel %vm10753_vm5, %v2372_v19, %v5564_v35  ;;  %v2406_v39 = vsel %vm10753_vm5, %v2373_v61, %v5565_v51 }
 0x169   : > { %v2375_v15 = vsel %vm10754_vm9, %v8315_v38, %v5470_v20  ;;  %v5474_v32 = vunpack.i.l.bf16 %v8098_v13  ;;  %v2438_v29 = vsel %vm10752_vm8, %v2405_v50, %v5574_v46  ;;  %v2439_v21 = vsel %vm10752_vm8, %v2406_v39, %v5575_v56  ;;  %4962 = vmatmul.mubr.msk.bf16.gmra.mxu0 %vm10751_vm13, %v2465_v28  ;;  %v5583_v59 = vpop.permute.xlu0 %5582 }
 0x16a   : > { %v5475_v12 = vunpack.i.h.bf16 %v8098_v13  ;;  %v2407_v1 = vsel %vm10753_vm5, %v2374_v10, %v5569_v22  ;;  %v2408_v57 = vsel %vm10753_vm5, %v2375_v15, %v5570_v23  ;;  %v2466_v40 = vpack.c.bf16 %v2439_v21, %v2438_v29 }
 0x16b   : > { %v5588_v16 = vpop.permute.xlu1 %5587  ;;  %v11338_v60 = vunpack.i.h.bf16 %v11337_v8  ;;  %v5405_v47 = vunpack.i.h.bf16 %v7802_v26  ;;  %v2440_v48 = vsel %vm10752_vm8, %v2407_v1, %v5579_v62  ;;  %v2441_v49 = vsel %vm10752_vm8, %v2408_v57, %v5580_v30 }
 0x16c   : > { %v2349_v13 = vsel %vm10755_vm3, %v8229_v45, %v5409_v36  ;;  %v5479_v55 = vunpack.i.l.bf16 %v8096_v34  ;;  %v5585_v6 = vunpack.i.h.bf16 %v5583_v59  ;;  %v5584_v41 = vunpack.i.l.bf16 %v5583_v59  ;;  %4965 = vmatprep.mubr.msk.bf16.mxu0 %vm10751_vm13, %v2466_v40 }
 0x16d   : > { %v2344_v38 = vsel %vm10755_vm3, %v8225_v27, %v11338_v60  ;;  %v2350_v8 = vsel %vm10755_vm3, %v8233_v17, %v5410_v25  ;;  %v2347_v27 = vsel %vm10755_vm3, %v8238_v37, %v5404_v7  ;;  %v5480_v26 = vunpack.i.h.bf16 %v8096_v34  ;;  %v5593_v11 = vpop.permute.xlu0 %5592 }
 0x16e   : > { %v2376_v54 = vsel %vm10754_vm9, %v2343_v31, %v5474_v32  ;;  %v2377_v14 = vsel %vm10754_vm9, %v2344_v38, %v5475_v12  ;;  %v5590_v53 = vunpack.i.h.bf16 %v5588_v16  ;;  %v5589_v45 = vunpack.i.l.bf16 %v5588_v16 }
 0x16f   : > { %v5598_v52 = vpop.permute.xlu1 %5597  ;;  %v2467_v51 = vpack.c.bf16 %v2441_v49, %v2440_v48  ;;  %v5595_v20 = vunpack.i.h.bf16 %v5593_v11  ;;  %v5594_v19 = vunpack.i.l.bf16 %v5593_v11  ;;  %v5419_v17 = vunpack.i.l.bf16 %v7849_v33 }
 0x170   : > { %v5600_v35 = vunpack.i.h.bf16 %v5598_v52  ;;  %v5599_v36 = vunpack.i.l.bf16 %v5598_v52  ;;  %v2378_v37 = vsel %vm10754_vm9, %v8363_v44, %v5479_v55  ;;  %v2409_v34 = vsel %vm10753_vm5, %v2376_v54, %v5584_v41  ;;  %v11339_v52 = vld [vmem:[#allocation87_spill] sm:$0xff] }
 0x171   : > { %v2410_v31 = vsel %vm10753_vm5, %v2377_v14, %v5585_v6  ;;  %v2379_v25 = vsel %vm10754_vm9, %v8367_v63, %v5480_v26  ;;  %v5484_v61 = vunpack.i.l.bf16 %v8140_v43  ;;  %v2442_v23 = vsel %vm10752_vm8, %v2409_v34, %v5594_v19  ;;  %4966 = vmatmul.mubr.msk.bf16.gmra.mxu0 %vm10751_vm13, %v2467_v51  ;;  %v5603_v30 = vpop.permute.xlu0 %5602  ;;  %v11341_v19 = vld [vmem:[#allocation79_spill] sm:$0xff] }
 0x172   : > { %v2443_v22 = vsel %vm10752_vm8, %v2410_v31, %v5595_v20  ;;  %v5485_v42 = vunpack.i.h.bf16 %v8140_v43  ;;  %v2411_v18 = vsel %vm10753_vm5, %v2378_v37, %v5589_v45  ;;  %v2412_v44 = vsel %vm10753_vm5, %v2379_v25, %v5590_v53 }
 0x173   : > { %v5608_v28 = vpop.permute.xlu1 %5607  ;;  %v2468_v62 = vpack.c.bf16 %v2443_v22, %v2442_v23  ;;  %v2348_v63 = vsel %vm10755_vm3, %v8242_v0, %v5405_v47  ;;  %v5420_v56 = vunpack.i.h.bf16 %v7849_v33  ;;  %v2444_v46 = vsel %vm10752_vm8, %v2411_v18, %v5599_v36 }
 0x174   : > { %v2445_v7 = vsel %vm10752_vm8, %v2412_v44, %v5600_v35  ;;  %v5415_v10 = vunpack.i.h.bf16 %v7851_v24  ;;  %v5489_v43 = vunpack.i.l.bf16 %v8138_v9  ;;  %v5605_v50 = vunpack.i.h.bf16 %v5603_v30 }
 0x175   : > { %v5604_v39 = vunpack.i.l.bf16 %v5603_v30  ;;  %4969 = vmatprep.mubr.msk.bf16.mxu0 %vm10751_vm13, %v2468_v62  ;;  %v2353_v15 = vsel %vm10755_vm3, %v8246_v58, %v5419_v17  ;;  %v5414_v32 = vunpack.i.l.bf16 %v7851_v24  ;;  %v5490_v0 = vunpack.i.h.bf16 %v8138_v9  ;;  %v5613_v57 = vpop.permute.xlu0 %5612 }
 0x176   : > { %v2380_v33 = vsel %vm10754_vm9, %v2347_v27, %v5484_v61  ;;  %v2381_v29 = vsel %vm10754_vm9, %v2348_v63, %v5485_v42  ;;  %v5610_v21 = vunpack.i.h.bf16 %v5608_v28  ;;  %v5609_v12 = vunpack.i.l.bf16 %v5608_v28 }
 0x177   : > { %v5618_v1 = vpop.permute.xlu1 %5617  ;;  %v2469_v16 = vpack.c.bf16 %v2445_v7, %v2444_v46  ;;  %v5615_v60 = vunpack.i.h.bf16 %v5613_v57  ;;  %v5614_v38 = vunpack.i.l.bf16 %v5613_v57  ;;  %v2354_v58 = vsel %vm10755_vm3, %v8251_v2, %v5420_v56  ;;  %v11342_v46 = vld [vmem:[#allocation91_spill] sm:$0xff]  ;;  %v11346_v57 = vld [vmem:[#allocation41_spill] sm:$0xff] }
 0x178   : > { %v5620_v59 = vunpack.i.h.bf16 %v5618_v1  ;;  %v5619_v40 = vunpack.i.l.bf16 %v5618_v1  ;;  %v2382_v24 = vsel %vm10754_vm9, %v2349_v13, %v5489_v43  ;;  %v2413_v9 = vsel %vm10753_vm5, %v2380_v33, %v5604_v39 }
 0x179   : > { %v2414_v47 = vsel %vm10753_vm5, %v2381_v29, %v5605_v50  ;;  %v2383_v48 = vsel %vm10754_vm9, %v2350_v8, %v5490_v0  ;;  %v5494_v49 = vunpack.i.l.bf16 %v8183_v5  ;;  %v2446_v55 = vsel %vm10752_vm8, %v2413_v9, %v5614_v38  ;;  %4970 = vmatmul.mubr.msk.bf16.gmra.mxu0 %vm10751_vm13, %v2469_v16  ;;  %v5623_v26 = vpop.permute.xlu0 %5622  ;;  %v11343_v29 = vld [vmem:[#allocation113_spill] sm:$0xff]  ;;  %v11347_v38 = vld [vmem:[#allocation55_spill] sm:$0xff] }
 0x17a   : > { %v2447_v6 = vsel %vm10752_vm8, %v2414_v47, %v5615_v60  ;;  %v5495_v41 = vunpack.i.h.bf16 %v8183_v5  ;;  %v2415_v2 = vsel %vm10753_vm5, %v2382_v24, %v5609_v12  ;;  %v2416_v13 = vsel %vm10753_vm5, %v2383_v48, %v5610_v21  ;;  %v11340_v5 = vld [vmem:[#allocation4_spill] sm:$0xff]  ;;  %v11345_v12 = vld [vmem:[#allocation90_spill] sm:$0xff]  ;;  %v11348_v47 = vld [vmem:[#allocation65_spill] sm:$0xff] }
 0x17b   : > { %v5628_v27 = vpop.permute.xlu1 %5627  ;;  %v2470_v54 = vpack.c.bf16 %v2447_v6, %v2446_v55  ;;  %v2351_v8 = vsel %vm10755_vm3, %v8254_v4, %v5414_v32  ;;  %v2352_v14 = vsel %vm10755_vm3, %v8268_v3, %v5415_v10  ;;  %v2448_v53 = vsel %vm10752_vm8, %v2415_v2, %v5619_v40 }
 0x17c   : > { %v2449_v45 = vsel %vm10752_vm8, %v2416_v13, %v5620_v59  ;;  %v5430_v11 = vunpack.i.h.bf16 %v11339_v52  ;;  %v5499_v51 = vunpack.i.l.bf16 %v11340_v5  ;;  %v5625_v35 = vunpack.i.h.bf16 %v5623_v26 }
 0x17d   : > { %v5624_v36 = vunpack.i.l.bf16 %v5623_v26  ;;  %4973 = vmatprep.mubr.msk.bf16.mxu0 %vm10751_vm13, %v2470_v54  ;;  %v5429_v20 = vunpack.i.l.bf16 %v11339_v52  ;;  %v5425_v17 = vunpack.i.h.bf16 %v11341_v19  ;;  %v5500_v4 = vunpack.i.h.bf16 %v11340_v5  ;;  %v5633_v61 = vpop.permute.xlu0 %5632 }
 0x17e   : > { %v2384_v3 = vsel %vm10754_vm9, %v2351_v8, %v5494_v49  ;;  %v2385_v37 = vsel %vm10754_vm9, %v2352_v14, %v5495_v41  ;;  %v5630_v34 = vunpack.i.h.bf16 %v5628_v27  ;;  %v5629_v31 = vunpack.i.l.bf16 %v5628_v27  ;;  %v11349_v49 = vld [vmem:[#allocation13_spill] sm:$0xff] }
 0x17f   : > { %v5638_v25 = vpop.permute.xlu1 %5637  ;;  %v2471_v23 = vpack.c.bf16 %v2449_v45, %v2448_v53  ;;  %v5635_v18 = vunpack.i.h.bf16 %v5633_v61  ;;  %v5634_v44 = vunpack.i.l.bf16 %v5633_v61  ;;  %v5424_v28 = vunpack.i.l.bf16 %v11341_v19  ;;  %v11350_v41 = vld [vmem:[#allocation9_spill] sm:$0xff] }
 0x180   : > { %v5640_v22 = vunpack.i.h.bf16 %v5638_v25  ;;  %v5639_v42 = vunpack.i.l.bf16 %v5638_v25  ;;  %v2386_v30 = vsel %vm10754_vm9, %v2353_v15, %v5499_v51  ;;  %v2417_v62 = vsel %vm10753_vm5, %v2384_v3, %v5624_v36 }
 0x181   : > { %v2418_v63 = vsel %vm10753_vm5, %v2385_v37, %v5625_v35  ;;  %v2387_v56 = vsel %vm10754_vm9, %v2354_v58, %v5500_v4  ;;  %v5505_v7 = vunpack.i.h.bf16 %v11342_v46  ;;  %v2450_v10 = vsel %vm10752_vm8, %v2417_v62, %v5634_v44  ;;  %4974 = vmatmul.mubr.msk.bf16.gmra.mxu0 %vm10751_vm13, %v2471_v23  ;;  %v5643_v0 = vpop.permute.xlu0 %5642 }
 0x182   : > { %v2451_v43 = vsel %vm10752_vm8, %v2418_v63, %v5635_v18  ;;  %v5504_v50 = vunpack.i.l.bf16 %v11342_v46  ;;  %v2419_v39 = vsel %vm10753_vm5, %v2386_v30, %v5629_v31  ;;  %v2420_v15 = vsel %vm10753_vm5, %v2387_v56, %v5630_v34  ;;  %v11352_v31 = vld [vmem:[#allocation58_spill] sm:$0xff] }
 0x183   : > { %v5648_v32 = vpop.permute.xlu1 %5647  ;;  %v2472_v33 = vpack.c.bf16 %v2451_v43, %v2450_v10  ;;  %v11344_v21 = vunpack.i.h.bf16 %v11343_v29  ;;  %v5355_v16 = vunpack.i.h.bf16 %v11346_v57  ;;  %v2452_v59 = vsel %vm10752_vm8, %v2419_v39, %v5639_v42  ;;  %v11354_v46 = vld [vmem:[#allocation50_spill] sm:$0xff] }
 0x184   : > { %v2453_v40 = vsel %vm10752_vm8, %v2420_v15, %v5640_v22  ;;  %v5354_v60 = vunpack.i.l.bf16 %v11346_v57  ;;  %v2357_v58 = vsel %vm10755_vm3, %v11347_v38, %v5429_v20  ;;  %v5645_v24 = vunpack.i.h.bf16 %v5643_v0  ;;  %v11351_v20 = vld [vmem:[#allocation89_spill] sm:$0xff]  ;;  %v11353_v22 = vld [vmem:[#allocation6_spill] sm:$0xff] }
 0x185   : > { %v2323_v1 = vsel %vm10756_vm6, %v11345_v12, %v11344_v21  ;;  %v5644_v9 = vunpack.i.l.bf16 %v5643_v0  ;;  %4977 = vmatprep.mubr.msk.bf16.mxu0 %vm10751_vm13, %v2472_v33  ;;  %v2358_v48 = vsel %vm10755_vm3, %v11348_v47, %v5430_v11  ;;  %v2355_v55 = vsel %vm10755_vm3, %v11349_v49, %v5424_v28  ;;  %v5653_v8 = vpop.permute.xlu0 %5652 }
 0x186   : > { %v2356_v6 = vsel %vm10755_vm3, %v2323_v1, %v5425_v17  ;;  %v5510_v2 = vunpack.i.h.bf16 %v11350_v41  ;;  %v5509_v13 = vunpack.i.l.bf16 %v11350_v41  ;;  %v2388_v27 = vsel %vm10754_vm9, %v2355_v55, %v5504_v50 }
 0x187   : > { %v2389_v26 = vsel %vm10754_vm9, %v2356_v6, %v5505_v7  ;;  %v5658_v54 = vpop.permute.xlu1 %5657  ;;  %v2473_v14 = vpack.c.bf16 %v2453_v40, %v2452_v59  ;;  %v5650_v53 = vunpack.i.h.bf16 %v5648_v32  ;;  %v5649_v45 = vunpack.i.l.bf16 %v5648_v32  ;;  %v8539_v40 = vld [vmem:[%s10425_s2 + $0x1] ss:$0 sm:$0xff] }
 0x188   : > { %v5655_v52 = vunpack.i.h.bf16 %v5653_v8  ;;  %v5654_v11 = vunpack.i.l.bf16 %v5653_v8  ;;  %v2421_v5 = vsel %vm10753_vm5, %v2388_v27, %v5644_v9  ;;  %v2422_v51 = vsel %vm10753_vm5, %v2389_v26, %v5645_v24 }
 0x189   : > { %v5660_v35 = vunpack.i.h.bf16 %v5658_v54  ;;  %v5659_v36 = vunpack.i.l.bf16 %v5658_v54  ;;  %v5435_v19 = vunpack.i.h.bf16 %v11351_v20  ;;  %v5434_v17 = vunpack.i.l.bf16 %v11351_v20  ;;  %4978 = vmatmul.mubr.msk.bf16.gmra.mxu0 %vm10751_vm13, %v2473_v14  ;;  %v5663_v61 = vpop.permute.xlu0 %5662 }
 0x18a   : > { %v2454_v4 = vsel %vm10752_vm8, %v2421_v5, %v5654_v11  ;;  %v2455_v3 = vsel %vm10752_vm8, %v2422_v51, %v5655_v52  ;;  %v2390_v37 = vsel %vm10754_vm9, %v2357_v58, %v5509_v13  ;;  %v2391_v34 = vsel %vm10754_vm9, %v2358_v48, %v5510_v2 }
 0x18b   : > { %v5514_v25 = vunpack.i.l.bf16 %v11352_v31  ;;  %v2474_v23 = vpack.c.bf16 %v2455_v3, %v2454_v4  ;;  %v2326_v42 = vsel %vm10756_vm6, %v11353_v22, %v5354_v60  ;;  %v5515_v18 = vunpack.i.h.bf16 %v11352_v31 }
 0x18c   : > { %v2423_v44 = vsel %vm10753_vm5, %v2390_v37, %v5649_v45  ;;  %v2424_v28 = vsel %vm10753_vm5, %v2391_v34, %v5650_v53  ;;  %v5665_v63 = vunpack.i.h.bf16 %v5663_v61  ;;  %v5664_v56 = vunpack.i.l.bf16 %v5663_v61 }
 0x18d   : > { %v2456_v30 = vsel %vm10752_vm8, %v2423_v44, %v5659_v36  ;;  %v2457_v62 = vsel %vm10752_vm8, %v2424_v28, %v5660_v35  ;;  %4981 = vmatprep.mubr.msk.bf16.mxu0 %vm10751_vm13, %v2474_v23  ;;  %v2327_v7 = vsel %vm10756_vm6, %v11354_v46, %v5355_v16  ;;  %v2359_v10 = vsel %vm10755_vm3, %v2326_v42, %v5434_v17  ;;  %v5668_v39 = vpop.permute.xlu0 %5667  ;;  %v8534_v16 = vld [vmem:[%s10425_s2] ss:$0 sm:$0xff] }
 0x18e   : > { %v2360_v43 = vsel %vm10755_vm3, %v2327_v7, %v5435_v19  ;;  %v2392_v50 = vsel %vm10754_vm9, %v2359_v10, %v5514_v25  ;;  %v5670_v32 = vunpack.i.h.bf16 %v5668_v39  ;;  %v5669_v0 = vunpack.i.l.bf16 %v5668_v39 }
 0x18f   : > { %v2393_v15 = vsel %vm10754_vm9, %v2360_v43, %v5515_v18  ;;  %v2475_v33 = vpack.c.bf16 %v2457_v62, %v2456_v30  ;;  %v2425_v29 = vsel %vm10753_vm5, %v2392_v50, %v5664_v56  ;;  %v11355_v41 = vmov 0.0  }
 0x190   : > { %v2426_v21 = vsel %vm10753_vm5, %v2393_v15, %v5665_v63  ;;  %v2458_v12 = vsel %vm10752_vm8, %v2425_v29, %v5669_v0  ;;  %vm11363_vm5 = vcmask 1040384  }
 0x191   : > { %v2459_v1 = vsel %vm10752_vm8, %v2426_v21, %v5670_v32  ;;  %4982 = vmatmul.mubr.msk.bf16.gmra.mxu0 %vm10751_vm13, %v2475_v33 }
 0x192   : > { %v2476_v57 = vpack.c.bf16 %v2459_v1, %v2458_v12 }
 0x194   : > { %4985 = vmatprep.mubr.msk.bf16.mxu0 %vm10751_vm13, %v2476_v57  ;;  %vm11356_vm13 = vcmask 1046528  }
 0x195   : > { %vm11357_vm8 = vmmov %vm11356_vm13 }
 0x221   : > { %v4959_v59 = vpop.f32.mrf.mxu0 }
 0x222   : > { %v2719_v60 = vmul.f32 %v4959_v59, %v8534_v16 }
 0x223   : > { %v2585_v38 = vpop.f32.mrf.mxu0 }
 0x224   : > { %v2756_v58 = vadd.f32 %v8539_v40, %v2719_v60  ;;  %v2717_v24 = vmul.f32 %v8534_v16, %v2585_v38 }
 0x225   : > { %v4960_v9 = vpop.f32.mrf.mxu0 }
 0x226   : > { %v2788_v47 = vmax.f32 %v2756_v58, 0.0  ;;  %v2720_v48 = vmul.f32 %v4960_v9, %v8534_v16  ;;  %v2754_v13 = vadd.f32 %v8539_v40, %v2717_v24 }
 0x227   : > { %v2588_v49 = vpop.f32.mrf.mxu0 }
 0x228   : > { %v2757_v55 = vadd.f32 %v8539_v40, %v2720_v48  ;;  %v2718_v6 = vmul.f32 %v8534_v16, %v2588_v49  ;;  %v5671_v2 = vpack.i.bf16 %v2788_v47, %v11355_v41  ;;  %v2786_v45 = vmax.f32 %v2754_v13, 0.0 }
 0x229   : > { %v4963_v27 = vpop.f32.mrf.mxu0  ;;  %v2972_v11 = vrot.slane %v2788_v47, 1  ;;  %v2851_v25 = vrot.slane %v2788_v47, 7 }
 0x22a   : > { %v8549_v26 = vmax.f32 %v2757_v55, 0.0  ;;  %v2755_v54 = vadd.f32 %v8539_v40, %v2718_v6  ;;  %5672 = vrot.lane.b32.xlu1 %v5671_v2, %s6371_s11  ;;  %v2969_v61 = vrot.slane %v2786_v45, 1  ;;  %v2723_v42 = vmul.f32 %v4963_v27, %v8534_v16  ;;  %v11369_v6 = vld [vmem:[#allocation51_spill] sm:$0xff] }
 0x22b   : > { %v2601_v8 = vpop.f32.mrf.mxu0  ;;  %v2848_v7 = vrot.slane %v2786_v45, 7 }
 0x22c   : > { %v2787_v14 = vmax.f32 %v2755_v54, 0.0  ;;  %v2974_v53 = vrot.slane %v8549_v26, 1  ;;  %v2721_v17 = vmul.f32 %v8534_v16, %v2601_v8  ;;  %v5696_v31 = vpack.i.bf16 %v8549_v26, %v2788_v47 }
 0x22d   : > { %v4964_v52 = vpop.f32.mrf.mxu0  ;;  %v2853_v30 = vrot.slane %v8549_v26, 7  ;;  %v3061_v50 = vsel %vm11357_vm8, 0.0, %v2969_v61  ;;  %v2760_v39 = vadd.f32 %v8539_v40, %v2723_v42 }
 0x22e   : > { %v2970_v5 = vrot.slane %v2787_v14, 1  ;;  %v5681_v35 = vpack.i.bf16 %v2787_v14, %v2786_v45  ;;  %v8557_v36 = vsel %vm11356_vm13, %v2972_v11, %v2974_v53  ;;  %v2849_v19 = vrot.slane %v2787_v14, 7 }
 0x22f   : > { %v2604_v51 = vpop.f32.mrf.mxu0  ;;  %v5676_v20 = vpack.i.bf16 %v8557_v36, %v11355_v41  ;;  %v2724_v37 = vmul.f32 %v4964_v52, %v8534_v16  ;;  %v2758_v18 = vadd.f32 %v8539_v40, %v2721_v17  ;;  %vm11359_vm13 = vcmask 1040384  }
 0x230   : > { %5682 = vrot.lane.b32.xlu0 %v5681_v35, %s6365_s24  ;;  %v2973_v3 = vsel %vm11357_vm8, %v2970_v5, %v2972_v11  ;;  %v8579_v28 = vsel %vm11359_vm13, %v2849_v19, %v2851_v25  ;;  %v2722_v63 = vmul.f32 %v8534_v16, %v2604_v51  ;;  %vm11362_vm13 = vmmov %vm11357_vm8  ;;  %v8601_v33 = vsel %vm11363_vm5, %v2851_v25, %v2853_v30 }
 0x231   : > { %v8563_v4 = vpop.f32.mrf.mxu0  ;;  %5677 = vrot.lane.b32.xlu1 %v5676_v20, %s6372_s12  ;;  %v3064_v22 = vsel %vm6540_vm2, %v2973_v3, 0.0  ;;  %11360 = vst [vmem:[#allocation57_spill] sm:$0xff] %v8579_v28  ;;  %v2761_v62 = vadd.f32 %v8539_v40, %v2724_v37  ;;  %v3102_v43 = vsel %vm11162_vm10, %v8579_v28, 0.0  ;;  %v8593_v15 = vmax.f32 %v2758_v18, 0.0  ;;  %11364 = vst [vmem:[#allocation71_spill] sm:$0xff] %v8601_v33 }
 0x232   : > { %v5711_v46 = vpack.i.bf16 %v8557_v36, %v3064_v22  ;;  %v2971_v0 = vsel %vm11362_vm13, %v2969_v61, %v2970_v5  ;;  %v2759_v21 = vadd.f32 %v8539_v40, %v2722_v63  ;;  %v5716_v1 = vpack.i.bf16 %v8601_v33, %v3102_v43  ;;  %vm11366_vm8 = vmmov %vm11363_vm5  ;;  %v8696_v43 = vld [vmem:[%s10426_s3 + $0x10] ss:$0 sps:$4 sm:$0x33]  }
 0x233   : > { %v8568_v34 = vpop.f32.mrf.mxu0  ;;  %v8603_v29 = vmax.f32 %v2761_v62, 0.0  ;;  %v3062_v59 = vsel %vm6500_vm1, %v3061_v50, 0.0  ;;  %v8612_v38 = vsel %vm11366_vm8, 0.0, %v2848_v7  ;;  %v8614_v58 = vmax.f32 %v2760_v39, 0.0 }
 0x234   : > { %5697 = vrot.lane.b32.xlu0 %v5696_v31, %s6368_s27  ;;  %v5701_v60 = vpack.i.bf16 %v2971_v0, %v3062_v59  ;;  %11367 = vst [vmem:[#allocation86_spill] sm:$0xff] %v8612_v38  ;;  %v8620_v9 = vsel %vm11363_vm5, %v2848_v7, %v2849_v19  ;;  %v2976_v47 = vrot.slane %v8593_v15, 1  ;;  %v2791_v48 = vmax.f32 %v2759_v21, 0.0 }
 0x235   : > { %v8576_v44 = vpop.f32.mrf.mxu0  ;;  %5687 = vrot.lane.b32.xlu1 %v5696_v31, %s6365_s24  ;;  %11368 = vst [vmem:[#allocation63_spill] sm:$0xff] %v8620_v9  ;;  %v5741_v55 = vpack.i.bf16 %v8603_v29, %v8614_v58  ;;  %vm11370_vm13 = vnez %v11369_v6  ;;  %v3138_v27 = vsel %vm6500_vm1, %v2973_v3, 0.0  ;;  %vm11371_vm8 = vcmask 1046528  }
 0x236   : > { %v3100_v41 = vsel %vm11370_vm13, %v8612_v38, 0.0  ;;  %v8640_v54 = vsel %vm11371_vm8, %v2974_v53, %v2976_v47  ;;  %v5746_v14 = vpack.i.bf16 %v2791_v48, %v8593_v15  ;;  %v5721_v45 = vpack.i.bf16 %v3138_v27, %v2971_v0 }
 0x237   : > { %v8585_v56 = vpop.f32.mrf.mxu0  ;;  %v5706_v2 = vpack.i.bf16 %v8620_v9, %v3100_v41  ;;  %v3140_v52 = vsel %vm6540_vm2, %v8640_v54, 0.0  ;;  %v3171_v53 = vsel %vm11370_vm13, %v8579_v28, 0.0  ;;  %v2855_v51 = vrot.slane %v8593_v15, 7  ;;  %vm11373_vm13 = vmmov %vm11363_vm5  ;;  %v11461_v28 = vld [vmem:[#allocation31_spill] sm:$0xff] }
 0x238   : > { %5712 = vrot.lane.b32.xlu0 %v5711_v46, %s6366_s25  ;;  %v5751_v5 = vpack.i.bf16 %v3140_v52, %v8557_v36  ;;  %v5726_v20 = vpack.i.bf16 %v8601_v33, %v3171_v53  ;;  %v2857_v19 = vrot.slane %v2791_v48, 7  ;;  %v2978_v17 = vrot.slane %v2791_v48, 1 }
 0x239   : > { %v8596_v32 = vpop.f32.mrf.mxu0  ;;  %5692 = vrot.lane.b32.xlu1 %v5681_v35, %s6368_s27  ;;  %v5756_v3 = vpack.i.bf16 %v8614_v58, %v2791_v48  ;;  %v8665_v37 = vsel %vm11363_vm5, %v2853_v30, %v2855_v51  ;;  %v2980_v31 = vrot.slane %v8614_v58, 1  ;;  %v5731_v25 = vpack.i.bf16 %v8593_v15, %v8549_v26 }
 0x23a   : > { %11372 = vst [vmem:[#allocation11_spill] sm:$0xff] %v8665_v37  ;;  %v8673_v61 = vsel %vm11373_vm13, %v2855_v51, %v2857_v19  ;;  %v3173_v42 = vsel %vm11162_vm10, %v8665_v37, 0.0  ;;  %v2982_v18 = vrot.slane %v8603_v29, 1  ;;  %v2725_v30 = vmul.f32 %v8534_v16, %v8568_v34  ;;  %vm11377_vm13 = vmmov %vm11371_vm8 }
 0x23b   : > { %v8606_v12 = vpop.f32.mrf.mxu0  ;;  %11374 = vst [vmem:[#allocation10_spill] sm:$0xff] %v8673_v61  ;;  %v8677_v22 = vsel %vm11371_vm8, %v2978_v17, %v2980_v31  ;;  %v5776_v26 = vpack.i.bf16 %v8673_v61, %v3173_v42  ;;  %v2859_v62 = vrot.slane %v8614_v58, 7  ;;  %v2861_v39 = vrot.slane %v8603_v29, 7 }
 0x23c   : > { %5717 = vrot.lane.b32.xlu0 %v5716_v1, %s6367_s26  ;;  %v3068_v7 = vsel %vm6620_vm4, %v8677_v22, 0.0  ;;  %v8706_v34 = vsel %vm11377_vm13, %v2980_v31, %v2982_v18  ;;  %vm11378_vm8 = vcmask 1041408   ;;  %v2762_v15 = vadd.f32 %v8539_v40, %v2725_v30 }
 0x23d   : > { %v8617_v24 = vpop.f32.mrf.mxu0  ;;  %5702 = vrot.lane.b32.xlu1 %v5701_v60, %s6366_s25  ;;  %v8700_v50 = vsel %vm11363_vm5, %v2857_v19, %v2859_v62  ;;  %5028 = vmatprep.subr.msk.bf16.mxu1 %vm11378_vm8, %v8696_v43  ;;  %v2728_v0 = vmul.f32 %v8576_v44, %v8534_v16  ;;  %v5786_v21 = vpack.i.bf16 %v8706_v34, %v3068_v7  ;;  %vm11380_vm5 = vmmov %vm11377_vm13  ;;  %vm11381_vm13 = vcmask 1040384  }
 0x23e   : > { %11376 = vst [vmem:[#allocation18_spill] sm:$0xff] %v8700_v50  ;;  %v3106_v60 = vsel %vm11165_vm12, %v8700_v50, 0.0  ;;  %v2727_v58 = vmul.f32 %v8563_v4, %v8534_v16  ;;  %v8724_v48 = vsel %vm11380_vm5, %v2976_v47, %v2978_v17  ;;  %v2731_v44 = vmul.f32 %v8596_v32, %v8534_v16 }
 0x23f   : > { %v8624_v49 = vpop.f32.mrf.mxu0  ;;  %v8734_v6 = vsel %vm11381_vm13, %v2859_v62, %v2861_v39  ;;  %v8736_v41 = vmax.f32 %v2762_v15, 0.0  ;;  %v2765_v4 = vadd.f32 %v8539_v40, %v2728_v0  ;;  %v2729_v32 = vmul.f32 %v8534_v16, %v8606_v12 }
 0x240   : > { %5742 = vrot.lane.b32.xlu0 %v5741_v55, %s6368_s27  ;;  %11382 = vst [vmem:[#allocation15_spill] sm:$0xff] %v8734_v6  ;;  %v5791_v47 = vpack.i.bf16 %v8734_v6, %v3106_v60  ;;  %v2764_v52 = vadd.f32 %v8539_v40, %v2727_v58  ;;  %v2732_v53 = vmul.f32 %v8617_v24, %v8534_v16  ;;  %v3203_v60 = vsel %vm6500_vm1, %v8640_v54, 0.0  ;;  %vm11391_vm1 = vmmov %vm11381_vm13 }
 0x241   : > { %v8633_v13 = vpop.f32.mrf.mxu0  ;;  %5707 = vrot.lane.b32.xlu1 %v5706_v2, %s6367_s26  ;;  %v11383_v2 = vld [vmem:[#allocation7_spill] sm:$0xff]  ;;  %v8762_v19 = vmax.f32 %v2765_v4, 0.0  ;;  %vm11394_vm13 = vmmov %vm11380_vm5 }
 0x242   : > { %vm11384_vm8 = vnez %v11383_v2  ;;  %v2735_v51 = vmul.f32 %v8633_v13, %v8534_v16  ;;  %v2984_v13 = vrot.slane %v8736_v41, 1  ;;  %v8773_v42 = vmax.f32 %v2764_v52, 0.0 }
 0x243   : > { %v8643_v8 = vpop.f32.mrf.mxu0  ;;  %v2769_v30 = vadd.f32 %v8539_v40, %v2732_v53 }
 0x244   : > { %5747 = vrot.lane.b32.xlu0 %v5746_v14, %s6365_s24  ;;  %v2733_v23 = vmul.f32 %v8534_v16, %v8643_v8  ;;  %v2772_v62 = vadd.f32 %v8539_v40, %v2735_v51  ;;  %v8799_v58 = vsel %vm11380_vm5, %v2982_v18, %v2984_v13  ;;  %v3142_v18 = vsel %vm11384_vm8, %v8677_v22, 0.0  ;;  %vm11396_vm5 = vmmov %vm11391_vm1 }
 0x245   : > { %v8650_v11 = vpop.f32.mrf.mxu0  ;;  %5722 = vrot.lane.b32.xlu1 %v5721_v45, %s6369_s28  ;;  %v3205_v45 = vsel %vm6540_vm2, %v8677_v22, 0.0 }
 0x246   : > { %v5796_v24 = vpack.i.bf16 %v8706_v34, %v3205_v45  ;;  %v2736_v31 = vmul.f32 %v8650_v11, %v8534_v16  ;;  %v2770_v0 = vadd.f32 %v8539_v40, %v2733_v23  ;;  %v2863_v45 = vrot.slane %v8736_v41, 7 }
 0x247   : > { %v8658_v35 = vpop.f32.mrf.mxu0  ;;  %v5801_v23 = vpack.i.bf16 %v3142_v18, %v8724_v48  ;;  %v10757_v18 = vrot.slane %v8762_v19, 7 }
 0x248   : > { %5752 = vrot.lane.b32.xlu0 %v5751_v5, %s6369_s28  ;;  %v2730_v5 = vmul.f32 %v8534_v16, %v8624_v49  ;;  %v11385_v49 = vld [vmem:[#allocation49_spill] sm:$0xff]  ;;  %v2734_v11 = vmul.f32 %v8534_v16, %v8658_v35 }
 0x249   : > { %5727 = vrot.lane.b32.xlu1 %v5726_v20, %s6370_s29  ;;  %v8668_v36 = vpop.f32.mrf.mxu0  ;;  %v2768_v20 = vadd.f32 %v8539_v40, %v2731_v44  ;;  %vm11386_vm2 = vnez %v11385_v49  ;;  %v2773_v44 = vadd.f32 %v8539_v40, %v2736_v31  ;;  %v2988_v31 = vrot.slane %v8773_v42, 1 }
 0x24a   : > { %v3104_v17 = vsel %vm11386_vm2, %v8665_v37, 0.0  ;;  %v2739_v35 = vmul.f32 %v8668_v36, %v8534_v16  ;;  %v2771_v52 = vadd.f32 %v8539_v40, %v2734_v11  ;;  %v3175_v22 = vsel %vm11386_vm2, %v8700_v50, 0.0  ;;  %v11434_v37 = vld [vmem:[#allocation21_spill] sm:$0xff] }
 0x24b   : > { %v8688_v63 = vpop.f32.mrf.mxu0  ;;  %v5771_v8 = vpack.i.bf16 %v8673_v61, %v3104_v17  ;;  %v8781_v15 = vmax.f32 %v2768_v20, 0.0  ;;  %v8836_v51 = vmax.f32 %v2773_v44, 0.0 }
 0x24c   : > { %5757 = vrot.lane.b32.xlu0 %v5756_v3, %s6371_s11  ;;  %v2766_v3 = vadd.f32 %v8539_v40, %v2729_v32  ;;  %v8818_v32 = vmax.f32 %v2770_v0, 0.0  ;;  %v2737_v53 = vmul.f32 %v8534_v16, %v8688_v63 }
 0x24d   : > { %5732 = vrot.lane.b32.xlu1 %v5731_v25, %s6371_s11  ;;  %v8715_v1 = vpop.f32.mrf.mxu0  ;;  %11390 = vst [vmem:[#allocation69_spill] sm:$0xff] %v8836_v51 }
 0x24e   : > { %11389 = vst [vmem:[#allocation25_spill] sm:$0xff] %v8818_v32  ;;  %v2740_v63 = vmul.f32 %v8715_v1, %v8534_v16  ;;  %v8859_v1 = vsel %vm11391_vm1, %v2861_v39, %v2863_v45 }
 0x24f   : > { %v2668_v27 = vpop.f32.mrf.mxu0  ;;  %11392 = vst [vmem:[#allocation24_spill] sm:$0xff] %v8859_v1  ;;  %v3177_v44 = vsel %vm11165_vm12, %v8859_v1, 0.0 }
 0x250   : > { %5777 = vrot.lane.b32.xlu0 %v5776_v26, %s6370_s29  ;;  %v2767_v26 = vadd.f32 %v8539_v40, %v2730_v5 }
 0x251   : > { %5737 = vrot.lane.b32.xlu1 %v5741_v55, %s6365_s24  ;;  %v2726_v55 = vmul.f32 %v8534_v16, %v8585_v56  ;;  %v3066_v56 = vsel %vm11384_vm8, %v8640_v54, 0.0  ;;  %v4983_v25 = vpop.f32.mrf.mxu0  ;;  %v8811_v54 = vmax.f32 %v2772_v62, 0.0 }
 0x252   : > { %v8809_v57 = vmax.f32 %v2767_v26, 0.0  ;;  %v8861_v26 = vmax.f32 %v2771_v52, 0.0  ;;  %v2743_v0 = vmul.f32 %v4983_v25, %v8534_v16  ;;  %v11398_v25 = vld [vmem:[#allocation16_spill] sm:$0xff] }
 0x253   : > { %v2763_v12 = vadd.f32 %v8539_v40, %v2726_v55  ;;  %v8801_v55 = vmax.f32 %v2766_v3, 0.0  ;;  %v2681_v4 = vpop.f32.mrf.mxu0  ;;  %11388 = vst [vmem:[#allocation76_spill] sm:$0xff] %v8811_v54  ;;  %v3004_v2 = vrot.slane %v8811_v54, 1 }
 0x254   : > { %5787 = vrot.lane.b32.xlu0 %v5786_v21, %s6366_s25  ;;  %v8789_v21 = vpack.i.bf16 %v8762_v19, %v8773_v42  ;;  %11393 = vst [vmem:[#allocation74_spill] sm:$0xff] %v8861_v26  ;;  %v2741_v52 = vmul.f32 %v8534_v16, %v2681_v4 }
 0x255   : > { %5762 = vrot.lane.b32.xlu1 %v5746_v14, %s6368_s27  ;;  %v5766_v14 = vpack.i.bf16 %v8724_v48, %v3066_v56  ;;  %v8779_v7 = vmax.f32 %v2763_v12, 0.0  ;;  %v8807_v56 = vmax.f32 %v2769_v30, 0.0  ;;  %v2776_v12 = vadd.f32 %v8539_v40, %v2739_v35  ;;  %v8839_v20 = vpop.f32.mrf.mxu0 }
 0x256   : > { %v5811_v30 = vpack.i.bf16 %v8736_v41, %v8603_v29  ;;  %v2777_v29 = vadd.f32 %v8539_v40, %v2740_v63  ;;  %v11402_v63 = vld [vmem:[#allocation61_spill] sm:$0xff]  ;;  %v2871_v10 = vrot.slane %v8801_v55, 7 }
 0x257   : > { %11387 = vst [vmem:[#allocation19_spill] sm:$0xff] %v8807_v56  ;;  %v8823_v36 = vpack.i.bf16 %v8779_v7, %v8736_v41  ;;  %v2986_v5 = vrot.slane %v8779_v7, 1  ;;  %v2865_v3 = vrot.slane %v8779_v7, 7  ;;  %v2684_v11 = vpop.f32.mrf.mxu0 }
 0x258   : > { %5792 = vrot.lane.b32.xlu0 %v5791_v47, %s6367_s26  ;;  %v5781_v47 = vpack.i.bf16 %v8724_v48, %v3203_v60  ;;  %v5806_v48 = vpack.i.bf16 %v8734_v6, %v3175_v22  ;;  %v2990_v60 = vrot.slane %v8762_v19, 1  ;;  %v2780_v22 = vadd.f32 %v8539_v40, %v2743_v0 }
 0x259   : > { %5767 = vrot.lane.b32.xlu1 %v5766_v14, %s6366_s25  ;;  %v3144_v14 = vsel %vm6620_vm4, %v8799_v58, 0.0  ;;  %v8865_v62 = vsel %vm11394_vm13, %v2986_v5, %v2988_v31  ;;  %v8875_v39 = vsel %vm11396_vm5, %v2863_v45, %v2865_v3  ;;  %vm11399_vm13 = vnez %v11398_v25  ;;  %v11527_v25 = vld [vmem:[#allocation75_spill] sm:$0xff] }
 0x25a   : > { %v5831_v17 = vpack.i.bf16 %v3144_v14, %v8706_v34  ;;  %v2774_v34 = vadd.f32 %v8539_v40, %v2737_v53  ;;  %11397 = vst [vmem:[#allocation26_spill] sm:$0xff] %v8875_v39  ;;  %v2992_v14 = vrot.slane %v8801_v55, 1  ;;  %v2742_v53 = vmul.f32 %v8534_v16, %v2684_v11 }
 0x25b   : > { %vm11401_vm5 = vcmask 1046528  }
 0x25c   : > { %5797 = vrot.lane.b32.xlu0 %v5796_v24, %s6372_s12  ;;  %v5836_v24 = vpack.i.bf16 %v8773_v42, %v8779_v7  ;;  %v8868_v7 = vmax.f32 %v2776_v12, 0.0  ;;  %v8890_v45 = vmax.f32 %v2774_v34, 0.0  ;;  %v5856_v12 = vpack.i.bf16 %v8875_v39, %v3177_v44  ;;  %vm11405_vm9 = vmmov %vm11401_vm5 }
 0x25d   : > { %5772 = vrot.lane.b32.xlu1 %v5771_v8, %s6367_s26  ;;  %v2738_v8 = vmul.f32 %v8534_v16, %v2668_v27  ;;  %v2867_v27 = vrot.slane %v8773_v42, 7  ;;  %v8906_v4 = vsel %vm11405_vm9, %v2984_v13, %v2986_v5  ;;  %vm11410_vm6 = vmmov %vm11405_vm9  ;;  %v2778_v5 = vadd.f32 %v8539_v40, %v2741_v52 }
 0x25e   : > { %11395 = vst [vmem:[#allocation28_spill] sm:$0xff] %v8868_v7  ;;  %11400 = vst [vmem:[#allocation33_spill] sm:$0xff] %v8890_v45  ;;  %v8923_v13 = vsel %vm11410_vm6, %v2990_v60, %v2992_v14  ;;  %v2779_v46 = vadd.f32 %v8539_v40, %v2742_v53  ;;  %v2994_v52 = vrot.slane %v8809_v57, 1  ;;  %v2998_v53 = vrot.slane %v8807_v56, 1 }
 0x25f   : > { %v8881_v42 = vsel %vm11391_vm1, %v2865_v3, %v2867_v27  ;;  %v2775_v35 = vadd.f32 %v8539_v40, %v2738_v8  ;;  %vm11403_vm1 = vnez %v11402_v63  ;;  %v8900_v3 = vmax.f32 %v2777_v29, 0.0  ;;  %v11492_v63 = vld [vmem:[#allocation72_spill] sm:$0xff] }
 0x260   : > { %5822 = vrot.lane.b32.xlu0 %v8789_v21, %s6368_s27  ;;  %v8931_v29 = vmax.f32 %v2780_v22, 0.0  ;;  %v6290_v22 = vld [vmem:[%s10426_s3 + $0x8] sm:$0xff]   ;;  %vm11417_vm6 = vcmask 1041408   ;;  %v3012_v61 = vrot.slane %v8868_v7, 1 }
 0x261   : > { %5782 = vrot.lane.b32.xlu1 %v5781_v47, %s6372_s12  ;;  %v3072_v47 = vsel %vm11399_vm13, %v8865_v62, 0.0  ;;  %11404 = vst [vmem:[#allocation32_spill] sm:$0xff] %v8900_v3  ;;  %v8911_v34 = vmax.f32 %v2775_v35, 0.0  ;;  %v11426_v50 = vrot.slane %v8900_v3, 7 }
 0x262   : > { %11413 = vst [vmem:[#allocation34_spill] sm:$0xff] %v8931_v29  ;;  %v11463_v38 = vrot.slane %v8931_v29, 1 }
 0x263   : > { %11406 = vst [vmem:[#allocation30_spill] sm:$0xff] %v8911_v34 }
 0x264   : > { %5827 = vrot.lane.b32.xlu0 %v8823_v36, %s6365_s24 }
 0x265   : > { %5802 = vrot.lane.b32.xlu1 %v5801_v23, %s6369_s28  ;;  %v2991_v23 = vsel %vm11401_vm5, %v2988_v31, %v2990_v60  ;;  %vm11407_vm5 = vcmask 1040384   ;;  %v8940_v60 = vpack.i.bf16 %v8809_v57, %v8801_v55 }
 0x266   : > { %v5866_v8 = vpack.i.bf16 %v2991_v23, %v3072_v47  ;;  %v8917_v31 = vsel %vm11407_vm5, %v2867_v27, %v10757_v18  ;;  %v3148_v47 = vsel %vm11399_vm13, %v8923_v13, 0.0  ;;  %v2996_v18 = vrot.slane %v8781_v15, 1 }
 0x267   : > { %11414 = vst [vmem:[#allocation38_spill] sm:$0xff] %v8940_v60 }
 0x268   : > { %5832 = vrot.lane.b32.xlu0 %v5831_v17, %s6369_s28  ;;  %v3110_v17 = vsel %vm11403_vm1, %v8881_v42, 0.0 }
 0x269   : > { %5807 = vrot.lane.b32.xlu1 %v5806_v48, %s6370_s29  ;;  %v3209_v48 = vsel %vm6620_vm4, %v8865_v62, 0.0  ;;  %v5871_v0 = vpack.i.bf16 %v8917_v31, %v3110_v17  ;;  %v3002_v17 = vrot.slane %v8861_v26, 1 }
 0x26a   : > { %v5876_v44 = vpack.i.bf16 %v2991_v23, %v3209_v48  ;;  %v3000_v48 = vrot.slane %v8818_v32, 1 }
 0x26c   : > { %5837 = vrot.lane.b32.xlu0 %v5836_v24, %s6371_s11  ;;  %v11408_v24 = vld [vmem:[#allocation14_spill] sm:$0xff] }
 0x26d   : > { %5812 = vrot.lane.b32.xlu1 %v5811_v30, %s6371_s11  ;;  %vm11409_vm3 = vnez %v11408_v24  ;;  %v11411_v30 = vld [vmem:[#allocation59_spill] sm:$0xff] }
 0x26e   : > { %v3070_v41 = vsel %vm11409_vm3, %v8799_v58, 0.0  ;;  %vm11412_vm4 = vnez %v11411_v30 }
 0x26f   : > { %v3108_v11 = vsel %vm11412_vm4, %v8859_v1, 0.0  ;;  %v5846_v27 = vpack.i.bf16 %v8906_v4, %v3070_v41  ;;  %v8957_v41 = vmax.f32 %v2778_v5, 0.0 }
 0x270   : > { %v8935_v35 = vpack.i.bf16 %v8875_v39, %v3108_v11  ;;  %5857 = vrot.lane.b32.xlu0 %v5856_v12, %s6370_s29  ;;  %v3207_v12 = vsel %vm11384_vm8, %v8799_v58, 0.0  ;;  %v8959_v11 = vmax.f32 %v2779_v46, 0.0  ;;  %v4470_v39 = vsel %vm11417_vm6, %v8696_v43, 0  ;;  %vm11418_vm8 = vmmov %vm11405_vm9 }
 0x271   : > { %5817 = vrot.lane.b32.xlu1 %v8789_v21, %s6365_s24  ;;  %11415 = vst [vmem:[#allocation40_spill] sm:$0xff] %v8957_v41  ;;  %v8965_v6 = vpack.i.bf16 %v8906_v4, %v3207_v12  ;;  %v8967_v21 = vpack.i.bf16 %v3148_v47, %v2991_v23  ;;  %v3006_v58 = vrot.slane %v8836_v51, 1  ;;  %4990 = vmatpush3.bf16.msra.mxu1 %v4470_v39  ;;  %vm11419_vm5 = vmmov %vm11418_vm8  ;;  %v6291_v39 = vld [vmem:[%s10426_s3] sm:$0xff]  }
 0x272   : > { %11416 = vst [vmem:[#allocation46_spill] sm:$0xff] %v8959_v11  ;;  %v8976_v46 = vsel %vm11405_vm9, %v2994_v52, %v2996_v18  ;;  %v8979_v43 = vsel %vm11418_vm8, %v2996_v18, %v2998_v53  ;;  %v8982_v23 = vsel %vm11419_vm5, %v2992_v14, %v2994_v52  ;;  %4991 = vmatprep.subr.bf16.mxu1 %v6290_v22  ;;  %vm11420_vm6 = vmmov %vm11419_vm5  ;;  %v3010_v18 = vrot.slane %v8911_v34, 1 }
 0x273   : > { %vm11421_vm7 = vmmov %vm11419_vm5  ;;  %v3008_v14 = vrot.slane %v8890_v45, 1  ;;  %v2895_v52 = vrot.slane %v8957_v41, 7  ;;  %v2897_v5 = vrot.slane %v8959_v11, 7  ;;  %v9010_v12 = vpack.i.bf16 %v8807_v56, %v8781_v15 }
 0x274   : > { %5867 = vrot.lane.b32.xlu0 %v5866_v8, %s6366_s25  ;;  %v8990_v8 = vsel %vm11420_vm6, %v3002_v17, %v3004_v2  ;;  %v8993_v47 = vsel %vm11421_vm7, %v2998_v53, %v3000_v48  ;;  %vm11422_vm9 = vmmov %vm11419_vm5  ;;  %v11423_v53 = vld [vmem:[#allocation17_spill] sm:$0xff]  ;;  %vm11427_vm8 = vcmask 1040384  }
 0x275   : > { %5842 = vrot.lane.b32.xlu1 %v8823_v36, %s6368_s27  ;;  %v9002_v36 = vsel %vm11422_vm9, %v3004_v2, %v3006_v58  ;;  %4992 = vmatpush3.bf16.msra.mxu1 %v6290_v22  ;;  %vm11424_vm7 = vnez %v11423_v53  ;;  %11425 = vst [vmem:[#allocation92_spill] sm:$0xff] %v9010_v12  ;;  %v9016_v1 = vsel %vm11427_vm8, %v11426_v50, %v2895_v52  ;;  %vm11429_vm5 = vmmov %vm11427_vm8  ;;  %v11431_v22 = vrot.slane %v8931_v29, 7 }
 0x276   : > { %v3150_v33 = vsel %vm11424_vm7, %v8976_v46, 0.0  ;;  %4993 = vmatprep.subr.bf16.mxu1 %v6291_v39  ;;  %11428 = vst [vmem:[#allocation3_spill] sm:$0xff] %v9016_v1  ;;  %v9019_v2 = vsel %vm11429_vm5, %v2895_v52, %v2897_v5  ;;  %vm11432_vm6 = vmmov %vm11429_vm5  ;;  %vm11435_vm9 = vnez %v11434_v37  ;;  %v9034_v50 = vsel %vm11437_vm15, %v3010_v18, %v3012_v61 }
 0x277   : > { %11430 = vst [vmem:[#allocation93_spill] sm:$0xff] %v9019_v2  ;;  %v9024_v59 = vsel %vm11432_vm6, %v2897_v5, %v11431_v22  ;;  %v3152_v49 = vsel %vm11435_vm9, %v8993_v47, 0.0  ;;  %v3014_v52 = vrot.slane %v8900_v3, 1  ;;  %v9038_v2 = vpack.i.bf16 %v3150_v33, %v8982_v23  ;;  %vm11439_vm8 = vmmov %vm11436_vm11 }
 0x278   : > { %5872 = vrot.lane.b32.xlu0 %v5871_v0, %s6367_s26  ;;  %11433 = vst [vmem:[#allocation77_spill] sm:$0xff] %v9024_v59  ;;  %v9031_v0 = vsel %vm11436_vm11, %v3000_v48, %v3002_v17  ;;  %v9041_v5 = vsel %vm11439_vm8, %v3006_v58, %v3008_v14  ;;  %v3016_v22 = vrot.slane %v8957_v41, 1  ;;  %v9045_v59 = vpack.i.bf16 %v3152_v49, %v8979_v43  ;;  %vm11441_vm11 = vmmov %vm11439_vm8 }
 0x279   : > { %5847 = vrot.lane.b32.xlu1 %v5846_v27, %s6366_s25  ;;  %11438 = vst [vmem:[#allocation95_spill] sm:$0xff] %v9038_v2  ;;  %v9050_v17 = vsel %vm11441_vm11, %v3008_v14, %v3010_v18  ;;  %4994 = vmatpush3.bf16.msra.mxu1 %v6291_v39  ;;  %v3215_v33 = vsel %vm11424_vm7, %v8993_v47, 0.0  ;;  %v9059_v58 = vpack.i.bf16 %v8861_v26, %v8818_v32  ;;  %v3217_v39 = vsel %vm11435_vm9, %v8990_v8, 0.0  ;;  %v11444_v18 = vld [vmem:[#allocation23_spill] sm:$0xff]  ;;  %vm11451_vm6 = vmmov %vm11439_vm8 }
 0x27a   : > { %11440 = vst [vmem:[#allocation96_spill] sm:$0xff] %v9045_v59  ;;  %v9063_v49 = vpack.i.bf16 %v9031_v0, %v3215_v33  ;;  %vm11445_vm15 = vnez %v11444_v18  ;;  %v9073_v48 = vpack.i.bf16 %v8836_v51, %v8811_v54  ;;  %v9079_v33 = vpack.i.bf16 %v9002_v36, %v3217_v39  ;;  %vm11452_vm8 = vmmov %vm11451_vm6  ;;  %v11456_v39 = vld [vmem:[#allocation29_spill] sm:$0xff] }
 0x27b   : > { %11442 = vst [vmem:[#allocation97_spill] sm:$0xff] %v9059_v58  ;;  %v3154_v14 = vsel %vm11445_vm15, %v8990_v8, 0.0  ;;  %v9088_v2 = vsel %vm11451_vm6, %v3012_v61, %v3014_v52  ;;  %v9091_v1 = vsel %vm11452_vm8, %v3014_v52, %v3016_v22  ;;  %v9106_v61 = vpack.i.bf16 %v8911_v34, %v8890_v45  ;;  %vm11464_vm12 = vmmov %vm11451_vm6 }
 0x27c   : > { %5877 = vrot.lane.b32.xlu0 %v5876_v44, %s6372_s12  ;;  %11443 = vst [vmem:[#allocation98_spill] sm:$0xff] %v9063_v49  ;;  %11446 = vst [vmem:[#allocation99_spill] sm:$0xff] %v9073_v48  ;;  %v3018_v44 = vrot.slane %v8959_v11, 1  ;;  %v9082_v27 = vpack.i.bf16 %v3154_v14, %v9031_v0  ;;  %v11449_v49 = vld [vmem:[#allocation27_spill] sm:$0xff]  ;;  %v3219_v14 = vsel %vm11445_vm15, %v9041_v5, 0.0  ;;  %vm11457_vm11 = vnez %v11456_v39 }
 0x27d   : > { %5852 = vrot.lane.b32.xlu1 %v8935_v35, %s6367_s26  ;;  %11447 = vst [vmem:[#allocation101_spill] sm:$0xff] %v9079_v33  ;;  %vm11450_vm5 = vnez %v11449_v49  ;;  %11454 = vst [vmem:[#allocation104_spill] sm:$0xff] %v9106_v61  ;;  %v3158_v33 = vsel %vm11457_vm11, %v9034_v50, 0.0  ;;  %vm11462_vm8 = vnez %v11461_v28  ;;  %v11488_v49 = vld [vmem:[#allocation100_spill] sm:$0xff] }
 0x27e   : > { %11448 = vst [vmem:[#allocation102_spill] sm:$0xff] %v9082_v27  ;;  %v3156_v59 = vsel %vm11450_vm5, %v9041_v5, 0.0  ;;  %v3221_v52 = vsel %vm11450_vm5, %v9034_v50, 0.0  ;;  %v9121_v27 = vpack.i.bf16 %v8900_v3, %v8868_v7  ;;  %v3160_v9 = vsel %vm11462_vm8, %v9091_v1, 0.0 }
 0x27f   : > { %v9094_v35 = vpack.i.bf16 %v3156_v59, %v9002_v36  ;;  %v9111_v59 = vpack.i.bf16 %v9050_v17, %v3219_v14  ;;  %v9129_v14 = vpack.i.bf16 %v9088_v2, %v3221_v52  ;;  %v3080_v53 = vsel %vm11450_vm5, %v8990_v8, 0.0 }
 0x280   : > { %5902 = vrot.lane.b32.xlu0 %v8940_v60, %s6365_s24  ;;  %11458 = vst [vmem:[#allocation106_spill] sm:$0xff] %v9121_v27  ;;  %v9141_v60 = vsel %vm11464_vm12, %v3018_v44, %v11463_v38  ;;  %v11472_v38 = vrot.slane %v8762_v19, 7  ;;  %vm11491_vm5 = vcmask 31744  }
 0x281   : > { %11453 = vst [vmem:[#allocation103_spill] sm:$0xff] %v9094_v35  ;;  %11455 = vst [vmem:[#allocation105_spill] sm:$0xff] %v9111_v59  ;;  %5862 = vrot.lane.b32.xlu1 %v8965_v6, %s6372_s12  ;;  %v9126_v35 = vsel %vm11451_vm6, %v3016_v22, %v3018_v44  ;;  %v9132_v59 = vpack.i.bf16 %v3158_v33, %v9050_v17  ;;  %v9144_v6 = vpack.i.bf16 %v3160_v9, %v9088_v2  ;;  %vm11473_vm6 = vcmask 1040384  }
 0x282   : > { %11459 = vst [vmem:[#allocation107_spill] sm:$0xff] %v9129_v14  ;;  %11465 = vst [vmem:[#allocation109_spill] sm:$0xff] %v9141_v60  ;;  %v11467_v33 = vsel %vm11409_vm3, %v8865_v62, 0.0  ;;  %v3223_v14 = vsel %vm11457_vm11, %v9091_v1, 0.0  ;;  %v3179_v9 = vsel %vm11412_vm4, %v8881_v42, 0.0  ;;  %v9169_v62 = vpack.i.bf16 %v8959_v11, %v8957_v41  ;;  %v11485_v41 = vld [vmem:[#allocation84_spill] sm:$0xff] }
 0x283   : > { %11460 = vst [vmem:[#allocation108_spill] sm:$0xff] %v9132_v59  ;;  %11466 = vst [vmem:[#allocation110_spill] sm:$0xff] %v9144_v6  ;;  %v5881_v52 = vpack.i.bf16 %v11467_v33, %v8906_v4  ;;  %v2873_v59 = vrot.slane %v8809_v57, 7  ;;  %v9165_v44 = vpack.i.bf16 %v9126_v35, %v3223_v14  ;;  %v11470_v4 = vld [vmem:[#allocation37_spill] sm:$0xff]  ;;  %v9180_v22 = vsel %vm11473_vm6, %v11472_v38, %v2871_v10  ;;  %v11486_v6 = vld [vmem:[#allocation83_spill] sm:$0xff] }
 0x284   : > { %5907 = vrot.lane.b32.xlu0 %v8967_v21, %s6369_s28  ;;  %11469 = vst [vmem:[#allocation36_spill] sm:$0xff] %v9169_v62  ;;  %vm11471_vm12 = vnez %v11470_v4  ;;  %v5911_v21 = vpack.i.bf16 %v8781_v15, %v8809_v57  ;;  %v5886_v11 = vpack.i.bf16 %v8917_v31, %v3179_v9  ;;  %vm11475_vm4 = vmmov %vm11473_vm6  ;;  %v3181_v57 = vsel %vm11403_vm1, %v9180_v22, 0.0 }
 0x285   : > { %11468 = vst [vmem:[#allocation111_spill] sm:$0xff] %v9165_v44  ;;  %5882 = vrot.lane.b32.xlu1 %v5881_v52, %s6369_s28  ;;  %v3162_v33 = vsel %vm11471_vm12, %v9141_v60, 0.0  ;;  %v9187_v44 = vsel %vm11475_vm4, %v2871_v10, %v2873_v59  ;;  %v2875_v38 = vrot.slane %v8781_v15, 7  ;;  %v3076_v10 = vsel %vm11435_vm9, %v8976_v46, 0.0  ;;  %v11476_v15 = vld [vmem:[#allocation67_spill] sm:$0xff]  ;;  %vm11478_vm9 = vmmov %vm11475_vm4 }
 0x286   : > { %v9183_v14 = vpack.i.bf16 %v3162_v33, %v9126_v35  ;;  %v5926_v52 = vpack.i.bf16 %v9187_v44, %v3181_v57  ;;  %v5891_v33 = vpack.i.bf16 %v8801_v55, %v8762_v19  ;;  %vm11477_vm6 = vnez %v11476_v15  ;;  %v11732_v15 = vld [vmem:[#allocation97_spill] sm:$0xff] }
 0x287   : > { %v9203_v9 = vsel %vm11475_vm4, %v2873_v59, %v2875_v38  ;;  %v3074_v55 = vsel %vm11424_vm7, %v8923_v13, 0.0  ;;  %vm11484_vm7 = vmmov %vm11478_vm9 }
 0x288   : > { %11474 = vst [vmem:[#allocation112_spill] sm:$0xff] %v9183_v14  ;;  %5912 = vrot.lane.b32.xlu0 %v5911_v21, %s6371_s11  ;;  %v5931_v21 = vpack.i.bf16 %v8979_v43, %v3076_v10  ;;  %v3114_v57 = vsel %vm11477_vm6, %v9203_v9, 0.0  ;;  %v5916_v59 = vpack.i.bf16 %v8982_v23, %v3074_v55  ;;  %v11483_v14 = vld [vmem:[#allocation94_spill] sm:$0xff] }
 0x289   : > { %5887 = vrot.lane.b32.xlu1 %v5886_v11, %s6370_s29  ;;  %v2877_v11 = vrot.slane %v8807_v56, 7  ;;  %v11489_v56 = vld [vmem:[#allocation22_spill] sm:$0xff] }
 0x28b   : > { %v9215_v37 = vsel %vm11478_vm9, %v2875_v38, %v2877_v11  ;;  %v2883_v38 = vrot.slane %v8811_v54, 7  ;;  %vm11487_vm9 = vnez %v11486_v6  ;;  %v5961_v54 = vpack.i.bf16 %v9002_v36, %v3080_v53  ;;  %v11496_v53 = vld [vmem:[#allocation43_spill] sm:$0xff] }
 0x28c   : > { %5927 = vrot.lane.b32.xlu0 %v5926_v52, %s6370_s29  ;;  %11479 = vst [vmem:[#allocation35_spill] sm:$0xff] %v9215_v37  ;;  %v5936_v19 = vpack.i.bf16 %v9215_v37, %v3114_v57  ;;  %v2881_v52 = vrot.slane %v8861_v26, 7  ;;  %v11482_v57 = vld [vmem:[#allocation20_spill] sm:$0xff]  ;;  %v920_v26 = vsel %vm11487_vm9, %v11485_v41, 0.0  ;;  %v2879_v41 = vrot.slane %v8818_v32, 7 }
 0x28d   : > { %5892 = vrot.lane.b32.xlu1 %v5891_v33, %s6371_s11  ;;  %v11480_v33 = vld [vmem:[#allocation64_spill] sm:$0xff]  ;;  %v5120_v55 = vunpack.i.h.bf16 %v11482_v57  ;;  %v5279_v57 = vunpack.i.l.bf16 %v11488_v49  ;;  %vm11494_vm9 = vcmask 64512   ;;  %v5280_v36 = vunpack.i.h.bf16 %v11488_v49 }
 0x28e   : > { %vm11481_vm4 = vnez %v11480_v33  ;;  %vm11495_vm1 = vmmov %vm11494_vm9  ;;  %v5359_v6 = vunpack.i.l.bf16 %v11496_v53 }
 0x28f   : > { %v3112_v10 = vsel %vm11481_vm4, %v9180_v22, 0.0 }
 0x290   : > { %5932 = vrot.lane.b32.xlu0 %v5931_v21, %s6366_s25  ;;  %v5921_v21 = vpack.i.bf16 %v9187_v44, %v3112_v10  ;;  %v5199_v10 = vunpack.i.l.bf16 %v11483_v14 }
 0x291   : > { %5897 = vrot.lane.b32.xlu1 %v9010_v12, %s6365_s24  ;;  %v11490_v12 = vld [vmem:[#allocation85_spill] sm:$0xff] }
 0x294   : > { %5937 = vrot.lane.b32.xlu0 %v5936_v19, %s6367_s26  ;;  %v5200_v19 = vunpack.i.h.bf16 %v11483_v14 }
 0x295   : > { %5917 = vrot.lane.b32.xlu1 %v5916_v59, %s6366_s25  ;;  %v9238_v59 = vsel %vm11484_vm7, %v2881_v52, %v2883_v38  ;;  %vm11493_vm7 = vmmov %vm11491_vm5 }
 0x296   : > { %v3118_v37 = vsel %vm11183_vm14, %v9238_v59, 0.0  ;;  %v2229_v14 = vsel %vm11493_vm7, %v920_v26, %v5120_v55  ;;  %vm11499_vm14 = vcmask 97280  }
 0x297   : > { %v2262_v8 = vsel %vm11495_vm1, %v2229_v14, %v5199_v10  ;;  %v11500_v10 = vld [vmem:[#allocation88_spill] sm:$0xff] }
 0x298   : > { %5947 = vrot.lane.b32.xlu0 %v9059_v58, %s6365_s24  ;;  %v2230_v58 = vsel %vm11491_vm5, %v11490_v12, %v11489_v56  ;;  %v11497_v56 = vrot.slane %v8836_v51, 7  ;;  %vm11498_vm5 = vcmask 1040384   ;;  %v2295_v26 = vsel %vm11499_vm14, %v2262_v8, %v5279_v57  ;;  %v11502_v8 = vld [vmem:[#allocation8_spill] sm:$0xff] }
 0x299   : > { %5922 = vrot.lane.b32.xlu1 %v5921_v21, %s6367_s26  ;;  %v2263_v21 = vsel %vm11494_vm9, %v2230_v58, %v5200_v19  ;;  %v5360_v58 = vunpack.i.h.bf16 %v11496_v53  ;;  %v3078_v19 = vsel %vm11445_vm15, %v8993_v47, 0.0  ;;  %v5440_v49 = vunpack.i.h.bf16 %v11500_v10  ;;  %vm11501_vm1 = vmmov %vm11498_vm5 }
 0x29a   : > { %v9266_v12 = vsel %vm11498_vm5, %v2883_v38, %v11497_v56  ;;  %v5439_v14 = vunpack.i.l.bf16 %v11500_v10  ;;  %v9280_v38 = vsel %vm11501_vm1, %v2877_v11, %v2879_v41  ;;  %v10793_v57 = vunpack.i.h.bf16 %v11502_v8  ;;  %vm11503_vm14 = vmmov %vm11501_vm1 }
 0x29b   : > { %v5519_v53 = vunpack.i.l.bf16 %v11502_v8  ;;  %v2889_v47 = vrot.slane %v8911_v34, 7  ;;  %vm11504_vm15 = vcmask 97280   ;;  %vm11505_vm9 = vcmask 130048  }
 0x29c   : > { %5962 = vrot.lane.b32.xlu0 %v5961_v54, %s6366_s25  ;;  %v9270_v55 = vpop.permute.xlu1 %5672  ;;  %v5966_v54 = vpack.i.bf16 %v9266_v12, %v3118_v37  ;;  %v9286_v37 = vsel %vm11503_vm14, %v2879_v41, %v2881_v52  ;;  %v2296_v18 = vsel %vm11504_vm15, %v2263_v21, %v5280_v36  ;;  %v2328_v56 = vsel %vm11505_vm9, %v2295_v26, %v5359_v6  ;;  %vm11507_vm7 = vmmov %vm11505_vm9 }
 0x29d   : > { %5942 = vrot.lane.b32.xlu1 %v9073_v48, %s6365_s24  ;;  %v5951_v48 = vpack.i.bf16 %v9031_v0, %v3078_v19  ;;  %v9292_v0 = vunpack.i.l.bf16 %v9270_v55  ;;  %v2329_v11 = vsel %vm11507_vm7, %v2296_v18, %v5360_v58  ;;  %v2891_v41 = vrot.slane %v8868_v7, 7  ;;  %v11542_v7 = vld [vmem:[#allocation73_spill] sm:$0xff] }
 0x29e   : > { %vm11510_vm1 = vcmask 162816   ;;  %vm11512_vm15 = vcmask 195584   ;;  %vm11515_vm7 = vcmask 1040384  }
 0x29f   : > { %11506 = vst [vmem:[#allocation45_spill] sm:$0xff] %v9292_v0  ;;  %v2361_v10 = vsel %vm11510_vm1, %v2328_v56, %v5439_v14  ;;  %vm11511_vm14 = vmmov %vm11510_vm1  ;;  %v2744_v14 = vmul.f32 %v8839_v20, %v8534_v16  ;;  %vm11516_vm1 = vcmask 228352   ;;  %v11762_v20 = vld [vmem:[#allocation46_spill] sm:$0xff] }
 0x2a0   : > { %5967 = vrot.lane.b32.xlu0 %v5966_v54, %s6367_s26  ;;  %v11508_v54 = vld [vmem:[#allocation70_spill] sm:$0xff]  ;;  %v2362_v21 = vsel %vm11511_vm14, %v2329_v11, %v5440_v49  ;;  %v2394_v26 = vsel %vm11512_vm15, %v2361_v10, %v5519_v53  ;;  %vm11513_vm9 = vmmov %vm11512_vm15  ;;  %v9320_v49 = vsel %vm11515_vm7, %v2889_v47, %v2891_v41  ;;  %vm11518_vm15 = vcmask 261120  }
 0x2a1   : > { %5952 = vrot.lane.b32.xlu1 %v5951_v48, %s6366_s25  ;;  %vm11509_vm5 = vnez %v11508_v54  ;;  %v3084_v48 = vsel %vm11462_vm8, %v9034_v50, 0.0  ;;  %v2395_v58 = vsel %vm11513_vm9, %v2362_v21, %v10793_v57  ;;  %v2427_v50 = vsel %vm11516_vm1, %v2394_v26, %v9292_v0  ;;  %vm11517_vm14 = vmmov %vm11516_vm1 }
 0x2a2   : > { %v9296_v19 = vpop.permute.xlu0 %5682  ;;  %v3116_v52 = vsel %vm11509_vm5, %v9280_v38, 0.0  ;;  %v2428_v53 = vsel %vm11517_vm14, %v2395_v58, %v9292_v0  ;;  %v5991_v11 = vpack.i.bf16 %v9088_v2, %v3084_v48  ;;  %vm11519_vm9 = vmmov %vm11518_vm15  ;;  %v2887_v26 = vrot.slane %v8890_v45, 7 }
 0x2a3   : > { %v9304_v6 = vpop.permute.xlu1 %5677  ;;  %v5956_v36 = vpack.i.bf16 %v9286_v37, %v3116_v52  ;;  %v2781_v58 = vadd.f32 %v8539_v40, %v2744_v14  ;;  %vm11521_vm7 = vcmask 293888   ;;  %v11522_v2 = vrot.slane %v8900_v3, 7 }
 0x2a4   : > { %v9315_v18 = vunpack.i.l.bf16 %v9304_v6  ;;  %5977 = vrot.lane.b32.xlu0 %v9106_v61, %s6365_s24  ;;  %vm11523_vm1 = vcmask 1040384   ;;  %v3213_v14 = vsel %vm11399_vm13, %v8976_v46, 0.0  ;;  %vm11528_vm13 = vnez %v11527_v25  ;;  %v11753_v25 = vld [vmem:[#allocation93_spill] sm:$0xff] }
 0x2a5   : > { %5957 = vrot.lane.b32.xlu1 %v5956_v36, %s6367_s26  ;;  %v3122_v36 = vsel %vm11186_vm0, %v9320_v49, 0.0  ;;  %v9350_v48 = vsel %vm11523_vm1, %v2891_v41, %v11522_v2  ;;  %vm11525_vm14 = vmmov %vm11523_vm1  ;;  %v9373_v39 = vmax.f32 %v2781_v58, 0.0 }
 0x2a6   : > { %11514 = vst [vmem:[#allocation48_spill] sm:$0xff] %v9315_v18  ;;  %v9329_v56 = vpop.permute.xlu0 %5697  ;;  %v2460_v52 = vsel %vm11518_vm15, %v2427_v50, %v9315_v18  ;;  %v2461_v10 = vsel %vm11519_vm9, %v2428_v53, %v9315_v18  ;;  %v5996_v53 = vpack.i.bf16 %v9350_v48, %v3122_v36  ;;  %vm11526_vm15 = vmmov %vm11523_vm1  ;;  %vm11533_vm9 = vcmask 1046528  }
 0x2a7   : > { %v9336_v21 = vpop.permute.xlu1 %5687  ;;  %v2477_v16 = vpack.c.bf16 %v2461_v10, %v2460_v52  ;;  %v11524_v10 = vrot.slane %v8836_v51, 7  ;;  %vm11541_vm1 = vcmask 64512  }
 0x2a8   : > { %5992 = vrot.lane.b32.xlu0 %v5991_v11, %s6366_s25  ;;  %v3082_v11 = vsel %vm11457_vm11, %v9041_v5, 0.0 }
 0x2a9   : > { %4986 = vmatmul.mubr.msk.bf16.gmra.mxu0 %vm11521_vm7, %v2477_v16  ;;  %5972 = vrot.lane.b32.xlu1 %v9121_v27, %s6365_s24  ;;  %v5981_v40 = vpack.i.bf16 %v9050_v17, %v3082_v11  ;;  %v9367_v41 = vsel %vm11525_vm14, %v11524_v10, %v2887_v26  ;;  %v9371_v16 = vsel %vm11526_vm15, %v2887_v26, %v2889_v47  ;;  %v10796_v47 = vrot.slane %v9373_v39, 1 }
 0x2aa   : > { %v9352_v50 = vpop.permute.xlu0 %5712  ;;  %v6011_v17 = vpack.i.bf16 %v8979_v43, %v3213_v14  ;;  %v3120_v46 = vsel %vm11528_vm13, %v9367_v41, 0.0  ;;  %v11530_v43 = vld [vmem:[#allocation39_spill] sm:$0xff]  ;;  %vm11543_vm14 = vcmask 97280  }
 0x2ab   : > { %v9358_v52 = vpop.permute.xlu1 %5692  ;;  %v5986_v2 = vpack.i.bf16 %v9371_v16, %v3120_v46  ;;  %vm11531_vm11 = vnez %v11530_v43  ;;  %v3211_v46 = vsel %vm11409_vm3, %v8923_v13, 0.0  ;;  %vm11538_vm3 = vcmask 31744   ;;  %vm11545_vm15 = vmmov %vm11543_vm14 }
 0x2ac   : > { %5997 = vrot.lane.b32.xlu0 %v5996_v53, %s6367_s26  ;;  %v9388_v53 = vpack.i.bf16 %v9373_v39, %v8931_v29  ;;  %v3088_v11 = vsel %vm11531_vm11, %v9141_v60, 0.0  ;;  %v6006_v57 = vpack.i.bf16 %v8982_v23, %v3211_v46  ;;  %v11535_v23 = vld [vmem:[#allocation38_spill] sm:$0xff]  ;;  %v5684_v46 = vunpack.i.l.bf16 %v9296_v19  ;;  %vm11540_vm7 = vmmov %vm11538_vm3 }
 0x2ad   : > { %5982 = vrot.lane.b32.xlu1 %v5981_v40, %s6366_s25  ;;  %v11532_v40 = vrot.slane %v8931_v29, 1  ;;  %v11539_v29 = vld [vmem:[#allocation63_spill] sm:$0xff] }
 0x2ae   : > { %v5718_v5 = vpop.permute.xlu0 %5717  ;;  %11529 = vst [vmem:[#allocation52_spill] sm:$0xff] %v9388_v53 }
 0x2af   : > { %v5703_v36 = vpop.permute.xlu1 %5702  ;;  %v9402_v14 = vsel %vm11533_vm9, %v11532_v40, %v10796_v47  ;;  %v3086_v40 = vsel %vm11471_vm12, %v9091_v1, 0.0  ;;  %v5685_v1 = vunpack.i.h.bf16 %v9296_v19  ;;  %v5700_v19 = vunpack.i.h.bf16 %v9329_v56  ;;  %vm11546_vm9 = vmmov %vm11543_vm14 }
 0x2b0   : > { %6012 = vrot.lane.b32.xlu0 %v6011_v17, %s6372_s12  ;;  %11534 = vst [vmem:[#allocation56_spill] sm:$0xff] %v9402_v14  ;;  %v6031_v17 = vpack.i.bf16 %v9402_v14, %v3088_v11  ;;  %v6021_v11 = vpack.i.bf16 %v9126_v35, %v3086_v40  ;;  %v5705_v0 = vunpack.i.h.bf16 %v5703_v36  ;;  %v5720_v14 = vunpack.i.h.bf16 %v5718_v5 }
 0x2b1   : > { %5987 = vrot.lane.b32.xlu1 %v5986_v2, %s6367_s26  ;;  %v4133_v28 = vsel %vm11540_vm7, %v11539_v29, %v5685_v1  ;;  %v5704_v3 = vunpack.i.l.bf16 %v5703_v36  ;;  %v5719_v61 = vunpack.i.l.bf16 %v5718_v5  ;;  %vm11549_vm7 = vcmask 130048  }
 0x2b2   : > { %v9384_v26 = vpop.permute.xlu0 %5742 }
 0x2b3   : > { %v5708_v58 = vpop.permute.xlu1 %5707 }
 0x2b4   : > { %6017 = vrot.lane.b32.xlu0 %v9169_v62, %s6365_s24  ;;  %v5709_v35 = vunpack.i.l.bf16 %v5708_v58  ;;  %v5714_v62 = vunpack.i.l.bf16 %v9352_v50  ;;  %v5710_v34 = vunpack.i.h.bf16 %v5708_v58 }
 0x2b5   : > { %6002 = vrot.lane.b32.xlu1 %v9388_v53, %s6365_s24 }
 0x2b6   : > { %v9404_v10 = vpop.permute.xlu0 %5747  ;;  %v4193_v53 = vsel %vm11543_vm14, %v11542_v7, %v5709_v35  ;;  %vm11551_vm14 = vcmask 162816  }
 0x2b7   : > { %v9410_v2 = vpop.permute.xlu1 %5722 }
 0x2b8   : > { %6032 = vrot.lane.b32.xlu0 %v6031_v17, %s6366_s25  ;;  %v5725_v4 = vunpack.i.h.bf16 %v9410_v2 }
 0x2b9   : > { %6007 = vrot.lane.b32.xlu1 %v6006_v57, %s6372_s12 }
 0x2ba   : > { %v5753_v18 = vpop.permute.xlu0 %5752 }
 0x2bb   : > { %v9418_v47 = vpop.permute.xlu1 %5727  ;;  %v5755_v58 = vunpack.i.h.bf16 %v5753_v18  ;;  %v5754_v1 = vunpack.i.l.bf16 %v5753_v18 }
 0x2bc   : > { %v5730_v18 = vunpack.i.h.bf16 %v9418_v47 }
 0x2bd   : > { %6022 = vrot.lane.b32.xlu1 %v6021_v11, %s6366_s25  ;;  %v11536_v11 = vld [vmem:[#allocation86_spill] sm:$0xff] }
 0x2be   : > { %v9422_v24 = vpop.permute.xlu0 %5757  ;;  %v2938_v43 = vsel %vm11162_vm10, %v11536_v11, 0.0  ;;  %v5724_v11 = vunpack.i.l.bf16 %v9410_v2  ;;  %vm11544_vm10 = vmmov %vm11541_vm1 }
 0x2bf   : > { %v9424_v13 = vpop.permute.xlu1 %5732  ;;  %v4164_v29 = vsel %vm11544_vm10, %v4133_v28, %v5714_v62  ;;  %v5695_v28 = vunpack.i.h.bf16 %v9358_v52  ;;  %vm11552_vm10 = vmmov %vm11549_vm7 }
 0x2c0   : > { %v4196_v36 = vsel %vm11545_vm15, %v4164_v29, %v5720_v14  ;;  %vm11553_vm15 = vmmov %vm11549_vm7  ;;  %v5734_v2 = vunpack.i.l.bf16 %v9424_v13 }
 0x2c1   : > { %6027 = vrot.lane.b32.xlu1 %v11535_v23, %s6368_s27  ;;  %v4132_v23 = vsel %vm11538_vm3, %v2938_v43, %v5684_v46  ;;  %v5699_v43 = vunpack.i.l.bf16 %v9329_v56  ;;  %v5694_v46 = vunpack.i.l.bf16 %v9358_v52  ;;  %vm11548_vm3 = vmmov %vm11541_vm1 }
 0x2c2   : > { %v5778_v17 = vpop.permute.xlu0 %5777  ;;  %v4163_v60 = vsel %vm11541_vm1, %v4132_v23, %v5705_v0  ;;  %v5729_v0 = vunpack.i.l.bf16 %v9418_v47  ;;  %v11547_v23 = vld [vmem:[#allocation53_spill] sm:$0xff]  ;;  %vm11550_vm1 = vmmov %vm11546_vm9 }
 0x2c3   : > { %v9428_v57 = vpop.permute.xlu1 %5737  ;;  %v4195_v5 = vsel %vm11546_vm9, %v4163_v60, %v5719_v61  ;;  %v4162_v7 = vsel %vm11548_vm3, %v11547_v23, %v5704_v3  ;;  %v4225_v35 = vsel %vm11549_vm7, %v4193_v53, %v5694_v46  ;;  %v5780_v45 = vunpack.i.h.bf16 %v5778_v17  ;;  %vm11555_vm3 = vmmov %vm11551_vm14 }
 0x2c4   : > { %v5779_v32 = vunpack.i.l.bf16 %v5778_v17  ;;  %v4194_v62 = vsel %vm11550_vm1, %v4162_v7, %v5710_v34  ;;  %v4257_v14 = vsel %vm11551_vm14, %v4225_v35, %v5724_v11  ;;  %v4227_v61 = vsel %vm11552_vm10, %v4195_v5, %v5699_v43  ;;  %vm11556_vm7 = vmmov %vm11555_vm3 }
 0x2c5   : > { %v4228_v3 = vsel %vm11553_vm15, %v4196_v36, %v5700_v19  ;;  %vm11554_vm9 = vcmask 195584   ;;  %v5675_v53 = vunpack.i.h.bf16 %v9270_v55  ;;  %v4259_v34 = vsel %vm11556_vm7, %v4227_v61, %v5754_v1  ;;  %vm11557_vm1 = vmmov %vm11552_vm10 }
 0x2c6   : > { %v9432_v8 = vpop.permute.xlu0 %5787  ;;  %v4289_v17 = vsel %vm11554_vm9, %v4257_v14, %v5729_v0  ;;  %v4260_v52 = vsel %vm11555_vm3, %v4228_v3, %v5755_v58  ;;  %v4226_v11 = vsel %vm11557_vm1, %v4194_v62, %v5695_v28  ;;  %vm11558_vm14 = vmmov %vm11554_vm9  ;;  %v5759_v55 = vunpack.i.l.bf16 %v9422_v24 }
 0x2c7   : > { %v9434_v40 = vpop.permute.xlu1 %5762  ;;  %v4292_v29 = vsel %vm11558_vm14, %v4260_v52, %v5780_v45  ;;  %vm11559_vm11 = vmmov %vm11554_vm9  ;;  %v5735_v0 = vunpack.i.h.bf16 %v9424_v13  ;;  %vm11561_vm15 = vcmask 228352   ;;  %v5680_v58 = vunpack.i.h.bf16 %v9304_v6 }
 0x2c8   : > { %v4291_v43 = vsel %vm11559_vm11, %v4259_v34, %v5779_v32  ;;  %vm11560_vm10 = vmmov %vm11555_vm3  ;;  %v4321_v5 = vsel %vm11561_vm15, %v4289_v17, %v5675_v53  ;;  %vm11565_vm1 = vcmask 261120   ;;  %v5690_v34 = vunpack.i.h.bf16 %v9336_v21 }
 0x2c9   : > { %v4258_v47 = vsel %vm11560_vm10, %v4226_v11, %v5725_v4  ;;  %vm11562_vm11 = vmmov %vm11561_vm15  ;;  %v5715_v11 = vunpack.i.h.bf16 %v9352_v50 }
 0x2ca   : > { %v9445_v27 = vpop.permute.xlu0 %5792  ;;  %v4290_v45 = vsel %vm11554_vm9, %v4258_v47, %v5730_v18  ;;  %v4324_v32 = vsel %vm11562_vm11, %v4292_v29, %v5759_v55  ;;  %vm11563_vm3 = vmmov %vm11562_vm11  ;;  %vm11569_vm9 = vcmask 293888   ;;  %v11573_v55 = vld [vmem:[#allocation11_spill] sm:$0xff] }
 0x2cb   : > { %v9450_v51 = vpop.permute.xlu1 %5767  ;;  %v4323_v7 = vsel %vm11563_vm3, %v4291_v43, %v5735_v0  ;;  %vm11564_vm7 = vmmov %vm11563_vm3  ;;  %v11571_v43 = vld [vmem:[#allocation57_spill] sm:$0xff]  ;;  %v11574_v0 = vld [vmem:[#allocation54_spill] sm:$0xff] }
 0x2cc   : > { %v4322_v35 = vsel %vm11564_vm7, %v4290_v45, %v5734_v2  ;;  %vm11566_vm14 = vmmov %vm11565_vm1  ;;  %v5689_v2 = vunpack.i.l.bf16 %v9336_v21  ;;  %v2940_v47 = vsel %vm11386_vm2, %v11571_v43, 0.0  ;;  %vm11575_vm3 = vnez %v11574_v0 }
 0x2cd   : > { %vm11567_vm10 = vmmov %vm11565_vm1  ;;  %vm11577_vm7 = vnez %v11411_v30  ;;  %v5750_v21 = vunpack.i.h.bf16 %v9404_v10  ;;  %v5770_v50 = vunpack.i.h.bf16 %v9450_v51  ;;  %vm11578_vm2 = vcmask 31744  }
 0x2ce   : > { %v9461_v56 = vpop.permute.xlu0 %5797  ;;  %v4353_v62 = vsel %vm11567_vm10, %v4321_v5, %v5680_v58  ;;  %vm11568_vm15 = vmmov %vm11565_vm1  ;;  %v5749_v5 = vunpack.i.l.bf16 %v9404_v10  ;;  %v11576_v58 = vld [vmem:[#allocation18_spill] sm:$0xff] }
 0x2cf   : > { %v9467_v60 = vpop.permute.xlu1 %5772  ;;  %v5799_v19 = vunpack.i.l.bf16 %v9461_v56  ;;  %vm11570_vm11 = vmmov %vm11569_vm9 }
 0x2d0   : > { %v5774_v30 = vunpack.i.l.bf16 %v9467_v60 }
 0x2d1   : > { %v4356_v4 = vsel %vm11565_vm1, %v4324_v32, %v5799_v19  ;;  %v2948_v32 = vsel %vm11481_vm4, %v8881_v42, 0.0  ;;  %vm11580_vm1 = vmmov %vm11578_vm2 }
 0x2d2   : > { %v9481_v46 = vpop.permute.xlu0 %5822  ;;  %vm11582_vm10 = vmmov %vm11580_vm1 }
 0x2d3   : > { %v5783_v36 = vpop.permute.xlu1 %5782 }
 0x2d4   : > { %v5785_v1 = vunpack.i.h.bf16 %v5783_v36  ;;  %v5784_v23 = vunpack.i.l.bf16 %v5783_v36  ;;  %v2942_v36 = vsel %vm11575_vm3, %v11573_v55, 0.0  ;;  %vm11587_vm3 = vcmask 97280  }
 0x2d6   : > { %v4355_v28 = vsel %vm11566_vm14, %v4323_v7, %v5785_v1  ;;  %v9494_v13 = vpop.permute.xlu0 %5827  ;;  %v4354_v6 = vsel %vm11568_vm15, %v4322_v35, %v5784_v23  ;;  %v2944_v1 = vsel %vm11577_vm7, %v11576_v58, 0.0  ;;  %v4134_v7 = vsel %vm11578_vm2, %v2940_v47, %v5689_v2  ;;  %v11579_v35 = vld [vmem:[#allocation71_spill] sm:$0xff]  ;;  %vm11583_vm15 = vmmov %vm11580_vm1  ;;  %v11584_v47 = vld [vmem:[#allocation10_spill] sm:$0xff] }
 0x2d7   : > { %v9498_v14 = vpop.permute.xlu1 %5802  ;;  %v4385_v61 = vpack.c.bf16 %v4354_v6, %v4353_v62  ;;  %v4386_v3 = vpack.c.bf16 %v4356_v4, %v4355_v28  ;;  %v4135_v4 = vsel %vm11580_vm1, %v11579_v35, %v5690_v34  ;;  %v2950_v28 = vsel %vm11477_vm6, %v9180_v22, 0.0 }
 0x2d8   : > { %vm11581_vm14 = vcmask 64512   ;;  %v5745_v62 = vunpack.i.h.bf16 %v9384_v26  ;;  %v5789_v6 = vunpack.i.l.bf16 %v9432_v8  ;;  %v5795_v34 = vunpack.i.h.bf16 %v9445_v27 }
 0x2d9   : > { %4995 = vmatprep.mubr.msk.bf16.mxu1 %vm11569_vm9, %v4385_v61  ;;  %v4165_v10 = vsel %vm11581_vm14, %v4134_v7, %v5715_v11  ;;  %v5769_v2 = vunpack.i.l.bf16 %v9450_v51  ;;  %v5744_v11 = vunpack.i.l.bf16 %v9384_v26  ;;  %vm11585_vm9 = vmmov %vm11580_vm1  ;;  %v5775_v58 = vunpack.i.h.bf16 %v9467_v60 }
 0x2da   : > { %4996 = vmatmul.mubr.msk.bf16.vlgmr.msra.gmra.mxu1 %vm11570_vm11, %v4386_v3  ;;  %v9502_v18 = vpop.permute.xlu0 %5832  ;;  %v4136_v3 = vsel %vm11583_vm15, %v2942_v36, %v5749_v5  ;;  %v4137_v55 = vsel %vm11585_vm9, %v11584_v47, %v5750_v21  ;;  %vm11586_vm11 = vmmov %vm11581_vm14  ;;  %v4197_v36 = vsel %vm11587_vm3, %v4165_v10, %v5774_v30  ;;  %v5804_v5 = vunpack.i.l.bf16 %v9498_v14 }
 0x2db   : > { %v9504_v17 = vpop.permute.xlu1 %5807  ;;  %v4167_v0 = vsel %vm11586_vm11, %v4136_v3, %v5770_v50  ;;  %vm11588_vm7 = vmmov %vm11586_vm11  ;;  %v5764_v7 = vunpack.i.l.bf16 %v9434_v40  ;;  %v5790_v60 = vunpack.i.h.bf16 %v9432_v8  ;;  %vm11594_vm9 = vcmask 130048  }
 0x2dc   : > { %vm11589_vm2 = vmmov %vm11588_vm7  ;;  %v5809_v21 = vunpack.i.l.bf16 %v9504_v17  ;;  %v5760_v47 = vunpack.i.h.bf16 %v9422_v24  ;;  %v5765_v8 = vunpack.i.h.bf16 %v9434_v40  ;;  %vm11595_vm11 = vcmask 162816  }
 0x2dd   : > { %v4168_v26 = vsel %vm11589_vm2, %v4137_v55, %v5789_v6  ;;  %vm11590_vm1 = vmmov %vm11587_vm3  ;;  %v5805_v6 = vunpack.i.h.bf16 %v9498_v14  ;;  %v4229_v3 = vsel %vm11594_vm9, %v4197_v36, %v5764_v7  ;;  %vm11596_vm3 = vcmask 31744  }
 0x2de   : > { %v9506_v53 = vpop.permute.xlu0 %5837  ;;  %vm11591_vm14 = vmmov %vm11589_vm2 }
 0x2df   : > { %v9508_v52 = vpop.permute.xlu1 %5812  ;;  %v4166_v35 = vsel %vm11591_vm14, %v4135_v4, %v5769_v2  ;;  %vm11593_vm15 = vmmov %vm11590_vm1  ;;  %v5834_v4 = vunpack.i.l.bf16 %v9502_v18 }
 0x2e2   : > { %v9513_v29 = vpop.permute.xlu0 %5857 }
 0x2e3   : > { %v9525_v23 = vpop.permute.xlu1 %5817  ;;  %v5859_v14 = vunpack.i.l.bf16 %v9513_v29 }
 0x2e4   : > { %v5819_v45 = vunpack.i.l.bf16 %v9525_v23 }
 0x2e6   : > { %v4142_v61 = vsel %vm11582_vm10, %v2948_v32, %v5819_v45  ;;  %v9544_v42 = vpop.permute.xlu0 %5867  ;;  %v5794_v45 = vunpack.i.l.bf16 %v9445_v27  ;;  %v5739_v32 = vunpack.i.l.bf16 %v9428_v57  ;;  %v4200_v27 = vsel %vm11590_vm1, %v4168_v26, %v5795_v34  ;;  %vm11592_vm10 = vmmov %vm11590_vm1 }
 0x2e7   : > { %v5870_v43 = vunpack.i.h.bf16 %v9544_v42  ;;  %v9550_v19 = vpop.permute.xlu1 %5842  ;;  %v4261_v34 = vsel %vm11595_vm11, %v4229_v3, %v5804_v5  ;;  %vm11598_vm1 = vmmov %vm11594_vm9 }
 0x2e8   : > { %v4199_v30 = vsel %vm11592_vm10, %v4167_v0, %v5794_v45  ;;  %v4138_v2 = vsel %vm11596_vm3, %v2944_v1, %v5739_v32  ;;  %v5860_v0 = vunpack.i.h.bf16 %v9513_v29  ;;  %vm11599_vm14 = vmmov %vm11598_vm1  ;;  %v5810_v32 = vunpack.i.h.bf16 %v9504_v17 }
 0x2e9   : > { %v9561_v51 = vsel %vm11588_vm7, %v4142_v61, %v5870_v43  ;;  %v4198_v61 = vsel %vm11593_vm15, %v4166_v35, %v5775_v58  ;;  %v5835_v43 = vunpack.i.h.bf16 %v9502_v18  ;;  %vm11597_vm7 = vcmask 195584   ;;  %vm11600_vm10 = vmmov %vm11598_vm1 }
 0x2ea   : > { %v9567_v50 = vpop.permute.xlu0 %5872  ;;  %v4293_v55 = vsel %vm11597_vm7, %v4261_v34, %v5809_v21  ;;  %v4169_v45 = vsel %vm11589_vm2, %v4138_v2, %v5790_v60  ;;  %v4230_v24 = vsel %vm11598_vm1, %v4198_v61, %v5765_v8  ;;  %v4231_v40 = vsel %vm11599_vm14, %v4199_v30, %v5744_v11  ;;  %vm11601_vm15 = vmmov %vm11595_vm11 }
 0x2eb   : > { %v9573_v10 = vpop.permute.xlu1 %5847  ;;  %v4232_v36 = vsel %vm11600_vm10, %v4200_v27, %v5745_v62  ;;  %v4262_v18 = vsel %vm11601_vm15, %v4230_v24, %v5805_v6  ;;  %vm11602_vm9 = vmmov %vm11595_vm11  ;;  %vm11604_vm3 = vcmask 228352   ;;  %v5814_v21 = vunpack.i.l.bf16 %v9508_v52 }
 0x2ec   : > { %v4264_v1 = vsel %vm11602_vm9, %v4232_v36, %v5835_v43  ;;  %vm11603_vm11 = vmmov %vm11602_vm9  ;;  %v4325_v7 = vsel %vm11604_vm3, %v4293_v55, %v5760_v47  ;;  %v5844_v11 = vunpack.i.l.bf16 %v9550_v19  ;;  %vm11606_vm1 = vcmask 97280  }
 0x2ed   : > { %v4263_v26 = vsel %vm11603_vm11, %v4231_v40, %v5834_v4  ;;  %v4296_v62 = vsel %vm11597_vm7, %v4264_v1, %v5860_v0  ;;  %vm11605_vm2 = vmmov %vm11597_vm7  ;;  %v5839_v17 = vunpack.i.l.bf16 %v9506_v53  ;;  %v5815_v61 = vunpack.i.h.bf16 %v9508_v52 }
 0x2ee   : > { %v9587_v58 = vpop.permute.xlu0 %5877  ;;  %v4295_v60 = vsel %vm11605_vm2, %v4263_v26, %v5859_v14  ;;  %vm11607_vm14 = vmmov %vm11600_vm10  ;;  %v5800_v47 = vunpack.i.h.bf16 %v9461_v56  ;;  %vm11611_vm11 = vcmask 31744   ;;  %vm11612_vm7 = vcmask 261120  }
 0x2ef   : > { %v9593_v5 = vpop.permute.xlu1 %5852  ;;  %v5879_v27 = vunpack.i.l.bf16 %v9587_v58  ;;  %vm11608_vm10 = vmmov %vm11605_vm2  ;;  %v4327_v0 = vsel %vm11604_vm3, %v4295_v60, %v5815_v61  ;;  %v5840_v26 = vunpack.i.h.bf16 %v9506_v53  ;;  %v5820_v53 = vunpack.i.h.bf16 %v9525_v23 }
 0x2f0   : > { %v5854_v29 = vunpack.i.l.bf16 %v9593_v5  ;;  %v4294_v8 = vsel %vm11608_vm10, %v4262_v18, %v5810_v32  ;;  %vm11609_vm15 = vmmov %vm11604_vm3  ;;  %vm11616_vm10 = vcmask 293888  }
 0x2f1   : > { %v4326_v2 = vsel %vm11609_vm15, %v4294_v8, %v5814_v21  ;;  %vm11610_vm9 = vmmov %vm11604_vm3  ;;  %v2952_v8 = vsel %vm11509_vm5, %v9203_v9, 0.0 }
 0x2f2   : > { %v4201_v35 = vsel %vm11606_vm1, %v4169_v45, %v5854_v29  ;;  %v5903_v30 = vpop.permute.xlu0 %5902  ;;  %v4328_v55 = vsel %vm11610_vm9, %v4296_v62, %v5839_v17  ;;  %vm11613_vm2 = vmmov %vm11612_vm7  ;;  %vm11618_vm9 = vcmask 162816  }
 0x2f3   : > { %v5904_v6 = vunpack.i.l.bf16 %v5903_v30  ;;  %v5863_v3 = vpop.permute.xlu1 %5862  ;;  %v4233_v43 = vsel %vm11607_vm14, %v4201_v35, %v5844_v11  ;;  %v4360_v14 = vsel %vm11612_vm7, %v4328_v55, %v5879_v27  ;;  %v4357_v56 = vsel %vm11613_vm2, %v4325_v7, %v5800_v47  ;;  %vm11614_vm1 = vmmov %vm11613_vm2 }
 0x2f4   : > { %v5865_v34 = vunpack.i.h.bf16 %v5863_v3  ;;  %v5864_v4 = vunpack.i.l.bf16 %v5863_v3  ;;  %vm11615_vm14 = vmmov %vm11614_vm1  ;;  %v5905_v27 = vunpack.i.h.bf16 %v5903_v30  ;;  %vm11620_vm7 = vcmask 31744  }
 0x2f5   : > { %v4144_v52 = vsel %vm11611_vm11, %v2950_v28, %v5904_v6  ;;  %vm11617_vm15 = vmmov %vm11616_vm10  ;;  %vm11619_vm11 = vcmask 195584   ;;  %vm11621_vm2 = vcmask 64512  }
 0x2f6   : > { %v4359_v45 = vsel %vm11614_vm1, %v4327_v0, %v5865_v34  ;;  %v4358_v24 = vsel %vm11615_vm14, %v4326_v2, %v5864_v4  ;;  %v9624_v40 = vpop.permute.xlu0 %5907  ;;  %v4145_v6 = vsel %vm11620_vm7, %v9187_v44, %v5905_v27  ;;  %vm11622_vm1 = vmmov %vm11620_vm7  ;;  %vm11631_vm7 = vnez %v11492_v63 }
 0x2f7   : > { %v4388_v36 = vpack.c.bf16 %v4360_v14, %v4359_v45  ;;  %v4387_v18 = vpack.c.bf16 %v4358_v24, %v4357_v56  ;;  %v9626_v1 = vpop.permute.xlu1 %5882  ;;  %vm11623_vm14 = vmmov %vm11621_vm2 }
 0x2f8   : > { %v5884_v22 = vunpack.i.l.bf16 %v9626_v1 }
 0x2f9   : > { %4999 = vmatprep.mubr.msk.bf16.mxu1 %vm11616_vm10, %v4387_v18  ;;  %vm11624_vm10 = vmmov %vm11622_vm1 }
 0x2fa   : > { %5000 = vmatmul.mubr.msk.bf16.gmra.mxu1 %vm11617_vm15, %v4388_v36  ;;  %v9631_v28 = vpop.permute.xlu0 %5912  ;;  %v4265_v7 = vsel %vm11618_vm9, %v4233_v43, %v5884_v22  ;;  %v4143_v44 = vsel %vm11624_vm10, %v8917_v31, %v5820_v53  ;;  %vm11625_vm15 = vcmask 97280   ;;  %vm11627_vm9 = vmmov %vm11621_vm2 }
 0x2fb   : > { %v9633_v32 = vpop.permute.xlu1 %5887 }
 0x2fc   : > { %v5889_v29 = vunpack.i.l.bf16 %v9633_v32 }
 0x2fe   : > { %v4297_v21 = vsel %vm11619_vm11, %v4265_v7, %v5889_v29  ;;  %v9639_v11 = vpop.permute.xlu0 %5927  ;;  %vm11628_vm11 = vmmov %vm11621_vm2 }
 0x2ff   : > { %v9642_v62 = vsel %vm11604_vm3, %v4297_v21, %v5840_v26  ;;  %v9644_v60 = vpop.permute.xlu1 %5892  ;;  %vm11629_vm3 = vmmov %vm11625_vm15  ;;  %v2954_v26 = vsel %vm11631_vm7, %v9280_v38, 0.0 }
 0x302   : > { %v5933_v35 = vpop.permute.xlu0 %5932 }
 0x303   : > { %v5934_v17 = vunpack.i.l.bf16 %v5933_v35  ;;  %v5898_v61 = vpop.permute.xlu1 %5897  ;;  %v5935_v43 = vunpack.i.h.bf16 %v5933_v35 }
 0x304   : > { %v5899_v3 = vunpack.i.l.bf16 %v5898_v61 }
 0x305   : > { %v4176_v47 = vsel %vm11621_vm2, %v4145_v6, %v5934_v17  ;;  %vm11632_vm2 = vmmov %vm11622_vm1 }
 0x306   : > { %v4146_v34 = vsel %vm11622_vm1, %v2952_v8, %v5899_v3  ;;  %v5938_v4 = vpop.permute.xlu0 %5937  ;;  %vm11633_vm1 = vmmov %vm11629_vm3 }
 0x307   : > { %v5940_v30 = vunpack.i.h.bf16 %v5938_v4  ;;  %v5918_v2 = vpop.permute.xlu1 %5917  ;;  %v4177_v55 = vsel %vm11623_vm14, %v4146_v34, %v5935_v43  ;;  %v5939_v23 = vunpack.i.l.bf16 %v5938_v4  ;;  %vm11635_vm14 = vmmov %vm11633_vm1  ;;  %v2956_v4 = vsel %vm11528_vm13, %v9238_v59, 0.0 }
 0x308   : > { %v5920_v0 = vunpack.i.h.bf16 %v5918_v2  ;;  %v5919_v14 = vunpack.i.l.bf16 %v5918_v2  ;;  %vm11636_vm10 = vmmov %vm11632_vm2 }
 0x309   : > { %v9658_v56 = vsel %vm11625_vm15, %v4176_v47, %v5940_v30  ;;  %v5900_v47 = vunpack.i.h.bf16 %v5898_v61  ;;  %vm11637_vm15 = vmmov %vm11627_vm9 }
 0x30a   : > { %11626 = vst [vmem:[#allocation60_spill] sm:$0xff] %v9658_v56  ;;  %v4175_v45 = vsel %vm11627_vm9, %v4144_v52, %v5920_v0  ;;  %v4174_v24 = vsel %vm11628_vm11, %v4143_v44, %v5919_v14  ;;  %v5948_v36 = vpop.permute.xlu0 %5947  ;;  %vm11638_vm9 = vmmov %vm11632_vm2  ;;  %v5875_v56 = vunpack.i.h.bf16 %v9567_v50 }
 0x30b   : > { %v5949_v18 = vunpack.i.l.bf16 %v5948_v36  ;;  %v5923_v22 = vpop.permute.xlu1 %5922  ;;  %v9663_v29 = vsel %vm11629_vm3, %v4175_v45, %v5939_v23  ;;  %v5950_v7 = vunpack.i.h.bf16 %v5948_v36  ;;  %v11639_v45 = vld [vmem:[#allocation35_spill] sm:$0xff]  ;;  %vm11640_vm3 = vmmov %vm11632_vm2 }
 0x30c   : > { %11630 = vst [vmem:[#allocation62_spill] sm:$0xff] %v9663_v29  ;;  %v5925_v31 = vunpack.i.h.bf16 %v5923_v22  ;;  %v5924_v21 = vunpack.i.l.bf16 %v5923_v22  ;;  %v4147_v61 = vsel %vm11640_vm3, %v11639_v45, %v5900_v47  ;;  %v11670_v29 = vld [vmem:[#allocation26_spill] sm:$0xff] }
 0x30d   : > { %v4148_v27 = vsel %vm11632_vm2, %v2954_v26, %v5949_v18  ;;  %v4149_v53 = vsel %vm11636_vm10, %v9286_v37, %v5950_v7  ;;  %vm11641_vm2 = vmmov %vm11633_vm1 }
 0x30e   : > { %v9670_v35 = vsel %vm11633_vm1, %v4174_v24, %v5925_v31  ;;  %v9674_v52 = vsel %vm11635_vm14, %v9561_v51, %v5924_v21  ;;  %v5963_v17 = vpop.permute.xlu0 %5962  ;;  %vm11643_vm1 = vmmov %vm11628_vm11 }
 0x30f   : > { %11634 = vst [vmem:[#allocation66_spill] sm:$0xff] %v9670_v35  ;;  %v5964_v6 = vunpack.i.l.bf16 %v5963_v17  ;;  %v9676_v3 = vpop.permute.xlu1 %5942  ;;  %v5965_v8 = vunpack.i.h.bf16 %v5963_v17  ;;  %vm11644_vm14 = vmmov %vm11643_vm1  ;;  %v2958_v17 = vsel %vm11186_vm0, %v9367_v41, 0.0 }
 0x310   : > { %v5944_v43 = vunpack.i.l.bf16 %v9676_v3  ;;  %vm11645_vm10 = vmmov %vm11641_vm2 }
 0x311   : > { %v4180_v34 = vsel %vm11637_vm15, %v4149_v53, %v5964_v6  ;;  %vm11647_vm15 = vmmov %vm11640_vm3 }
 0x312   : > { %v4150_v51 = vsel %vm11638_vm9, %v2956_v4, %v5944_v43  ;;  %v5968_v30 = vpop.permute.xlu0 %5967  ;;  %vm11648_vm9 = vmmov %vm11641_vm2 }
 0x313   : > { %v5970_v2 = vunpack.i.h.bf16 %v5968_v30  ;;  %v5953_v0 = vpop.permute.xlu1 %5952  ;;  %v9687_v14 = vsel %vm11628_vm11, %v4150_v51, %v5965_v8  ;;  %v5969_v24 = vunpack.i.l.bf16 %v5968_v30  ;;  %v5740_v8 = vunpack.i.h.bf16 %v9428_v57  ;;  %vm11650_vm11 = vmmov %vm11641_vm2  ;;  %v11652_v30 = vld [vmem:[#allocation24_spill] sm:$0xff] }
 0x314   : > { %v5955_v44 = vunpack.i.h.bf16 %v5953_v0  ;;  %v5954_v23 = vunpack.i.l.bf16 %v5953_v0 }
 0x315   : > { %v9692_v36 = vsel %vm11641_vm2, %v4180_v34, %v5970_v2  ;;  %v11653_v2 = vld [vmem:[#allocation61_spill] sm:$0xff] }
 0x316   : > { %11642 = vst [vmem:[#allocation68_spill] sm:$0xff] %v9692_v36  ;;  %v4179_v18 = vsel %vm11643_vm1, %v4148_v27, %v5955_v44  ;;  %v4178_v22 = vsel %vm11644_vm14, %v4147_v61, %v5954_v23  ;;  %v5978_v26 = vpop.permute.xlu0 %5977  ;;  %v5829_v27 = vunpack.i.l.bf16 %v9494_v13  ;;  %vm11654_vm3 = vnez %v11653_v2  ;;  %v11655_v61 = vld [vmem:[#allocation80_spill] sm:$0xff]  ;;  %vm11660_vm14 = vmmov %vm11647_vm15  ;;  %v11663_v2 = vld [vmem:[#allocation82_spill] sm:$0xff] }
 0x317   : > { %v5979_v7 = vunpack.i.l.bf16 %v5978_v26  ;;  %v5958_v31 = vpop.permute.xlu1 %5957  ;;  %v9697_v21 = vsel %vm11645_vm10, %v4179_v18, %v5969_v24  ;;  %v5980_v6 = vunpack.i.h.bf16 %v5978_v26  ;;  %v2946_v0 = vsel %vm11654_vm3, %v11652_v30, 0.0  ;;  %v11657_v24 = vld [vmem:[#allocation3_spill] sm:$0xff]  ;;  %v11658_v18 = vld [vmem:[#allocation81_spill] sm:$0xff] }
 0x318   : > { %11646 = vst [vmem:[#allocation87_spill] sm:$0xff] %v9697_v21  ;;  %v5960_v53 = vunpack.i.h.bf16 %v5958_v31  ;;  %v5959_v43 = vunpack.i.l.bf16 %v5958_v31  ;;  %vm11656_vm2 = vnez %v11655_v61  ;;  %vm11659_vm1 = vnez %v11658_v18  ;;  %v11662_v30 = vld [vmem:[#allocation77_spill] sm:$0xff]  ;;  %v11665_v21 = vld [vmem:[#allocation15_spill] sm:$0xff] }
 0x319   : > { %v4152_v47 = vsel %vm11647_vm15, %v2958_v17, %v5979_v7  ;;  %v2960_v57 = vsel %vm11656_vm2, %v9320_v49, 0.0  ;;  %v5830_v26 = vunpack.i.h.bf16 %v9494_v13  ;;  %v4153_v7 = vsel %vm11660_vm14, %v9371_v16, %v5980_v6 }
 0x31a   : > { %v9706_v34 = vsel %vm11648_vm9, %v4178_v22, %v5960_v53  ;;  %v9709_v4 = vsel %vm11650_vm11, %v4177_v55, %v5959_v43  ;;  %v5993_v51 = vpop.permute.xlu0 %5992  ;;  %v5850_v55 = vunpack.i.h.bf16 %v9573_v10  ;;  %v5945_v17 = vunpack.i.h.bf16 %v9676_v3  ;;  %vm11666_vm9 = vmmov %vm11660_vm14 }
 0x31b   : > { %11649 = vst [vmem:[#allocation4_spill] sm:$0xff] %v9706_v34  ;;  %11651 = vst [vmem:[#allocation79_spill] sm:$0xff] %v9709_v4  ;;  %v5994_v44 = vunpack.i.l.bf16 %v5993_v51  ;;  %v9714_v23 = vpop.permute.xlu1 %5972  ;;  %v5995_v53 = vunpack.i.h.bf16 %v5993_v51  ;;  %vm11661_vm10 = vcmask 64512   ;;  %vm11664_vm15 = vnez %v11663_v2 }
 0x31c   : > { %v5974_v31 = vunpack.i.l.bf16 %v9714_v23  ;;  %v2964_v36 = vsel %vm11664_vm15, %v11662_v30, 0.0  ;;  %v4139_v22 = vsel %vm11666_vm9, %v11665_v21, %v5740_v8  ;;  %vm11667_vm11 = vmmov %vm11666_vm9  ;;  %v5869_v34 = vunpack.i.l.bf16 %v9544_v42 }
 0x31d   : > { %v4184_v43 = vsel %vm11661_vm10, %v4153_v7, %v5994_v44  ;;  %v4140_v13 = vsel %vm11667_vm11, %v2946_v0, %v5829_v27  ;;  %vm11668_vm3 = vmmov %vm11666_vm9  ;;  %v5849_v3 = vunpack.i.l.bf16 %v9573_v10  ;;  %v5855_v42 = vunpack.i.h.bf16 %v9593_v5 }
 0x31e   : > { %v4154_v6 = vsel %vm11668_vm3, %v2960_v57, %v5974_v31  ;;  %v5998_v4 = vpop.permute.xlu0 %5997  ;;  %vm11669_vm14 = vmmov %vm11661_vm10 }
 0x31f   : > { %v6000_v51 = vunpack.i.h.bf16 %v5998_v4  ;;  %v5983_v44 = vpop.permute.xlu1 %5982  ;;  %v9740_v7 = vsel %vm11669_vm14, %v4154_v6, %v5995_v53  ;;  %vm11671_vm10 = vmmov %vm11668_vm3  ;;  %v5999_v57 = vunpack.i.l.bf16 %v5998_v4  ;;  %v5874_v53 = vunpack.i.l.bf16 %v9567_v50 }
 0x320   : > { %v4141_v35 = vsel %vm11671_vm10, %v11670_v29, %v5830_v26  ;;  %vm11672_vm9 = vmmov %vm11669_vm14  ;;  %v5985_v8 = vunpack.i.h.bf16 %v5983_v44  ;;  %v5984_v27 = vunpack.i.l.bf16 %v5983_v44  ;;  %v5910_v50 = vunpack.i.h.bf16 %v9624_v40 }
 0x321   : > { %v4171_v21 = vsel %vm11672_vm9, %v4140_v13, %v5850_v55  ;;  %vm11673_vm11 = vmmov %vm11668_vm3  ;;  %vm11674_vm3 = vcmask 97280   ;;  %v5825_v55 = vunpack.i.h.bf16 %v9481_v46  ;;  %v5824_v13 = vunpack.i.l.bf16 %v9481_v46 }
 0x322   : > { %v4151_v0 = vsel %vm11673_vm11, %v9266_v12, %v5945_v17  ;;  %v9749_v10 = vsel %vm11674_vm3, %v4184_v43, %v6000_v51  ;;  %vm11675_vm2 = vmmov %vm11672_vm9  ;;  %v9755_v26 = vpop.permute.xlu0 %6012  ;;  %v5845_v51 = vunpack.i.h.bf16 %v9550_v19 }
 0x323   : > { %v4172_v31 = vsel %vm11675_vm2, %v4141_v35, %v5869_v34  ;;  %vm11676_vm14 = vmmov %vm11675_vm2  ;;  %v5988_v4 = vpop.permute.xlu1 %5987  ;;  %v4203_v35 = vsel %vm11674_vm3, %v4171_v21, %v5874_v53 }
 0x324   : > { %v4183_v6 = vsel %vm11676_vm14, %v4152_v47, %v5985_v8  ;;  %vm11677_vm10 = vmmov %vm11675_vm2  ;;  %v5990_v34 = vunpack.i.h.bf16 %v5988_v4  ;;  %v5989_v47 = vunpack.i.l.bf16 %v5988_v4 }
 0x325   : > { %v4182_v29 = vsel %vm11677_vm10, %v4151_v0, %v5984_v27  ;;  %vm11678_vm9 = vmmov %vm11674_vm3  ;;  %vm11684_vm10 = vcmask 130048  }
 0x326   : > { %v4204_v5 = vsel %vm11678_vm9, %v4172_v31, %v5875_v56  ;;  %vm11679_vm8 = vmmov %vm11675_vm2  ;;  %v5909_v56 = vunpack.i.l.bf16 %v9624_v40  ;;  %v9778_v27 = vpop.permute.xlu0 %6017  ;;  %v4235_v46 = vsel %vm11684_vm10, %v4203_v35, %v5824_v13  ;;  %v5890_v31 = vunpack.i.h.bf16 %v9633_v32 }
 0x327   : > { %v4170_v17 = vsel %vm11679_vm8, %v4139_v22, %v5849_v3  ;;  %vm11680_vm11 = vmmov %vm11674_vm3  ;;  %v5930_v22 = vunpack.i.h.bf16 %v9639_v11  ;;  %v5929_v3 = vunpack.i.l.bf16 %v9639_v11  ;;  %v6019_v40 = vunpack.i.l.bf16 %v9778_v27  ;;  %v9784_v0 = vpop.permute.xlu1 %6002 }
 0x328   : > { %v9761_v43 = vsel %vm11680_vm11, %v4183_v6, %v5999_v57  ;;  %vm11681_vm2 = vmmov %vm11674_vm3  ;;  %vm11686_vm11 = vcmask 162816   ;;  %v5895_v6 = vunpack.i.h.bf16 %v9644_v60  ;;  %v6014_v32 = vunpack.i.l.bf16 %v9755_v26 }
 0x329   : > { %v4202_v44 = vsel %vm11681_vm2, %v4170_v17, %v5855_v42  ;;  %vm11682_vm8 = vmmov %vm11681_vm2  ;;  %v5885_v42 = vunpack.i.h.bf16 %v9626_v1  ;;  %v11689_v1 = vsel %vm11659_vm1, %v11657_v24, 0.0 }
 0x32a   : > { %v9772_v8 = vsel %vm11682_vm8, %v4182_v29, %v5990_v34  ;;  %vm11683_vm14 = vmmov %vm11681_vm2  ;;  %v5894_v29 = vunpack.i.l.bf16 %v9644_v60  ;;  %vm11690_vm8 = vcmask 31744   ;;  %v5880_v34 = vunpack.i.h.bf16 %v9587_v58 }
 0x32b   : > { %v9776_v21 = vsel %vm11683_vm14, %v9687_v14, %v5989_v47  ;;  %vm11685_vm9 = vmmov %vm11684_vm10  ;;  %v6004_v14 = vunpack.i.l.bf16 %v9784_v0  ;;  %vm11691_vm14 = vcmask 195584   ;;  %v6008_v60 = vpop.permute.xlu1 %6007 }
 0x32c   : > { %v4236_v19 = vsel %vm11685_vm9, %v4204_v5, %v5825_v55  ;;  %vm11687_vm3 = vmmov %vm11685_vm9  ;;  %v4156_v55 = vsel %vm11690_vm8, %v11689_v1, %v6019_v40  ;;  %v6010_v13 = vunpack.i.h.bf16 %v6008_v60 }
 0x32d   : > { %v4268_v11 = vsel %vm11686_vm11, %v4236_v19, %v5910_v50  ;;  %v4234_v57 = vsel %vm11687_vm3, %v4202_v44, %v5845_v51  ;;  %vm11688_vm2 = vmmov %vm11686_vm11  ;;  %v5914_v50 = vunpack.i.l.bf16 %v9631_v28  ;;  %v6009_v51 = vunpack.i.l.bf16 %v6008_v60 }
 0x32e   : > { %v4267_v53 = vsel %vm11688_vm2, %v4235_v46, %v5909_v56  ;;  %v4300_v5 = vsel %vm11691_vm14, %v4268_v11, %v5930_v22  ;;  %vm11692_vm10 = vmmov %vm11691_vm14  ;;  %v5975_v22 = vunpack.i.h.bf16 %v9714_v23 }
 0x32f   : > { %v4299_v17 = vsel %vm11692_vm10, %v4267_v53, %v5929_v3  ;;  %vm11693_vm9 = vmmov %vm11690_vm8  ;;  %v6023_v11 = vpop.permute.xlu1 %6022 }
 0x330   : > { %v9802_v4 = vsel %vm11693_vm9, %v2964_v36, %v6004_v14  ;;  %vm11694_vm11 = vmmov %vm11688_vm2  ;;  %vm11696_vm2 = vcmask 228352  }
 0x331   : > { %v4266_v35 = vsel %vm11694_vm11, %v4234_v57, %v5885_v42  ;;  %vm11695_vm3 = vmmov %vm11692_vm10  ;;  %vm11699_vm10 = vcmask 261120   ;;  %v6025_v57 = vunpack.i.h.bf16 %v6023_v11 }
 0x332   : > { %v4298_v47 = vsel %vm11695_vm3, %v4266_v35, %v5890_v31  ;;  %vm11697_vm8 = vmmov %vm11696_vm2  ;;  %v6024_v31 = vunpack.i.l.bf16 %v6023_v11  ;;  %vm11703_vm3 = vcmask 31744  }
 0x333   : > { %v4330_v44 = vsel %vm11696_vm2, %v4298_v47, %v5894_v29  ;;  %v4331_v56 = vsel %vm11697_vm8, %v4299_v17, %v5895_v6  ;;  %vm11698_vm14 = vmmov %vm11696_vm2  ;;  %v4155_v14 = vsel %vm11703_vm3, %v9350_v48, %v5975_v22  ;;  %vm11704_vm2 = vcmask 293888   ;;  %v6320_v6 = vld [vmem:[%s10425_s2] ss:$0 sm:$0xff]  ;;  %v6321_v17 = vld [vmem:[%s10425_s2 + $0x1] ss:$0 sm:$0xff] }
 0x334   : > { %v4332_v36 = vsel %vm11698_vm14, %v4300_v5, %v5914_v50  ;;  %vm11700_vm9 = vmmov %vm11699_vm10  ;;  %vm11705_vm8 = vcmask 64512  }
 0x335   : > { %v4364_v3 = vsel %vm11699_vm10, %v4332_v36, %v6014_v32  ;;  %v4361_v46 = vsel %vm11700_vm9, %v9642_v62, %v5880_v34  ;;  %vm11701_vm11 = vmmov %vm11700_vm9  ;;  %v9821_v23 = vsel %vm11705_vm8, %v4156_v55, %v6025_v57 }
 0x336   : > { %v4363_v19 = vsel %vm11701_vm11, %v4331_v56, %v6010_v13  ;;  %vm11702_vm1 = vmmov %vm11700_vm9  ;;  %vm11710_vm9 = vcmask 1040384  }
 0x337   : > { %v4362_v58 = vsel %vm11702_vm1, %v4330_v44, %v6009_v51  ;;  %v4390_v42 = vpack.c.bf16 %v4364_v3, %v4363_v19  ;;  %vm11706_vm14 = vmmov %vm11705_vm8  ;;  %v11708_v19 = vrot.slane %v9373_v39, 1  ;;  %vm11709_vm1 = vcmask 1046528  }
 0x338   : > { %v4389_v40 = vpack.c.bf16 %v4362_v58, %v4361_v46  ;;  %v9824_v53 = vsel %vm11706_vm14, %v4155_v14, %v6024_v31  ;;  %vm11707_vm10 = vmmov %vm11704_vm2 }
 0x339   : > { %vm11711_vm11 = vmmov %vm11709_vm1 }
 0x33a   : > { %5003 = vmatprep.mubr.msk.bf16.mxu1 %vm11704_vm2, %v4389_v40  ;;  %vm11714_vm2 = vmmov %vm11709_vm1 }
 0x33b   : > { %5004 = vmatmul.mubr.msk.bf16.gmra.mxu1 %vm11707_vm10, %v4390_v42  ;;  %vm11715_vm8 = vmmov %vm11710_vm9 }
 0x369   : > { %v4987_v62 = vpop.f32.mrf.mxu0 }
 0x36a   : > { %v2747_v29 = vmul.f32 %v6320_v6, %v4987_v62 }
 0x36b   : > { %v2697_v1 = vpop.f32.mrf.mxu0 }
 0x36c   : > { %v2745_v5 = vmul.f32 %v6320_v6, %v2697_v1  ;;  %v2784_v32 = vadd.f32 %v6321_v17, %v2747_v29 }
 0x36d   : > { %v4988_v55 = vpop.f32.mrf.mxu0 }
 0x36e   : > { %v2782_v35 = vadd.f32 %v6321_v17, %v2745_v5  ;;  %v2748_v50 = vmul.f32 %v6320_v6, %v4988_v55  ;;  %v2816_v51 = vmax.f32 %v2784_v32, 0.0 }
 0x36f   : > { %v2700_v60 = vpop.f32.mrf.mxu0 }
 0x370   : > { %v9833_v34 = vmax.f32 %v2782_v35, 0.0  ;;  %v2785_v47 = vadd.f32 %v6321_v17, %v2748_v50  ;;  %v2746_v13 = vmul.f32 %v6320_v6, %v2700_v60  ;;  %v3094_v46 = vrot.slane %v2816_v51, 7  ;;  %v11712_v6 = vld [vmem:[#allocation42_spill] sm:$0xff]  ;;  %v11717_v50 = vld [vmem:[#allocation44_spill] sm:$0xff] }
 0x371   : > { %v3028_v11 = vrot.slane %v2816_v51, 1  ;;  %vm11713_vm3 = vnez %v11712_v6  ;;  %vm11718_vm14 = vnez %v11717_v50  ;;  %v11724_v6 = vld [vmem:[#allocation96_spill] sm:$0xff]  ;;  %v11725_v50 = vld [vmem:[#allocation25_spill] sm:$0xff] }
 0x372   : > { %v9835_v44 = vmax.f32 %v2785_v47, 0.0  ;;  %v2783_v56 = vadd.f32 %v6321_v17, %v2746_v13  ;;  %v3024_v22 = vrot.slane %v9833_v34, 1  ;;  %v11719_v13 = vld [vmem:[#allocation83_spill] sm:$0xff] }
 0x373   : > { %vm11720_vm10 = vnez %v11719_v13 }
 0x374   : > { %v3096_v36 = vrot.slane %v9835_v44, 7  ;;  %v9839_v3 = vmax.f32 %v2783_v56, 0.0  ;;  %v9844_v58 = vsel %vm11709_vm1, %v11708_v19, %v3024_v22  ;;  %v3132_v31 = vrot.slane %v9835_v44, 1 }
 0x375   : > { %v3090_v29 = vsel %vm11713_vm3, %v9844_v58, 0.0  ;;  %v3227_v35 = vsel %vm11471_vm12, %v9844_v58, 0.0  ;;  %v9887_v19 = vpack.i.bf16 %v9835_v44, %v2816_v51  ;;  %vm11721_vm12 = vmmov %vm11709_vm1  ;;  %v3183_v51 = vsel %vm11481_vm4, %v9203_v9, 0.0 }
 0x376   : > { %v9848_v42 = vpack.i.bf16 %v9839_v3, %v9833_v34  ;;  %v3026_v40 = vrot.slane %v9839_v3, 1  ;;  %v2905_v57 = vrot.slane %v9839_v3, 7  ;;  %v3097_v14 = vsel %vm11710_vm9, %v3094_v46, %v3096_v36 }
 0x377   : > { %v3133_v55 = vsel %vm11721_vm12, %v3028_v11, %v3132_v31  ;;  %v3185_v9 = vsel %vm11477_vm6, %v9280_v38, 0.0  ;;  %v11733_v38 = vld [vmem:[#allocation101_spill] sm:$0xff]  ;;  %vm11744_vm6 = vcmask 31744   ;;  %vm11766_vm9 = vnez %v11658_v18 }
 0x378   : > { %6037 = vrot.lane.b32.xlu0 %v9848_v42, %s6365_s24  ;;  %v3027_v62 = vsel %vm11711_vm11, %v3024_v22, %v3026_v40  ;;  %v9863_v1 = vsel %vm11714_vm2, %v3026_v40, %v3028_v11  ;;  %v3095_v5 = vsel %vm11715_vm8, %v2905_v57, %v3094_v46  ;;  %v11723_v11 = vld [vmem:[#allocation92_spill] sm:$0xff]  ;;  %v6066_v33 = vpack.i.bf16 %v9286_v37, %v3185_v9  ;;  %v11737_v9 = vld [vmem:[#allocation33_spill] sm:$0xff]  ;;  %vm11747_vm4 = vmmov %vm11744_vm6 }
 0x379   : > { %v6041_v17 = vpack.i.bf16 %v3027_v62, %v3090_v29  ;;  %v3166_v32 = vsel %vm11713_vm3, %v9863_v1, 0.0  ;;  %v3092_v60 = vsel %vm11718_vm14, %v9863_v1, 0.0  ;;  %v9877_v47 = vpack.i.bf16 %v3027_v62, %v3227_v35  ;;  %vm11768_vm11 = vmmov %vm11715_vm8 }
 0x37a   : > { %v3130_v56 = vsel %vm11720_vm10, %v3095_v5, 0.0  ;;  %v9884_v46 = vpack.i.bf16 %v3166_v32, %v3027_v62  ;;  %v3199_v40 = vsel %vm11664_vm15, %v3095_v5, 0.0  ;;  %v3136_v35 = vsel %vm11709_vm1, %v3132_v31, 0.0  ;;  %vm11774_vm2 = vmmov %vm11715_vm8 }
 0x37b   : > { %6042 = vrot.lane.b32.xlu1 %v6041_v17, %s6366_s25  ;;  %v9882_v22 = vpack.i.bf16 %v3097_v14, %v3130_v56  ;;  %v9892_v29 = vpack.i.bf16 %v3097_v14, %v3199_v40  ;;  %v3168_v17 = vsel %vm11718_vm14, %v3136_v35, 0.0  ;;  %v3231_v62 = vsel %vm11713_vm3, %v3136_v35, 0.0  ;;  %v11722_v14 = vld [vmem:[#allocation95_spill] sm:$0xff]  ;;  %v11729_v40 = vld [vmem:[#allocation76_spill] sm:$0xff]  ;;  %vm11775_vm8 = vmmov %vm11747_vm4 }
 0x37c   : > { %3413 = vrot.lane.b32.xlu0 %v3092_v60, %s6366_s25  ;;  %v9903_v32 = vpack.i.bf16 %v3168_v17, %v3133_v55  ;;  %v9905_v5 = vpack.i.bf16 %v3231_v62, %v3133_v55  ;;  %v6061_v31 = vpack.i.bf16 %v11639_v45, %v3183_v51  ;;  %v11726_v60 = vld [vmem:[#allocation19_spill] sm:$0xff]  ;;  %v11728_v45 = vld [vmem:[#allocation98_spill] sm:$0xff]  ;;  %v3187_v37 = vsel %vm11509_vm5, %v9238_v59, 0.0  ;;  %vm11748_vm5 = vmmov %vm11747_vm4 }
 0x37d   : > { %v11727_v56 = vpack.i.bf16 %v11725_v50, %v11726_v60  ;;  %v11730_v55 = vld [vmem:[#allocation74_spill] sm:$0xff]  ;;  %v11735_v62 = vld [vmem:[#allocation99_spill] sm:$0xff]  ;;  %v6111_v51 = vpack.i.bf16 %v9266_v12, %v3187_v37  ;;  %v3189_v59 = vsel %vm11631_vm7, %v9367_v41, 0.0  ;;  %vm11751_vm7 = vmmov %vm11747_vm4 }
 0x37e   : > { %v11731_v35 = vpack.i.bf16 %v11729_v40, %v11730_v55  ;;  %v11734_v17 = vld [vmem:[#allocation102_spill] sm:$0xff]  ;;  %vm11776_vm14 = vmmov %vm11774_vm2 }
 0x37f   : > { %6052 = vrot.lane.b32.xlu1 %v11722_v14, %s6369_s28  ;;  %v11736_v14 = vld [vmem:[#allocation103_spill] sm:$0xff]  ;;  %v9956_v12 = vld [vmem:[%s10427_s4 + $0x1] ss:$0 sm:$0xff]  ;;  %vm11777_vm12 = vmmov %vm11747_vm4 }
 0x380   : > { %6047 = vrot.lane.b32.xlu0 %v11723_v11, %s6368_s27  ;;  %v9948_v11 = vld [vmem:[%s10427_s4] ss:$0 sm:$0xff]  ;;  %vm11778_vm1 = vmmov %vm11747_vm4 }
 0x381   : > { %v11742_v37 = vld [vmem:[#allocation30_spill] sm:$0xff] }
 0x383   : > { %6062 = vrot.lane.b32.xlu1 %v6061_v31, %s6370_s29  ;;  %v6116_v31 = vpack.i.bf16 %v9371_v16, %v3189_v59 }
 0x384   : > { %6057 = vrot.lane.b32.xlu0 %v11724_v6, %s6369_s28 }
 0x387   : > { %6072 = vrot.lane.b32.xlu1 %v11727_v56, %s6371_s11 }
 0x388   : > { %6067 = vrot.lane.b32.xlu0 %v6066_v33, %s6370_s29  ;;  %v11738_v33 = vld [vmem:[#allocation69_spill] sm:$0xff] }
 0x389   : > { %v11739_v50 = vpack.i.bf16 %v11737_v9, %v11738_v33 }
 0x38b   : > { %6082 = vrot.lane.b32.xlu1 %v11728_v45, %s6372_s12  ;;  %v6322_v45 = vld [vmem:[%s6419_s23 + $0x10] sm:$0xff] }
 0x38c   : > { %6077 = vrot.lane.b32.xlu0 %v11731_v35, %s6371_s11  ;;  %v11740_v35 = vld [vmem:[#allocation105_spill] sm:$0xff] }
 0x38f   : > { %6092 = vrot.lane.b32.xlu1 %v11732_v15, %s6368_s27 }
 0x390   : > { %6087 = vrot.lane.b32.xlu0 %v11733_v38, %s6372_s12  ;;  %v11741_v38 = vld [vmem:[#allocation28_spill] sm:$0xff] }
 0x393   : > { %6102 = vrot.lane.b32.xlu1 %v11734_v17, %s6369_s28  ;;  %v11743_v17 = vpack.i.bf16 %v11741_v38, %v11742_v37  ;;  %v11754_v37 = vld [vmem:[#allocation40_spill] sm:$0xff] }
 0x394   : > { %6097 = vrot.lane.b32.xlu0 %v11735_v62, %s6368_s27 }
 0x397   : > { %6112 = vrot.lane.b32.xlu1 %v6111_v51, %s6370_s29  ;;  %v6323_v51 = vld [vmem:[%s6419_s23] sm:$0xff] }
 0x398   : > { %6107 = vrot.lane.b32.xlu0 %v11736_v14, %s6369_s28 }
 0x39a   : > { %v4997_v54 = vpop.f32.mrf.mxu1 }
 0x39b   : > { %v4640_v6 = vmul.f32 %v4997_v54, %v9948_v11  ;;  %6122 = vrot.lane.b32.xlu1 %v11739_v50, %s6371_s11  ;;  %v11745_v50 = vld [vmem:[#allocation104_spill] sm:$0xff] }
 0x39c   : > { %v4506_v60 = vpop.f32.mrf.mxu1  ;;  %6117 = vrot.lane.b32.xlu0 %v6116_v31, %s6370_s29 }
 0x39d   : > { %v4677_v63 = vadd.f32 %v9956_v12, %v4640_v6  ;;  %v4638_v41 = vmul.f32 %v9948_v11, %v4506_v60  ;;  %v6324_v6 = vld [vmem:[%s6419_s23 + $0x18] sm:$0xff]  ;;  %v11746_v60 = vld [vmem:[#allocation107_spill] sm:$0xff] }
 0x39e   : > { %v4998_v56 = vpop.f32.mrf.mxu1 }
 0x39f   : > { %v4709_v40 = vadd.f32 %v6322_v45, %v4677_v63  ;;  %v4675_v16 = vadd.f32 %v9956_v12, %v4638_v41  ;;  %v4641_v55 = vmul.f32 %v4998_v56, %v9948_v11  ;;  %6132 = vrot.lane.b32.xlu1 %v11740_v35, %s6372_s12  ;;  %v6325_v41 = vld [vmem:[%s6419_s23 + $0x8] sm:$0xff]  ;;  %v3191_v45 = vsel %vm11528_vm13, %v9320_v49, 0.0 }
 0x3a0   : > { %v4509_v15 = vpop.f32.mrf.mxu1  ;;  %6127 = vrot.lane.b32.xlu0 %v11743_v17, %s6371_s11  ;;  %v6161_v35 = vpack.i.bf16 %v9350_v48, %v3191_v45  ;;  %v3193_v49 = vsel %vm11186_vm0, %v11657_v24, 0.0  ;;  %v11755_v17 = vld [vmem:[#allocation32_spill] sm:$0xff]  ;;  %v11757_v48 = vld [vmem:[#allocation111_spill] sm:$0xff]  ;;  %vm11764_vm0 = vnez %v11655_v61 }
 0x3a1   : > { %v4741_v62 = vmax.f32 %v4709_v40, 0.0  ;;  %v4707_v14 = vadd.f32 %v6323_v51, %v4675_v16  ;;  %v4678_v59 = vadd.f32 %v9956_v12, %v4641_v55  ;;  %v4639_v54 = vmul.f32 %v9948_v11, %v4509_v15  ;;  %v11749_v16 = vld [vmem:[#allocation108_spill] sm:$0xff]  ;;  %v11750_v55 = vld [vmem:[#allocation106_spill] sm:$0xff]  ;;  %v11758_v51 = vld [vmem:[#allocation109_spill] sm:$0xff] }
 0x3a2   : > { %v11752_v15 = vld [vmem:[#allocation110_spill] sm:$0xff]  ;;  %v6166_v38 = vpack.i.bf16 %v11753_v25, %v3193_v49  ;;  %v3195_v49 = vsel %vm11764_vm0, %v11662_v30, 0.0 }
 0x3a3   : > { %4773 = vst.msk [vmem:[%s9977_s21 + $0x10] sm:$0xff] %vm11744_vm6, %v4741_v62  ;;  %v4739_v31 = vmax.f32 %v4707_v14, 0.0  ;;  %v4710_v9 = vadd.f32 %v6324_v6, %v4678_v59  ;;  %v4676_v33 = vadd.f32 %v9956_v12, %v4639_v54  ;;  %6142 = vrot.lane.b32.xlu1 %v11745_v50, %s6368_s27  ;;  %v11756_v62 = vpack.i.bf16 %v11754_v37, %v11755_v17  ;;  %v11759_v14 = vld [vmem:[#allocation31_spill] sm:$0xff]  ;;  %v11761_v54 = vld [vmem:[#allocation34_spill] sm:$0xff]  ;;  %v11765_v50 = vld [vmem:[#allocation56_spill] sm:$0xff] }
 0x3a4   : > { %6137 = vrot.lane.b32.xlu0 %v11746_v60, %s6372_s12  ;;  %vm11760_vm13 = vnez %v11759_v14  ;;  %v3124_v6 = vsel %vm11764_vm0, %v11657_v24, 0.0  ;;  %v2903_v37 = vrot.slane %v9833_v34, 7  ;;  %v6326_v17 = vld [vmem:[%s6419_s23 + $0x30] sm:$0xff]  ;;  %vm11779_vm6 = vmmov %vm11778_vm1 }
 0x3a5   : > { %4771 = vst.msk [vmem:[%s9977_s21] sm:$0xff] %vm11747_vm4, %v4739_v31  ;;  %v4742_v63 = vmax.f32 %v4710_v9, 0.0  ;;  %v4708_v56 = vadd.f32 %v6325_v41, %v4676_v33  ;;  %v3225_v59 = vsel %vm11760_vm13, %v11758_v51, 0.0  ;;  %v11763_v31 = vpack.i.bf16 %v11761_v54, %v11762_v20  ;;  %v11770_v14 = vld [vmem:[#allocation112_spill] sm:$0xff]  ;;  %vm11781_vm4 = vmmov %vm11778_vm1 }
 0x3a6   : > { %v2901_v9 = vrot.slane %v9373_v39, 7  ;;  %v6191_v33 = vpack.i.bf16 %v11753_v25, %v3124_v6  ;;  %v6186_v60 = vpack.i.bf16 %v11765_v50, %v3225_v59  ;;  %v11767_v41 = vrot.slane %v11761_v54, 7  ;;  %v11771_v59 = vld [vmem:[#allocation39_spill] sm:$0xff]  ;;  %v6327_v6 = vld [vmem:[%s6419_s23 + $0x20] sm:$0xff] }
 0x3a7   : > { %4774 = vst.msk [vmem:[%s9977_s21 + $0x18] sm:$0xff] %vm11748_vm5, %v4742_v63  ;;  %v4740_v40 = vmax.f32 %v4708_v56, 0.0  ;;  %6152 = vrot.lane.b32.xlu1 %v11749_v16, %s6369_s28  ;;  %v3126_v63 = vsel %vm11766_vm9, %v11662_v30, 0.0  ;;  %v11769_v16 = vld [vmem:[#allocation36_spill] sm:$0xff]  ;;  %vm11772_vm3 = vnez %v11771_v59  ;;  %vm11782_vm5 = vmmov %vm11778_vm1  ;;  %vm11784_vm13 = vcmask 64512  }
 0x3a8   : > { %6147 = vrot.lane.b32.xlu0 %v11750_v55, %s6368_s27  ;;  %v10044_v56 = vsel %vm11768_vm11, %v11767_v41, %v2901_v9  ;;  %v3164_v54 = vsel %vm11772_vm3, %v9844_v58, 0.0  ;;  %v11773_v30 = vld [vmem:[#allocation52_spill] sm:$0xff]  ;;  %vm11785_vm0 = vmmov %vm11784_vm13  ;;  %vm11788_vm11 = vcmask 162816  }
 0x3a9   : > { %4772 = vst.msk [vmem:[%s9977_s21 + $0x8] sm:$0xff] %vm11751_vm7, %v4740_v40  ;;  %v6196_v45 = vpack.i.bf16 %v10044_v56, %v3126_v63  ;;  %v6221_v20 = vpack.i.bf16 %v10044_v56, %v3195_v49  ;;  %v6216_v41 = vpack.i.bf16 %v3164_v54, %v11765_v50  ;;  %v6329_v50 = vld [vmem:[%s6419_s23 + $0x28] sm:$0xff]  ;;  %vm11783_vm7 = vmmov %vm11778_vm1 }
 0x3ab   : > { %6162 = vrot.lane.b32.xlu1 %v6161_v35, %s6370_s29 }
 0x3ac   : > { %6157 = vrot.lane.b32.xlu0 %v11752_v15, %s6369_s28 }
 0x3af   : > { %6172 = vrot.lane.b32.xlu1 %v11756_v62, %s6371_s11 }
 0x3b0   : > { %6167 = vrot.lane.b32.xlu0 %v6166_v38, %s6370_s29 }
 0x3b3   : > { %6182 = vrot.lane.b32.xlu1 %v11757_v48, %s6372_s12 }
 0x3b4   : > { %6177 = vrot.lane.b32.xlu0 %v11763_v31, %s6371_s11 }
 0x3b7   : > { %6192 = vrot.lane.b32.xlu1 %v6191_v33, %s6367_s26 }
 0x3b8   : > { %6187 = vrot.lane.b32.xlu0 %v6186_v60, %s6372_s12 }
 0x3ba   : > { %v5001_v24 = vpop.f32.mrf.mxu1 }
 0x3bb   : > { %v4644_v40 = vmul.f32 %v5001_v24, %v9948_v11  ;;  %6202 = vrot.lane.b32.xlu1 %v11769_v16, %s6368_s27  ;;  %v2904_v24 = vsel %vm11774_vm2, %v2901_v9, %v2903_v37 }
 0x3bc   : > { %v4522_v55 = vpop.f32.mrf.mxu1  ;;  %6197 = vrot.lane.b32.xlu0 %v6196_v45, %s6367_s26  ;;  %v6328_v45 = vld [vmem:[%s6419_s23 + $0x38] sm:$0xff]  ;;  %v3197_v49 = vsel %vm11766_vm9, %v2904_v24, 0.0  ;;  %vm11786_vm9 = vmmov %vm11785_vm0 }
 0x3bd   : > { %v4681_v35 = vadd.f32 %v9956_v12, %v4644_v40  ;;  %v4642_v15 = vmul.f32 %v9948_v11, %v4522_v55  ;;  %v2906_v55 = vsel %vm11776_vm14, %v2903_v37, %v2905_v57  ;;  %v6028_v57 = vpop.permute.xlu1 %6027  ;;  %vm11793_vm14 = vmmov %vm11778_vm1 }
 0x3be   : > { %v5002_v38 = vpop.f32.mrf.mxu1 }
 0x3bf   : > { %v4713_v62 = vadd.f32 %v6326_v17, %v4681_v35  ;;  %v4679_v48 = vadd.f32 %v9956_v12, %v4642_v15  ;;  %v4645_v51 = vmul.f32 %v5002_v38, %v9948_v11  ;;  %6212 = vrot.lane.b32.xlu1 %v11770_v14, %s6369_s28  ;;  %v6231_v15 = vpack.i.bf16 %v9833_v34, %v9373_v39 }
 0x3c0   : > { %v4525_v61 = vpop.f32.mrf.mxu1  ;;  %6207 = vrot.lane.b32.xlu0 %v11773_v30, %s6368_s27  ;;  %v6226_v38 = vpack.i.bf16 %v2906_v55, %v3197_v49  ;;  %v3128_v39 = vsel %vm11664_vm15, %v2904_v24, 0.0  ;;  %v3229_v34 = vsel %vm11772_vm3, %v9863_v1, 0.0  ;;  %vm11780_vm15 = vmmov %vm11774_vm2  ;;  %v6029_v14 = vunpack.i.l.bf16 %v6028_v57  ;;  %v6331_v49 = vld [vmem:[%s6419_s23 + $0x40] sm:$0xff] }
 0x3c1   : > { %v4745_v31 = vmax.f32 %v4713_v62, 0.0  ;;  %v4711_v33 = vadd.f32 %v6327_v6, %v4679_v48  ;;  %v4682_v60 = vadd.f32 %v9956_v12, %v4645_v51  ;;  %v4643_v63 = vmul.f32 %v9948_v11, %v4525_v61 }
 0x3c2   : > { %v6241_v18 = vpack.i.bf16 %v2906_v55, %v3128_v39  ;;  %v3170_v2 = vsel %vm11780_vm15, %v3096_v36, 0.0  ;;  %v2966_v36 = vsel %vm11720_vm10, %v2904_v24, 0.0  ;;  %vm11789_vm3 = vcmask 195584   ;;  %vm11798_vm15 = vmmov %vm11781_vm4 }
 0x3c3   : > { %4777 = vst.msk [vmem:[%s9977_s21 + $0x30] sm:$0xff] %vm11775_vm8, %v4745_v31  ;;  %v4743_v58 = vmax.f32 %v4711_v33, 0.0  ;;  %v4714_v40 = vadd.f32 %v6328_v45, %v4682_v60  ;;  %v4680_v16 = vadd.f32 %v9956_v12, %v4643_v63  ;;  %6222 = vrot.lane.b32.xlu1 %v6221_v20, %s6370_s29  ;;  %v5915_v33 = vunpack.i.h.bf16 %v9631_v28 }
 0x3c4   : > { %6217 = vrot.lane.b32.xlu0 %v6216_v41, %s6369_s28  ;;  %v6030_v60 = vunpack.i.h.bf16 %v6028_v57  ;;  %vm11790_vm2 = vcmask 228352  }
 0x3c5   : > { %4775 = vst.msk [vmem:[%s9977_s21 + $0x20] sm:$0xff] %vm11777_vm12, %v4743_v58  ;;  %v4746_v9 = vmax.f32 %v4714_v40, 0.0  ;;  %v4712_v35 = vadd.f32 %v6329_v50, %v4680_v16  ;;  %v6330_v40 = vld [vmem:[%s6419_s23 + $0x50] sm:$0xff]  ;;  %vm11794_vm12 = vcmask 261120  }
 0x3c7   : > { %4778 = vst.msk [vmem:[%s9977_s21 + $0x38] sm:$0xff] %vm11778_vm1, %v4746_v9  ;;  %v4744_v17 = vmax.f32 %v4712_v35, 0.0  ;;  %6232 = vrot.lane.b32.xlu1 %v6231_v15, %s6371_s11  ;;  %vm11795_vm1 = vmmov %vm11788_vm11 }
 0x3c8   : > { %6227 = vrot.lane.b32.xlu0 %v6226_v38, %s6370_s29 }
 0x3c9   : > { %4776 = vst.msk [vmem:[%s9977_s21 + $0x28] sm:$0xff] %vm11779_vm6, %v4744_v17 }
 0x3cb   : > { %6237 = vrot.lane.b32.xlu1 %v9877_v47, %s6372_s12  ;;  %v6005_v47 = vunpack.i.h.bf16 %v9784_v0 }
 0x3cc   : > { %3976 = vrot.lane.b32.xlu0 %v9839_v3, %s6371_s11  ;;  %v3201_v3 = vsel %vm11720_vm10, %v3170_v2, 0.0  ;;  %vm11787_vm10 = vcmask 130048  }
 0x3cd   : > { %v4237_v63 = vsel %vm11787_vm10, %v9674_v52, %v6029_v14  ;;  %vm11792_vm8 = vmmov %vm11787_vm10 }
 0x3ce   : > { %vm11797_vm6 = vmmov %vm11792_vm8 }
 0x3cf   : > { %6242 = vrot.lane.b32.xlu1 %v6241_v18, %s6367_s26  ;;  %vm11805_vm10 = vmmov %vm11797_vm6 }
 0x3d0   : > { %4096 = vrot.lane.b32.xlu0 %v3229_v34, %s6372_s12  ;;  %v6015_v34 = vunpack.i.h.bf16 %v9755_v26 }
 0x3d3   : > { %6252 = vrot.lane.b32.xlu1 %v9848_v42, %s6368_s27  ;;  %v10128_v42 = vpop.permute.xlu0 %6032 }
 0x3d4   : > { %6247 = vrot.lane.b32.xlu0 %v9882_v22, %s6367_s26 }
 0x3d7   : > { %6262 = vrot.lane.b32.xlu1 %v9884_v46, %s6369_s28 }
 0x3d8   : > { %6257 = vrot.lane.b32.xlu0 %v9887_v19, %s6368_s27 }
 0x3db   : > { %6272 = vrot.lane.b32.xlu1 %v9892_v29, %s6370_s29 }
 0x3dc   : > { %6267 = vrot.lane.b32.xlu0 %v9903_v32, %s6369_s28 }
 0x3df   : > { %6277 = vrot.lane.b32.xlu1 %v9887_v19, %s6371_s11 }
 0x3e0   : > { %3889 = vrot.lane.b32.xlu0 %v3201_v3, %s6370_s29 }
 0x3e4   : > { %6282 = vrot.lane.b32.xlu0 %v9905_v5, %s6372_s12  ;;  %v4159_v5 = vsel %vm11783_vm7, %v10044_v56, %v6005_v47  ;;  %v11791_v47 = vld [vmem:[#allocation66_spill] sm:$0xff] }
 0x3ea   : > { %v6038_v1 = vpop.permute.xlu0 %6037 }
 0x3eb   : > { %v6040_v44 = vunpack.i.h.bf16 %v6038_v1  ;;  %v6039_v22 = vunpack.i.l.bf16 %v6038_v1 }
 0x3ed   : > { %v4160_v46 = vsel %vm11781_vm4, %v2966_v36, %v6039_v22  ;;  %v6043_v19 = vpop.permute.xlu1 %6042  ;;  %v4161_v29 = vsel %vm11782_vm5, %v2906_v55, %v6040_v44  ;;  %v4238_v44 = vsel %vm11792_vm8, %v11791_v47, %v6030_v60  ;;  %v6332_v36 = vld [vmem:[%s6419_s23 + $0x58] sm:$0xff]  ;;  %vm11799_vm4 = vmmov %vm11789_vm3 }
 0x3ee   : > { %v6045_v32 = vunpack.i.h.bf16 %v6043_v19  ;;  %v6044_v37 = vunpack.i.l.bf16 %v6043_v19  ;;  %v3414_v62 = vpop.permute.xlu0 %3413  ;;  %vm11800_vm5 = vmmov %vm11795_vm1 }
 0x3ef   : > { %v10138_v48 = vsel %vm11784_vm13, %v4161_v29, %v3414_v62  ;;  %vm11801_vm13 = vmmov %vm11790_vm2 }
 0x3f0   : > { %v10141_v0 = vsel %vm11785_vm0, %v4160_v46, %v6045_v32  ;;  %v10144_v13 = vsel %vm11786_vm9, %v4159_v5, %v6044_v37  ;;  %v11796_v5 = vld [vmem:[#allocation62_spill] sm:$0xff]  ;;  %vm11802_vm0 = vmmov %vm11789_vm3 }
 0x3f1   : > { %v6053_v51 = vpop.permute.xlu1 %6052  ;;  %vm11803_vm9 = vmmov %vm11794_vm12 }
 0x3f2   : > { %v10146_v54 = vpop.permute.xlu0 %6047  ;;  %v6054_v61 = vunpack.i.l.bf16 %v6053_v51  ;;  %v6055_v50 = vunpack.i.h.bf16 %v6053_v51  ;;  %vm11808_vm8 = vmmov %vm11802_vm0 }
 0x3f3   : > { %v6049_v28 = vunpack.i.l.bf16 %v10146_v54  ;;  %v6050_v29 = vunpack.i.h.bf16 %v10146_v54 }
 0x3f4   : > { %v4269_v45 = vsel %vm11788_vm11, %v4237_v63, %v6054_v61  ;;  %v4270_v62 = vsel %vm11795_vm1, %v4238_v44, %v6055_v50  ;;  %vm11806_vm11 = vmmov %vm11795_vm1 }
 0x3f5   : > { %v6063_v6 = vpop.permute.xlu1 %6062  ;;  %v4239_v51 = vsel %vm11797_vm6, %v11796_v5, %v6049_v28  ;;  %vm11811_vm1 = vmmov %vm11803_vm9 }
 0x3f6   : > { %v6064_v41 = vunpack.i.l.bf16 %v6063_v6  ;;  %v6058_v58 = vpop.permute.xlu0 %6057  ;;  %v6065_v2 = vunpack.i.h.bf16 %v6063_v6  ;;  %vm11812_vm6 = vmmov %vm11811_vm1 }
 0x3f7   : > { %v6059_v3 = vunpack.i.l.bf16 %v6058_v58 }
 0x3f8   : > { %v4301_v35 = vsel %vm11789_vm3, %v4269_v45, %v6064_v41  ;;  %vm11807_vm3 = vmmov %vm11783_vm7 }
 0x3f9   : > { %v4333_v17 = vsel %vm11790_vm2, %v4301_v35, %v5915_v33  ;;  %v6073_v18 = vpop.permute.xlu1 %6072  ;;  %v4271_v54 = vsel %vm11800_vm5, %v4239_v51, %v6059_v3 }
 0x3fa   : > { %v6068_v1 = vpop.permute.xlu0 %6067  ;;  %v6074_v19 = vunpack.i.l.bf16 %v6073_v18  ;;  %v4365_v37 = vsel %vm11794_vm12, %v4333_v17, %v6015_v34  ;;  %vm11810_vm12 = vmmov %vm11790_vm2 }
 0x3fb   : > { %v5005_v59 = vpop.f32.mrf.mxu1  ;;  %v6069_v32 = vunpack.i.l.bf16 %v6068_v1  ;;  %v6070_v60 = vunpack.i.h.bf16 %v6068_v1 }
 0x3fc   : > { %v4648_v30 = vmul.f32 %v5005_v59, %v9948_v11  ;;  %v6060_v59 = vunpack.i.h.bf16 %v6058_v58 }
 0x3fd   : > { %v4538_v20 = vpop.f32.mrf.mxu1  ;;  %v6083_v61 = vpop.permute.xlu1 %6082  ;;  %v4303_v63 = vsel %vm11802_vm0, %v4271_v54, %v6069_v32 }
 0x3fe   : > { %v4685_v56 = vadd.f32 %v9956_v12, %v4648_v30  ;;  %v4646_v31 = vmul.f32 %v9948_v11, %v4538_v20  ;;  %v4302_v30 = vsel %vm11799_vm4, %v4270_v62, %v6065_v2  ;;  %v6333_v20 = vld [vmem:[%s6419_s23 + $0x48] sm:$0xff]  ;;  %v6078_v6 = vpop.permute.xlu0 %6077  ;;  %vm11815_vm4 = vmmov %vm11805_vm10 }
 0x3ff   : > { %v5006_v24 = vpop.f32.mrf.mxu1  ;;  %v4334_v33 = vsel %vm11801_vm13, %v4302_v30, %v6074_v19  ;;  %v6079_v45 = vunpack.i.l.bf16 %v6078_v6  ;;  %v11817_v30 = vld [vmem:[#allocation4_spill] sm:$0xff]  ;;  %vm11818_vm13 = vmmov %vm11815_vm4 }
 0x400   : > { %v4717_v16 = vadd.f32 %v6330_v40, %v4685_v56  ;;  %v4683_v55 = vadd.f32 %v9956_v12, %v4646_v31  ;;  %v4649_v9 = vmul.f32 %v5006_v24, %v9948_v11  ;;  %v6084_v31 = vunpack.i.l.bf16 %v6083_v61  ;;  %v11804_v40 = vld [vmem:[#allocation60_spill] sm:$0xff] }
 0x401   : > { %v4541_v15 = vpop.f32.mrf.mxu1  ;;  %v6075_v24 = vunpack.i.h.bf16 %v6073_v18  ;;  %v6093_v50 = vpop.permute.xlu1 %6092 }
 0x402   : > { %v4749_v52 = vmax.f32 %v4717_v16, 0.0  ;;  %v4715_v38 = vadd.f32 %v6331_v49, %v4683_v55  ;;  %v4686_v39 = vadd.f32 %v9956_v12, %v4649_v9  ;;  %v4647_v57 = vmul.f32 %v9948_v11, %v4541_v15  ;;  %v6088_v15 = vpop.permute.xlu0 %6087 }
 0x403   : > { %v4366_v58 = vsel %vm11803_vm9, %v4334_v33, %v6084_v31  ;;  %v4240_v16 = vsel %vm11805_vm10, %v11804_v40, %v6050_v29  ;;  %v6085_v55 = vunpack.i.h.bf16 %v6083_v61  ;;  %v4335_v35 = vsel %vm11790_vm2, %v4303_v63, %v6075_v24  ;;  %v11820_v33 = vld [vmem:[#allocation87_spill] sm:$0xff]  ;;  %vm11821_vm9 = vmmov %vm11815_vm4 }
 0x404   : > { %4781 = vst.msk [vmem:[%s9977_s21 + $0x50] sm:$0xff] %vm11793_vm14, %v4749_v52  ;;  %v4747_v22 = vmax.f32 %v4715_v38, 0.0  ;;  %v4718_v46 = vadd.f32 %v6332_v36, %v4686_v39  ;;  %v4684_v26 = vadd.f32 %v9956_v12, %v4647_v57  ;;  %v4391_v9 = vpack.c.bf16 %v4366_v58, %v4365_v37  ;;  %v11814_v36 = vld [vmem:[#allocation79_spill] sm:$0xff]  ;;  %vm11822_vm10 = vmmov %vm11790_vm2 }
 0x405   : > { %v4272_v28 = vsel %vm11806_vm11, %v4240_v16, %v6060_v59  ;;  %v6089_v49 = vunpack.i.l.bf16 %v6088_v15  ;;  %vm11809_vm14 = vcmask 293888   ;;  %v4367_v17 = vsel %vm11811_vm1, %v4335_v35, %v6085_v55  ;;  %v6103_v18 = vpop.permute.xlu1 %6102 }
 0x406   : > { %4779 = vst.msk [vmem:[%s9977_s21 + $0x40] sm:$0xff] %vm11798_vm15, %v4747_v22  ;;  %v4750_v14 = vmax.f32 %v4718_v46, 0.0  ;;  %v4716_v56 = vadd.f32 %v6333_v20, %v4684_v26  ;;  %v4304_v52 = vsel %vm11808_vm8, %v4272_v28, %v6070_v60  ;;  %5007 = vmatprep.mubr.msk.bf16.mxu1 %vm11809_vm14, %v4391_v9  ;;  %v6098_v2 = vpop.permute.xlu0 %6097  ;;  %v6094_v3 = vunpack.i.l.bf16 %v6093_v50  ;;  %vm11813_vm15 = vmmov %vm11809_vm14 }
 0x407   : > { %v4336_v38 = vsel %vm11810_vm12, %v4304_v52, %v6079_v45  ;;  %v6104_v57 = vunpack.i.l.bf16 %v6103_v18  ;;  %v6095_v22 = vunpack.i.h.bf16 %v6093_v50  ;;  %v6105_v19 = vunpack.i.h.bf16 %v6103_v18  ;;  %vm11826_vm14 = vmmov %vm11811_vm1  ;;  %v11828_v52 = vld [vmem:[#allocation68_spill] sm:$0xff] }
 0x408   : > { %4782 = vst.msk [vmem:[%s9977_s21 + $0x58] sm:$0xff] %vm11783_vm7, %v4750_v14  ;;  %v4748_v41 = vmax.f32 %v4716_v56, 0.0  ;;  %v4368_v39 = vsel %vm11812_vm6, %v4336_v38, %v6089_v49  ;;  %v4241_v46 = vsel %vm11815_vm4, %v11814_v36, %v6094_v3  ;;  %v6099_v26 = vunpack.i.l.bf16 %v6098_v2  ;;  %vm11816_vm7 = vmmov %vm11802_vm0 }
 0x409   : > { %v4392_v34 = vpack.c.bf16 %v4368_v39, %v4367_v17  ;;  %v6113_v1 = vpop.permute.xlu1 %6112  ;;  %v4273_v29 = vsel %vm11800_vm5, %v4241_v46, %v6104_v57  ;;  %v6080_v14 = vunpack.i.h.bf16 %v6078_v6  ;;  %v4242_v54 = vsel %vm11818_vm13, %v11817_v30, %v6095_v22  ;;  %vm11819_vm0 = vmmov %vm11800_vm5 }
 0x40a   : > { %4780 = vst.msk [vmem:[%s9977_s21 + $0x48] sm:$0xff] %vm11807_vm3, %v4748_v41  ;;  %v6114_v47 = vunpack.i.l.bf16 %v6113_v1  ;;  %v6108_v44 = vpop.permute.xlu0 %6107  ;;  %v6115_v37 = vunpack.i.h.bf16 %v6113_v1  ;;  %v6090_v20 = vunpack.i.h.bf16 %v6088_v15  ;;  %v4274_v56 = vsel %vm11819_vm0, %v4242_v54, %v6105_v19  ;;  %vm11823_vm11 = vmmov %vm11816_vm7 }
 0x40b   : > { %5008 = vmatmul.mubr.msk.bf16.gmra.mxu1 %vm11813_vm15, %v4392_v34  ;;  %v6109_v5 = vunpack.i.l.bf16 %v6108_v44  ;;  %v6100_v31 = vunpack.i.h.bf16 %v6098_v2  ;;  %v4243_v60 = vsel %vm11821_vm9, %v11820_v33, %v6099_v26  ;;  %v6110_v58 = vunpack.i.h.bf16 %v6108_v44  ;;  %vm11824_vm3 = vmmov %vm11819_vm0 }
 0x40c   : > { %v4305_v62 = vsel %vm11816_vm7, %v4273_v29, %v6114_v47  ;;  %v4306_v24 = vsel %vm11823_vm11, %v4274_v56, %v6115_v37  ;;  %vm11825_vm8 = vmmov %vm11816_vm7  ;;  %vm11833_vm5 = vcmask 293888  }
 0x40d   : > { %v6123_v32 = vpop.permute.xlu1 %6122  ;;  %v4337_v63 = vsel %vm11822_vm10, %v4305_v62, %v6080_v14  ;;  %v4275_v6 = vsel %vm11824_vm3, %v4243_v60, %v6109_v5  ;;  %vm11827_vm12 = vmmov %vm11811_vm1 }
 0x40e   : > { %v6118_v51 = vpop.permute.xlu0 %6117  ;;  %v6124_v59 = vunpack.i.l.bf16 %v6123_v32  ;;  %v6125_v50 = vunpack.i.h.bf16 %v6123_v32  ;;  %v4369_v28 = vsel %vm11826_vm14, %v4337_v63, %v6090_v20  ;;  %vm11829_vm1 = vmmov %vm11815_vm4 }
 0x40f   : > { %v6119_v61 = vunpack.i.l.bf16 %v6118_v51  ;;  %v6120_v55 = vunpack.i.h.bf16 %v6118_v51  ;;  %v4244_v49 = vsel %vm11829_vm1, %v11828_v52, %v6100_v31  ;;  %vm11830_vm6 = vmmov %vm11819_vm0 }
 0x410   : > { %v4338_v16 = vsel %vm11790_vm2, %v4306_v24, %v6124_v59  ;;  %v4276_v18 = vsel %vm11830_vm6, %v4244_v49, %v6110_v58  ;;  %vm11831_vm15 = vmmov %vm11790_vm2 }
 0x411   : > { %v6133_v41 = vpop.permute.xlu1 %6132  ;;  %v4307_v9 = vsel %vm11825_vm8, %v4275_v6, %v6119_v61  ;;  %vm11832_vm4 = vmmov %vm11816_vm7 }
 0x412   : > { %v6134_v45 = vunpack.i.l.bf16 %v6133_v41  ;;  %v6128_v40 = vpop.permute.xlu0 %6127  ;;  %v6135_v38 = vunpack.i.h.bf16 %v6133_v41  ;;  %v4339_v34 = vsel %vm11831_vm15, %v4307_v9, %v6125_v50  ;;  %v4308_v3 = vsel %vm11832_vm4, %v4276_v18, %v6120_v55  ;;  %vm11834_vm7 = vmmov %vm11790_vm2 }
 0x413   : > { %v6129_v15 = vunpack.i.l.bf16 %v6128_v40  ;;  %vm11835_vm13 = vmmov %vm11827_vm12  ;;  %v6130_v31 = vunpack.i.h.bf16 %v6128_v40 }
 0x414   : > { %v4370_v35 = vsel %vm11827_vm12, %v4338_v16, %v6134_v45  ;;  %v4371_v47 = vsel %vm11835_vm13, %v4339_v34, %v6135_v38  ;;  %vm11836_vm0 = vmmov %vm11827_vm12 }
 0x415   : > { %v4393_v17 = vpack.c.bf16 %v4370_v35, %v4369_v28  ;;  %v6143_v39 = vpop.permute.xlu1 %6142  ;;  %v4340_v1 = vsel %vm11834_vm7, %v4308_v3, %v6129_v15  ;;  %vm11837_vm9 = vmmov %vm11833_vm5 }
 0x416   : > { %v6138_v2 = vpop.permute.xlu0 %6137  ;;  %v6144_v19 = vunpack.i.l.bf16 %v6143_v39  ;;  %v6145_v62 = vunpack.i.h.bf16 %v6143_v39  ;;  %vm11838_vm10 = vmmov %vm11829_vm1 }
 0x417   : > { %v6139_v57 = vunpack.i.l.bf16 %v6138_v2  ;;  %5011 = vmatprep.mubr.msk.bf16.mxu1 %vm11833_vm5, %v4393_v17  ;;  %vm11839_vm11 = vmmov %vm11824_vm3  ;;  %v6140_v41 = vunpack.i.h.bf16 %v6138_v2 }
 0x418   : > { %v4245_v5 = vsel %vm11838_vm10, %v9776_v21, %v6144_v19  ;;  %vm11840_vm3 = vmmov %vm11832_vm4 }
 0x419   : > { %v4372_v44 = vsel %vm11836_vm0, %v4340_v1, %v6139_v57  ;;  %v6153_v22 = vpop.permute.xlu1 %6152  ;;  %vm11841_vm2 = vmmov %vm11829_vm1 }
 0x41a   : > { %v4394_v36 = vpack.c.bf16 %v4372_v44, %v4371_v47  ;;  %v6148_v46 = vpop.permute.xlu0 %6147  ;;  %v6154_v29 = vunpack.i.l.bf16 %v6153_v22  ;;  %v6155_v51 = vunpack.i.h.bf16 %v6153_v22  ;;  %v4246_v63 = vsel %vm11841_vm2, %v9772_v8, %v6145_v62  ;;  %vm11842_vm8 = vmmov %vm11830_vm6 }
 0x41b   : > { %v6149_v59 = vunpack.i.l.bf16 %v6148_v46  ;;  %v6150_v21 = vunpack.i.h.bf16 %v6148_v46  ;;  %vm11843_vm14 = vmmov %vm11829_vm1 }
 0x41c   : > { %5012 = vmatmul.mubr.msk.bf16.gmra.mxu1 %vm11837_vm9, %v4394_v36  ;;  %v4277_v14 = vsel %vm11839_vm11, %v4245_v5, %v6154_v29  ;;  %v4278_v24 = vsel %vm11842_vm8, %v4246_v63, %v6155_v51  ;;  %vm11844_vm12 = vmmov %vm11834_vm7  ;;  %vm11854_vm11 = vcmask 293888   ;;  %v6020_v29 = vunpack.i.h.bf16 %v9778_v27 }
 0x41d   : > { %v6163_v26 = vpop.permute.xlu1 %6162  ;;  %v4247_v58 = vsel %vm11843_vm14, %v9761_v43, %v6149_v59  ;;  %vm11845_vm1 = vmmov %vm11840_vm3 }
 0x41e   : > { %v6164_v32 = vunpack.i.l.bf16 %v6163_v26  ;;  %v6158_v37 = vpop.permute.xlu0 %6157  ;;  %v6165_v30 = vunpack.i.h.bf16 %v6163_v26  ;;  %vm11846_vm15 = vmmov %vm11834_vm7 }
 0x41f   : > { %v6159_v20 = vunpack.i.l.bf16 %v6158_v37  ;;  %v6160_v55 = vunpack.i.h.bf16 %v6158_v37  ;;  %vm11847_vm4 = vmmov %vm11845_vm1 }
 0x420   : > { %v4309_v54 = vsel %vm11840_vm3, %v4277_v14, %v6164_v32  ;;  %v4310_v16 = vsel %vm11845_vm1, %v4278_v24, %v6165_v30  ;;  %vm11848_vm5 = vmmov %vm11836_vm0  ;;  %v6034_v32 = vunpack.i.l.bf16 %v10128_v42 }
 0x421   : > { %v6173_v61 = vpop.permute.xlu1 %6172  ;;  %v4341_v6 = vsel %vm11844_vm12, %v4309_v54, %v6130_v31  ;;  %v4279_v40 = vsel %vm11830_vm6, %v4247_v58, %v6159_v20  ;;  %vm11849_vm7 = vmmov %vm11836_vm0 }
 0x422   : > { %v6168_v56 = vpop.permute.xlu0 %6167  ;;  %v6174_v33 = vunpack.i.l.bf16 %v6173_v61  ;;  %v6175_v15 = vunpack.i.h.bf16 %v6173_v61  ;;  %v4373_v52 = vsel %vm11848_vm5, %v4341_v6, %v6140_v41  ;;  %vm11850_vm13 = vmmov %vm11841_vm2 }
 0x423   : > { %v6169_v60 = vunpack.i.l.bf16 %v6168_v56  ;;  %v6170_v28 = vunpack.i.h.bf16 %v6168_v56  ;;  %v4248_v38 = vsel %vm11850_vm13, %v9749_v10, %v6150_v21  ;;  %vm11851_vm0 = vmmov %vm11830_vm6  ;;  %vm11861_vm6 = vcmask 97280  }
 0x424   : > { %v4342_v8 = vsel %vm11846_vm15, %v4310_v16, %v6174_v33  ;;  %v4280_v34 = vsel %vm11851_vm0, %v4248_v38, %v6160_v55  ;;  %vm11852_vm9 = vmmov %vm11844_vm12  ;;  %vm11859_vm12 = vcmask 31744  }
 0x425   : > { %v6183_v45 = vpop.permute.xlu1 %6182  ;;  %v4311_v35 = vsel %vm11847_vm4, %v4279_v40, %v6169_v60  ;;  %vm11853_vm10 = vmmov %vm11845_vm1  ;;  %v4157_v59 = vsel %vm11859_vm12, %v11753_v25, %v6020_v29  ;;  %vm11860_vm1 = vcmask 64512  }
 0x426   : > { %v6184_v9 = vunpack.i.l.bf16 %v6183_v45  ;;  %v10236_v50 = vpop.permute.xlu0 %6177  ;;  %v6185_v17 = vunpack.i.h.bf16 %v6183_v45  ;;  %v4343_v2 = vsel %vm11852_vm9, %v4311_v35, %v6175_v15  ;;  %v4312_v57 = vsel %vm11853_vm10, %v4280_v34, %v6170_v28  ;;  %vm11855_vm3 = vmmov %vm11852_vm9 }
 0x427   : > { %v6179_v49 = vunpack.i.l.bf16 %v10236_v50  ;;  %vm11856_vm2 = vmmov %vm11848_vm5  ;;  %v4188_v20 = vsel %vm11860_vm1, %v4157_v59, %v6034_v32  ;;  %v6180_v56 = vunpack.i.h.bf16 %v10236_v50 }
 0x428   : > { %v4374_v43 = vsel %vm11849_vm7, %v4342_v8, %v6184_v9  ;;  %v4375_v44 = vsel %vm11856_vm2, %v4343_v2, %v6185_v17  ;;  %vm11857_vm8 = vmmov %vm11856_vm2 }
 0x429   : > { %v4395_v39 = vpack.c.bf16 %v4374_v43, %v4373_v52  ;;  %v6193_v18 = vpop.permute.xlu1 %6192  ;;  %v4344_v47 = vsel %vm11855_vm3, %v4312_v57, %v6179_v49  ;;  %vm11858_vm14 = vmmov %vm11854_vm11 }
 0x42a   : > { %v10247_v3 = vpop.permute.xlu0 %6187  ;;  %v6194_v37 = vunpack.i.l.bf16 %v6193_v18  ;;  %v6195_v5 = vunpack.i.h.bf16 %v6193_v18  ;;  %vm11862_vm15 = vmmov %vm11850_vm13 }
 0x42b   : > { %v6189_v1 = vunpack.i.l.bf16 %v10247_v3  ;;  %5015 = vmatprep.mubr.msk.bf16.mxu1 %vm11854_vm11, %v4395_v39  ;;  %vm11863_vm4 = vmmov %vm11861_vm6 }
 0x42c   : > { %v4217_v27 = vsel %vm11861_vm6, %v9740_v7, %v6194_v37  ;;  %v4218_v24 = vsel %vm11863_vm4, %v9824_v53, %v6195_v5  ;;  %vm11864_vm5 = vmmov %vm11851_vm0  ;;  %v6190_v53 = vunpack.i.h.bf16 %v10247_v3 }
 0x42d   : > { %v4376_v10 = vsel %vm11857_vm8, %v4344_v47, %v6189_v1  ;;  %v6203_v22 = vpop.permute.xlu1 %6202  ;;  %vm11865_vm7 = vmmov %vm11863_vm4  ;;  %vm11873_vm8 = vcmask 228352  }
 0x42e   : > { %v4396_v36 = vpack.c.bf16 %v4376_v10, %v4375_v44  ;;  %v6198_v46 = vpop.permute.xlu0 %6197  ;;  %v6204_v62 = vunpack.i.l.bf16 %v6203_v22  ;;  %v6205_v33 = vunpack.i.h.bf16 %v6203_v22  ;;  %vm11866_vm13 = vmmov %vm11853_vm10 }
 0x42f   : > { %v6199_v61 = vunpack.i.l.bf16 %v6198_v46  ;;  %v6200_v63 = vunpack.i.h.bf16 %v6198_v46  ;;  %vm11867_vm0 = vmmov %vm11862_vm15 }
 0x430   : > { %5016 = vmatmul.mubr.msk.bf16.gmra.mxu1 %vm11858_vm14, %v4396_v36  ;;  %v4249_v60 = vsel %vm11862_vm15, %v4217_v27, %v6204_v62  ;;  %vm11868_vm9 = vmmov %vm11867_vm0 }
 0x431   : > { %v6213_v19 = vpop.permute.xlu1 %6212  ;;  %v4219_v45 = vsel %vm11865_vm7, %v9821_v23, %v6199_v61  ;;  %v4250_v35 = vsel %vm11868_vm9, %v4218_v24, %v6205_v33  ;;  %vm11869_vm10 = vmmov %vm11863_vm4  ;;  %vm11879_vm4 = vcmask 261120  }
 0x432   : > { %v6208_v26 = vpop.permute.xlu0 %6207  ;;  %v6214_v51 = vunpack.i.l.bf16 %v6213_v19  ;;  %v6215_v25 = vunpack.i.h.bf16 %v6213_v19  ;;  %v4220_v15 = vsel %vm11869_vm10, %v4188_v20, %v6200_v63  ;;  %vm11870_vm11 = vmmov %vm11864_vm5  ;;  %vm11885_vm10 = vcmask 293888  }
 0x433   : > { %v6209_v31 = vunpack.i.l.bf16 %v6208_v26  ;;  %v6210_v58 = vunpack.i.h.bf16 %v6208_v26  ;;  %vm11871_vm3 = vmmov %vm11864_vm5 }
 0x434   : > { %v4281_v21 = vsel %vm11864_vm5, %v4249_v60, %v6214_v51  ;;  %v4282_v23 = vsel %vm11871_vm3, %v4250_v35, %v6215_v25  ;;  %vm11872_vm2 = vmmov %vm11867_vm0  ;;  %v11900_v35 = vld [vmem:[#allocation45_spill] sm:$0xff] }
 0x435   : > { %v6223_v14 = vpop.permute.xlu1 %6222  ;;  %v4251_v9 = vsel %vm11867_vm0, %v4219_v45, %v6209_v31  ;;  %v4252_v43 = vsel %vm11872_vm2, %v4220_v15, %v6210_v58  ;;  %vm11874_vm14 = vmmov %vm11866_vm13 }
 0x436   : > { %v6224_v30 = vunpack.i.l.bf16 %v6223_v14  ;;  %v6218_v54 = vpop.permute.xlu0 %6217  ;;  %v6225_v16 = vunpack.i.h.bf16 %v6223_v14  ;;  %vm11875_vm12 = vmmov %vm11866_vm13 }
 0x437   : > { %v6219_v41 = vunpack.i.l.bf16 %v6218_v54  ;;  %v6220_v55 = vunpack.i.h.bf16 %v6218_v54  ;;  %vm11876_vm1 = vmmov %vm11871_vm3  ;;  %vm11887_vm3 = vcmask 97280  }
 0x438   : > { %v4313_v7 = vsel %vm11866_vm13, %v4281_v21, %v6224_v30  ;;  %v4314_v39 = vsel %vm11875_vm12, %v4282_v23, %v6225_v16  ;;  %vm11877_vm6 = vmmov %vm11873_vm8  ;;  %v6035_v30 = vunpack.i.h.bf16 %v10128_v42 }
 0x439   : > { %v6233_v6 = vpop.permute.xlu1 %6232  ;;  %v4283_v52 = vsel %vm11870_vm11, %v4251_v9, %v6219_v41  ;;  %v4345_v49 = vsel %vm11873_vm8, %v4313_v7, %v6180_v56  ;;  %v4284_v2 = vsel %vm11876_vm1, %v4252_v43, %v6220_v55  ;;  %vm11878_vm15 = vmmov %vm11875_vm12  ;;  %vm11889_vm8 = vcmask 64512   ;;  %v11896_v9 = vld [vmem:[#allocation8_spill] sm:$0xff] }
 0x43a   : > { %v6228_v40 = vpop.permute.xlu0 %6227  ;;  %v6234_v50 = vunpack.i.l.bf16 %v6233_v6  ;;  %v6235_v18 = vunpack.i.h.bf16 %v6233_v6  ;;  %v4377_v44 = vsel %vm11879_vm4, %v4345_v49, %v6190_v53  ;;  %vm11880_vm5 = vmmov %vm11879_vm4  ;;  %v4189_v25 = vsel %vm11889_vm8, %v9802_v4, %v6035_v30  ;;  %v11902_v49 = vld [vmem:[#allocation48_spill] sm:$0xff] }
 0x43b   : > { %v6230_v8 = vunpack.i.h.bf16 %v6228_v40  ;;  %v6229_v28 = vunpack.i.l.bf16 %v6228_v40  ;;  %vm11881_vm7 = vmmov %vm11877_vm6  ;;  %vm11891_vm12 = vcmask 130048   ;;  %v11897_v4 = vunpack.i.h.bf16 %v11896_v9 }
 0x43c   : > { %v4346_v57 = vsel %vm11877_vm6, %v4314_v39, %v6234_v50  ;;  %vm11882_vm13 = vmmov %vm11877_vm6  ;;  %vm11893_vm6 = vcmask 162816  }
 0x43d   : > { %v4315_v38 = vsel %vm11874_vm14, %v4283_v52, %v6229_v28  ;;  %v6238_v17 = vpop.permute.xlu1 %6237  ;;  %v4316_v47 = vsel %vm11878_vm15, %v4284_v2, %v6230_v8  ;;  %vm11883_vm0 = vmmov %vm11879_vm4 }
 0x43e   : > { %v6239_v34 = vunpack.i.l.bf16 %v6238_v17  ;;  %v3977_v3 = vpop.permute.xlu0 %3976  ;;  %v6240_v1 = vunpack.i.h.bf16 %v6238_v17  ;;  %v4347_v22 = vsel %vm11881_vm7, %v4315_v38, %v6235_v18  ;;  %vm11884_vm9 = vmmov %vm11883_vm0 }
 0x43f   : > { %v4348_v19 = vsel %vm11882_vm13, %v4316_v47, %v3977_v3  ;;  %vm11886_vm11 = vmmov %vm11885_vm10 }
 0x440   : > { %v4378_v10 = vsel %vm11880_vm5, %v4346_v57, %v6239_v34  ;;  %v4379_v26 = vsel %vm11883_vm0, %v4347_v22, %v6240_v1  ;;  %vm11888_vm2 = vmmov %vm11887_vm3  ;;  %vm11898_vm5 = vcmask 195584  }
 0x441   : > { %v4397_v36 = vpack.c.bf16 %v4378_v10, %v4377_v44  ;;  %v6243_v46 = vpop.permute.xlu1 %6242  ;;  %vm11890_vm14 = vmmov %vm11888_vm2 }
 0x442   : > { %v4097_v29 = vpop.permute.xlu0 %4096  ;;  %v6245_v54 = vunpack.i.h.bf16 %v6243_v46  ;;  %v6244_v31 = vunpack.i.l.bf16 %v6243_v46  ;;  %vm11892_vm1 = vmmov %vm11891_vm12 }
 0x443   : > { %v4380_v32 = vsel %vm11884_vm9, %v4348_v19, %v4097_v29  ;;  %5019 = vmatprep.mubr.msk.bf16.mxu1 %vm11885_vm10, %v4397_v36  ;;  %vm11894_vm15 = vmmov %vm11893_vm6 }
 0x444   : > { %v4398_v37 = vpack.c.bf16 %v4380_v32, %v4379_v26  ;;  %v4222_v42 = vsel %vm11890_vm14, %v10144_v13, %v6245_v54  ;;  %vm11895_vm4 = vmmov %vm11888_vm2 }
 0x445   : > { %v6253_v62 = vpop.permute.xlu1 %6252  ;;  %vm11899_vm7 = vmmov %vm11898_vm5 }
 0x446   : > { %v6248_v5 = vpop.permute.xlu0 %6247  ;;  %5020 = vmatmul.mubr.msk.bf16.gmra.mxu1 %vm11886_vm11, %v4398_v37  ;;  %v6255_v6 = vunpack.i.h.bf16 %v6253_v62  ;;  %v6254_v45 = vunpack.i.l.bf16 %v6253_v62  ;;  %vm11901_vm0 = vmmov %vm11882_vm13 }
 0x447   : > { %v6250_v59 = vunpack.i.h.bf16 %v6248_v5  ;;  %v6249_v61 = vunpack.i.l.bf16 %v6248_v5  ;;  %vm11903_vm10 = vmmov %vm11892_vm1 }
 0x448   : > { %vm11904_vm11 = vmmov %vm11892_vm1 }
 0x449   : > { %v6263_v51 = vpop.permute.xlu1 %6262  ;;  %v4223_v60 = vsel %vm11887_vm3, %v10141_v0, %v6249_v61  ;;  %v4224_v63 = vsel %vm11888_vm2, %v10138_v48, %v6250_v59  ;;  %v4221_v48 = vsel %vm11895_vm4, %v4189_v25, %v6244_v31  ;;  %v4254_v39 = vsel %vm11904_vm11, %v4222_v42, %v6255_v6  ;;  %vm11905_vm3 = vmmov %vm11884_vm9  ;;  %v6337_v42 = vld [vmem:[%s6419_s23 + $0x68] sm:$0xff] }
 0x44a   : > { %v6258_v14 = vpop.permute.xlu0 %6257  ;;  %v6265_v55 = vunpack.i.h.bf16 %v6263_v51  ;;  %v6264_v40 = vunpack.i.l.bf16 %v6263_v51  ;;  %v4253_v17 = vsel %vm11903_vm10, %v4221_v48, %v6254_v45  ;;  %vm11906_vm2 = vmmov %vm11893_vm6 }
 0x44b   : > { %v6260_v20 = vunpack.i.h.bf16 %v6258_v14  ;;  %v6259_v56 = vunpack.i.l.bf16 %v6258_v14  ;;  %vm11907_vm8 = vmmov %vm11906_vm2  ;;  %v6334_v14 = vld [vmem:[%s6419_s23 + $0x70] sm:$0xff] }
 0x44c   : > { %v4285_v34 = vsel %vm11906_vm2, %v4253_v17, %v6264_v40  ;;  %v4286_v2 = vsel %vm11907_vm8, %v4254_v39, %v6265_v55  ;;  %vm11908_vm14 = vmmov %vm11898_vm5  ;;  %v6338_v55 = vld [vmem:[%s6419_s23 + $0x90] sm:$0xff] }
 0x44d   : > { %v6273_v27 = vpop.permute.xlu1 %6272  ;;  %v4256_v21 = vsel %vm11891_vm12, %v4224_v63, %v6260_v20  ;;  %v4255_v58 = vsel %vm11892_vm1, %v4223_v60, %v6259_v56  ;;  %vm11909_vm12 = vmmov %vm11898_vm5  ;;  %v6335_v56 = vld [vmem:[%s6419_s23 + $0x60] sm:$0xff]  ;;  %v6336_v63 = vld [vmem:[%s6419_s23 + $0x78] sm:$0xff] }
 0x44e   : > { %v6268_v33 = vpop.permute.xlu0 %6267  ;;  %v6275_v8 = vunpack.i.h.bf16 %v6273_v27  ;;  %v6274_v28 = vunpack.i.l.bf16 %v6273_v27  ;;  %vm11910_vm1 = vmmov %vm11901_vm0 }
 0x44f   : > { %v6270_v41 = vunpack.i.h.bf16 %v6268_v33  ;;  %v6269_v24 = vunpack.i.l.bf16 %v6268_v33  ;;  %vm11913_vm4 = vmmov %vm11905_vm3 }
 0x450   : > { %v4317_v1 = vsel %vm11908_vm14, %v4285_v34, %v6274_v28  ;;  %v4318_v47 = vsel %vm11909_vm12, %v4286_v2, %v6275_v8  ;;  %v6339_v8 = vld [vmem:[%s6419_s23 + $0x80] sm:$0xff] }
 0x451   : > { %v4288_v16 = vsel %vm11893_vm6, %v4256_v21, %v6270_v41  ;;  %v6278_v0 = vpop.permute.xlu1 %6277  ;;  %v4287_v7 = vsel %vm11894_vm15, %v4255_v58, %v6269_v24  ;;  %vm11911_vm6 = vmmov %vm11901_vm0 }
 0x452   : > { %v4320_v50 = vsel %vm11898_vm5, %v4288_v16, %v11897_v4  ;;  %v3890_v13 = vpop.permute.xlu0 %3889  ;;  %v6280_v52 = vunpack.i.h.bf16 %v6278_v0  ;;  %v6279_v23 = vunpack.i.l.bf16 %v6278_v0  ;;  %vm11912_vm15 = vmmov %vm11905_vm3  ;;  %vm11914_vm5 = vcmask 293888  }
 0x453   : > { %v4319_v53 = vsel %vm11899_vm7, %v4287_v7, %v3890_v13  ;;  %v4352_v15 = vsel %vm11882_vm13, %v4320_v50, %v11900_v35  ;;  %vm11915_vm7 = vmmov %vm11914_vm5  ;;  %vm11916_vm13 = vcmask 31744  }
 0x454   : > { %v4351_v43 = vsel %vm11901_vm0, %v4319_v53, %v11900_v35  ;;  %v4384_v38 = vsel %vm11884_vm9, %v4352_v15, %v11902_v49  ;;  %v4349_v22 = vsel %vm11910_vm1, %v4317_v1, %v6279_v23  ;;  %v4350_v36 = vsel %vm11911_vm6, %v4318_v47, %v6280_v52  ;;  %vm11917_vm0 = vmmov %vm11916_vm13  ;;  %v6340_v52 = vld [vmem:[%s6419_s23 + $0x98] sm:$0xff]  ;;  %v6342_v47 = vld [vmem:[%s6419_s23 + $0xb0] sm:$0xff] }
 0x455   : > { %v4383_v18 = vsel %vm11905_vm3, %v4351_v43, %v11902_v49  ;;  %vm11918_vm9 = vmmov %vm11917_vm0 }
 0x456   : > { %v4400_v3 = vpack.c.bf16 %v4384_v38, %v4383_v18  ;;  %v6283_v57 = vpop.permute.xlu0 %6282  ;;  %vm11919_vm10 = vmmov %vm11917_vm0  ;;  %v6341_v38 = vld [vmem:[%s6419_s23 + $0x88] sm:$0xff] }
 0x457   : > { %v6285_v44 = vunpack.i.h.bf16 %v6283_v57  ;;  %v6284_v10 = vunpack.i.l.bf16 %v6283_v57  ;;  %vm11920_vm11 = vmmov %vm11917_vm0 }
 0x458   : > { %vm11921_vm3 = vmmov %vm11917_vm0 }
 0x459   : > { %v4382_v46 = vsel %vm11912_vm15, %v4350_v36, %v6285_v44  ;;  %v4381_v19 = vsel %vm11913_vm4, %v4349_v22, %v6284_v10  ;;  %vm11922_vm2 = vmmov %vm11917_vm0 }
 0x45a   : > { %v4399_v29 = vpack.c.bf16 %v4382_v46, %v4381_v19  ;;  %vm11923_vm8 = vmmov %vm11917_vm0  ;;  %v6343_v19 = vld [vmem:[%s6419_s23 + $0xa0] sm:$0xff] }
 0x45b   : > { %vm11924_vm14 = vmmov %vm11917_vm0 }
 0x45c   : > { %5023 = vmatprep.mubr.msk.bf16.mxu1 %vm11914_vm5, %v4399_v29  ;;  %vm11925_vm12 = vmmov %vm11917_vm0 }
 0x45d   : > { %5024 = vmatmul.mubr.msk.bf16.gmra.mxu1 %vm11915_vm7, %v4400_v3  ;;  %vm11926_vm1 = vmmov %vm11917_vm0 }
 0x45e   : > { %vm11927_vm6 = vmmov %vm11917_vm0 }
 0x45f   : > { %vm11928_vm15 = vmmov %vm11917_vm0 }
 0x460   : > { %vm11929_vm4 = vmmov %vm11917_vm0 }
 0x461   : > { %vm11930_vm5 = vmmov %vm11917_vm0 }
 0x462   : > { %vm11931_vm7 = vmmov %vm11917_vm0 }
 0x4cb   : > { %v5009_v26 = vpop.f32.mrf.mxu1 }
 0x4cc   : > { %v4652_v32 = vmul.f32 %v5009_v26, %v9948_v11 }
 0x4cd   : > { %v4554_v37 = vpop.f32.mrf.mxu1 }
 0x4ce   : > { %v4689_v62 = vadd.f32 %v9956_v12, %v4652_v32  ;;  %v4650_v5 = vmul.f32 %v9948_v11, %v4554_v37 }
 0x4cf   : > { %v5010_v51 = vpop.f32.mrf.mxu1 }
 0x4d0   : > { %v4721_v59 = vadd.f32 %v6334_v14, %v4689_v62  ;;  %v4687_v61 = vadd.f32 %v9956_v12, %v4650_v5  ;;  %v4653_v30 = vmul.f32 %v5010_v51, %v9948_v11  ;;  %v6344_v62 = vld [vmem:[%s6419_s23 + $0xb8] sm:$0xff] }
 0x4d1   : > { %v4557_v54 = vpop.f32.mrf.mxu1 }
 0x4d2   : > { %v4753_v20 = vmax.f32 %v4721_v59, 0.0  ;;  %v4719_v27 = vadd.f32 %v6335_v56, %v4687_v61  ;;  %v4690_v31 = vadd.f32 %v9956_v12, %v4653_v30  ;;  %v4651_v33 = vmul.f32 %v9948_v11, %v4557_v54  ;;  %v6345_v59 = vld [vmem:[%s6419_s23 + $0xa8] sm:$0xff]  ;;  %v6346_v54 = vld [vmem:[%s10427_s4] ss:$0 sm:$0xff]  ;;  %v6347_v56 = vld [vmem:[%s10427_s4 + $0x1] ss:$0 sm:$0xff] }
 0x4d4   : > { %4785 = vst.msk [vmem:[%s9977_s21 + $0x70] sm:$0xff] %vm11916_vm13, %v4753_v20  ;;  %v4751_v60 = vmax.f32 %v4719_v27, 0.0  ;;  %v4722_v41 = vadd.f32 %v6336_v63, %v4690_v31  ;;  %v4688_v24 = vadd.f32 %v9956_v12, %v4651_v33  ;;  %vm11932_vm13 = vmmov %vm11917_vm0 }
 0x4d6   : > { %4783 = vst.msk [vmem:[%s9977_s21 + $0x60] sm:$0xff] %vm11917_vm0, %v4751_v60  ;;  %v4754_v25 = vmax.f32 %v4722_v41, 0.0  ;;  %v4720_v21 = vadd.f32 %v6337_v42, %v4688_v24  ;;  %v6348_v60 = vld [vmem:[%s6419_s23 + $0xd0] sm:$0xff] }
 0x4d8   : > { %4786 = vst.msk [vmem:[%s9977_s21 + $0x78] sm:$0xff] %vm11918_vm9, %v4754_v25  ;;  %v4752_v58 = vmax.f32 %v4720_v21, 0.0  ;;  %v6349_v21 = vld [vmem:[%s6419_s23 + $0xc0] sm:$0xff]  ;;  %vm11933_vm9 = vmmov %vm11917_vm0 }
 0x4da   : > { %4784 = vst.msk [vmem:[%s9977_s21 + $0x68] sm:$0xff] %vm11919_vm10, %v4752_v58  ;;  %vm11934_vm10 = vmmov %vm11917_vm0 }
 0x4dc   : > { %v5013_v6 = vpop.f32.mrf.mxu1 }
 0x4dd   : > { %v4656_v45 = vmul.f32 %v5013_v6, %v9948_v11 }
 0x4de   : > { %v4570_v16 = vpop.f32.mrf.mxu1 }
 0x4df   : > { %v4693_v0 = vadd.f32 %v9956_v12, %v4656_v45  ;;  %v4654_v7 = vmul.f32 %v9948_v11, %v4570_v16 }
 0x4e0   : > { %v5014_v48 = vpop.f32.mrf.mxu1 }
 0x4e1   : > { %v4725_v40 = vadd.f32 %v6338_v55, %v4693_v0  ;;  %v4691_v9 = vadd.f32 %v9956_v12, %v4654_v7  ;;  %v4657_v4 = vmul.f32 %v5014_v48, %v9948_v11  ;;  %v6350_v0 = vld [vmem:[%s6419_s23 + $0xd8] sm:$0xff] }
 0x4e2   : > { %v4573_v50 = vpop.f32.mrf.mxu1 }
 0x4e3   : > { %v4757_v13 = vmax.f32 %v4725_v40, 0.0  ;;  %v4723_v28 = vadd.f32 %v6339_v8, %v4691_v9  ;;  %v4694_v53 = vadd.f32 %v9956_v12, %v4657_v4  ;;  %v4655_v35 = vmul.f32 %v9948_v11, %v4573_v50  ;;  %v6351_v40 = vld [vmem:[%s6419_s23 + $0xc8] sm:$0xff] }
 0x4e5   : > { %4789 = vst.msk [vmem:[%s9977_s21 + $0x90] sm:$0xff] %vm11920_vm11, %v4757_v13  ;;  %v4755_v15 = vmax.f32 %v4723_v28, 0.0  ;;  %v4726_v23 = vadd.f32 %v6340_v52, %v4694_v53  ;;  %v4692_v43 = vadd.f32 %v9956_v12, %v4655_v35 }
 0x4e7   : > { %4787 = vst.msk [vmem:[%s9977_s21 + $0x80] sm:$0xff] %vm11921_vm3, %v4755_v15  ;;  %v4758_v49 = vmax.f32 %v4726_v23, 0.0  ;;  %v4724_v17 = vadd.f32 %v6341_v38, %v4692_v43  ;;  %v6352_v15 = vld [vmem:[%s6419_s23 + $0xf0] sm:$0xff] }
 0x4e9   : > { %4790 = vst.msk [vmem:[%s9977_s21 + $0x98] sm:$0xff] %vm11922_vm2, %v4758_v49  ;;  %v4756_v39 = vmax.f32 %v4724_v17, 0.0  ;;  %v6353_v17 = vld [vmem:[%s6419_s23 + $0xe0] sm:$0xff] }
 0x4eb   : > { %4788 = vst.msk [vmem:[%s9977_s21 + $0x88] sm:$0xff] %vm11923_vm8, %v4756_v39 }
 0x4f0   : > { %v5017_v18 = vpop.f32.mrf.mxu1 }
 0x4f1   : > { %v4660_v34 = vmul.f32 %v5017_v18, %v9948_v11 }
 0x4f2   : > { %v4586_v2 = vpop.f32.mrf.mxu1 }
 0x4f3   : > { %v4697_v3 = vadd.f32 %v9956_v12, %v4660_v34  ;;  %v4658_v57 = vmul.f32 %v9948_v11, %v4586_v2 }
 0x4f4   : > { %v5018_v1 = vpop.f32.mrf.mxu1 }
 0x4f5   : > { %v4729_v44 = vadd.f32 %v6342_v47, %v4697_v3  ;;  %v4695_v10 = vadd.f32 %v9956_v12, %v4658_v57  ;;  %v4661_v22 = vmul.f32 %v5018_v1, %v9948_v11  ;;  %v6354_v3 = vld [vmem:[%s6419_s23 + $0xf8] sm:$0xff] }
 0x4f6   : > { %v4589_v36 = vpop.f32.mrf.mxu1 }
 0x4f7   : > { %v4761_v46 = vmax.f32 %v4729_v44, 0.0  ;;  %v4727_v29 = vadd.f32 %v6343_v19, %v4695_v10  ;;  %v4698_v26 = vadd.f32 %v9956_v12, %v4661_v22  ;;  %v4659_v32 = vmul.f32 %v9948_v11, %v4589_v36  ;;  %v6355_v44 = vld [vmem:[%s6419_s23 + $0xe8] sm:$0xff] }
 0x4f9   : > { %4793 = vst.msk [vmem:[%s9977_s21 + $0xb0] sm:$0xff] %vm11924_vm14, %v4761_v46  ;;  %v4759_v37 = vmax.f32 %v4727_v29, 0.0  ;;  %v4730_v5 = vadd.f32 %v6344_v62, %v4698_v26  ;;  %v4696_v51 = vadd.f32 %v9956_v12, %v4659_v32 }
 0x4fb   : > { %4791 = vst.msk [vmem:[%s9977_s21 + $0xa0] sm:$0xff] %vm11925_vm12, %v4759_v37  ;;  %v4762_v14 = vmax.f32 %v4730_v5, 0.0  ;;  %v4728_v61 = vadd.f32 %v6345_v59, %v4696_v51 }
 0x4fd   : > { %4794 = vst.msk [vmem:[%s9977_s21 + $0xb8] sm:$0xff] %vm11926_vm1, %v4762_v14  ;;  %v4760_v30 = vmax.f32 %v4728_v61, 0.0 }
 0x4ff   : > { %4792 = vst.msk [vmem:[%s9977_s21 + $0xa8] sm:$0xff] %vm11927_vm6, %v4760_v30 }
 0x506   : > { %v5021_v11 = vpop.f32.mrf.mxu1 }
 0x507   : > { %v4664_v20 = vmul.f32 %v6346_v54, %v5021_v11 }
 0x508   : > { %v4602_v12 = vpop.f32.mrf.mxu1 }
 0x509   : > { %v4701_v27 = vadd.f32 %v6347_v56, %v4664_v20  ;;  %v4662_v31 = vmul.f32 %v6346_v54, %v4602_v12 }
 0x50a   : > { %v5022_v33 = vpop.f32.mrf.mxu1 }
 0x50b   : > { %v4733_v63 = vadd.f32 %v6348_v60, %v4701_v27  ;;  %v4699_v41 = vadd.f32 %v6347_v56, %v4662_v31  ;;  %v4665_v24 = vmul.f32 %v6346_v54, %v5022_v33 }
 0x50c   : > { %v4605_v25 = vpop.f32.mrf.mxu1 }
 0x50d   : > { %v4765_v42 = vmax.f32 %v4733_v63, 0.0  ;;  %v4731_v58 = vadd.f32 %v6349_v21, %v4699_v41  ;;  %v4702_v6 = vadd.f32 %v6347_v56, %v4665_v24  ;;  %v4663_v45 = vmul.f32 %v6346_v54, %v4605_v25 }
 0x50f   : > { %4797 = vst.msk [vmem:[%s9977_s21 + $0xd0] sm:$0xff] %vm11928_vm15, %v4765_v42  ;;  %v4763_v16 = vmax.f32 %v4731_v58, 0.0  ;;  %v4734_v7 = vadd.f32 %v6350_v0, %v4702_v6  ;;  %v4700_v48 = vadd.f32 %v6347_v56, %v4663_v45 }
 0x511   : > { %4795 = vst.msk [vmem:[%s9977_s21 + $0xc0] sm:$0xff] %vm11929_vm4, %v4763_v16  ;;  %v4766_v55 = vmax.f32 %v4734_v7, 0.0  ;;  %v4732_v9 = vadd.f32 %v6351_v40, %v4700_v48 }
 0x513   : > { %4798 = vst.msk [vmem:[%s9977_s21 + $0xd8] sm:$0xff] %vm11930_vm5, %v4766_v55  ;;  %v4764_v4 = vmax.f32 %v4732_v9, 0.0 }
 0x515   : > { %4796 = vst.msk [vmem:[%s9977_s21 + $0xc8] sm:$0xff] %vm11931_vm7, %v4764_v4 }
 0x51d   : > { %v5025_v50 = vpop.f32.mrf.mxu1 }
 0x51e   : > { %v4668_v13 = vmul.f32 %v6346_v54, %v5025_v50 }
 0x51f   : > { %v4618_v8 = vpop.f32.mrf.mxu1 }
 0x520   : > { %v4705_v28 = vadd.f32 %v6347_v56, %v4668_v13  ;;  %v4666_v53 = vmul.f32 %v6346_v54, %v4618_v8 }
 0x521   : > { %v5026_v35 = vpop.f32.mrf.mxu1 }
 0x522   : > { %v4737_v52 = vadd.f32 %v6352_v15, %v4705_v28  ;;  %v4703_v23 = vadd.f32 %v6347_v56, %v4666_v53  ;;  %v4669_v43 = vmul.f32 %v6346_v54, %v5026_v35 }
 0x523   : > { %v4621_v49 = vpop.f32.mrf.mxu1 }
 0x524   : > { %v4769_v38 = vmax.f32 %v4737_v52, 0.0  ;;  %v4735_v39 = vadd.f32 %v6353_v17, %v4703_v23  ;;  %v4706_v18 = vadd.f32 %v6347_v56, %v4669_v43  ;;  %v4667_v34 = vmul.f32 %v6346_v54, %v4621_v49 }
 0x526   : > { %4801 = vst.msk [vmem:[%s9977_s21 + $0xf0] sm:$0xff] %vm11932_vm13, %v4769_v38  ;;  %v4767_v2 = vmax.f32 %v4735_v39, 0.0  ;;  %v4738_v57 = vadd.f32 %v6354_v3, %v4706_v18  ;;  %v4704_v1 = vadd.f32 %v6347_v56, %v4667_v34 }
 0x528   : > { %4799 = vst.msk [vmem:[%s9977_s21 + $0xe0] sm:$0xff] %vm11917_vm0, %v4767_v2  ;;  %v4770_v47 = vmax.f32 %v4738_v57, 0.0  ;;  %v4736_v10 = vadd.f32 %v6355_v44, %v4704_v1 }
 0x52a   : > { %4802 = vst.msk [vmem:[%s9977_s21 + $0xf8] sm:$0xff] %vm11933_vm9, %v4770_v47  ;;  %v4768_v22 = vmax.f32 %v4736_v10, 0.0 }
 0x52c   : > { %4800 = vst.msk [vmem:[%s9977_s21 + $0xe8] sm:$0xff] %vm11934_vm10, %v4768_v22 }
 0x52d PF: > { %s15_s18 = sadd.s32 1, %s6362_s18  }
 0x52e   : > { %p12_p4 = scmp.ge.s32.totalorder %s15_s18, 4  }
 0x530   :  { %14 = sbr.rel (!%p12_p4) target bundleno = 1 (0x1), region = 70 }

</bundles_post_ra>
